<compile_context>
chip_gen: v5e
topology: v5e:2x2
jax: 0.10.0
libtpu: 0.0.40
codegen_flags: <defaults>
</compile_context>

<pallas_src>
import functools

import jax
import jax.numpy as jnp
import numpy as np
from jax.experimental import pallas as pl
from jax.experimental.pallas import tpu as pltpu

NEG_SLOPE = 0.2
KSIZE = 4
STRIDE = 2
PAD = 1


def _round_up(x, m):
    return ((x + m - 1) // m) * m


@functools.lru_cache(maxsize=1)
def _vmem_limit_bytes():
    """Scoped-VMEM limit: ~half the physical VMEM, capped at 64 MiB.
    v5e/v6e (128 MiB physical) -> 64 MiB, v7x (64 MiB) -> 32 MiB, unknown -> 32 MiB."""
    try:
        phys = int(pltpu.get_tpu_info().vmem_capacity_bytes)
    except Exception:
        phys = 64 * 1024 * 1024
    return max(32 * 1024 * 1024, min(phys // 2, 64 * 1024 * 1024))


# ----------------------------- Pallas kernel --------------------------------
def _conv4x4s2_kernel(x_ref, halo_ref, w_ref, b_ref, o_ref, xs_ref, *,
                      th, wo_pad, c4, apply_act):
    # x_ref:    (th, ws_pad, c4)      bf16  -- th space-to-depth rows of this block
    # halo_ref: (ws_pad, c4)          bf16  -- one extra s2d row below the block (k=2 halo)
    # w_ref:    (4, c4, cout_pad)     bf16  -- resident tap weights (constant index_map)
    # b_ref:    (1, cout_pad)         f32
    # o_ref:    (th*wo_pad, cout_pad)
    # xs_ref:   (th+1, ws_pad, c4)    bf16 scratch (block rows + halo row)
    xs_ref[0:th, :, :] = x_ref[...]
    xs_ref[th, :, :] = halo_ref[...]

    m = th * wo_pad
    acc = jnp.zeros((m, o_ref.shape[-1]), jnp.float32)
    for t in range(4):                       # unrolled: the 4 (dh, dw) taps of the k=2,s=1 conv
        dh, dw = divmod(t, 2)
        a = xs_ref[dh:dh + th, dw:dw + wo_pad, :].reshape(m, c4)
        acc = acc + jnp.dot(a, w_ref[t, :, :], preferred_element_type=jnp.float32)

    acc = acc + b_ref[...]
    if apply_act:
        acc = jnp.maximum(acc, NEG_SLOPE * acc)   # LeakyReLU(0.2)
    o_ref[...] = acc.astype(o_ref.dtype)


def _choose_row_tile(ho_k, ws_pad, c4, wo_pad, cout_pad, n_batch, out_itemsize, budget):
    """Largest divisor of ho_k whose per-step VMEM footprint fits the budget."""
    def vmem_bytes(th):
        xblk = th * ws_pad * c4 * 2               # input block (bf16), double-buffered
        halo = ws_pad * c4 * 2
        xs = (th + 1) * ws_pad * c4 * 2           # scratch
        wres = 4 * c4 * cout_pad * 2              # resident weights
        oblk = th * wo_pad * cout_pad * out_itemsize
        acc = th * wo_pad * cout_pad * 4          # f32 register/temp accumulator
        return 2 * (xblk + halo + oblk) + xs + 2 * wres + acc + (1 << 20)

    divisors = [d for d in range(1, ho_k + 1) if ho_k % d == 0]
    fitting = [d for d in divisors if vmem_bytes(d) <= budget]
    th = max(fitting) if fitting else 1
    # v7x megacore: the (batch, row-block) grid is the only parallel axis; keep >= 2 steps.
    if n_batch * (ho_k // th) < 2 and ho_k >= 2:
        smaller = [d for d in fitting if d < ho_k] or [d for d in divisors if d < ho_k]
        if smaller:
            th = max(smaller)
    return th


def _conv4x4s2(x, w_taps, b_pad, *, apply_act, out_dtype):
    """One fused Conv2d(k=4,s=2,p=1) + bias [+ LeakyReLU] layer.  x: (N,H,W,Cin_pad) bf16 NHWC."""
    n, h, w, c = x.shape
    c4 = int(w_taps.shape[1])
    cout_pad = int(w_taps.shape[2])
    cin_pad = c4 // 4
    if c < cin_pad:
        x = jnp.pad(x, ((0, 0), (0, 0), (0, 0), (0, cin_pad - c)))
    elif c > cin_pad:
        x = x[..., :cin_pad]

    ho = (h + 2 * PAD - KSIZE) // STRIDE + 1      # true conv output size
    wo = (w + 2 * PAD - KSIZE) // STRIDE + 1
    # Pad bottom/right so the padded extent is even (required by space-to-depth(2)).
    pad_b = PAD + (h % 2)
    pad_r = PAD + (w % 2)
    xp = jnp.pad(x, ((0, 0), (PAD, pad_b), (PAD, pad_r), (0, 0)))
    hs = (h + PAD + pad_b) // 2
    ws = (w + PAD + pad_r) // 2
    ho_k, wo_k = hs - 1, ws - 1                   # rows/cols the kernel produces (>= ho, wo)
    wo_pad = _round_up(max(wo_k, 1), 8)           # sublane-aligned in-kernel reshape
    ws_pad = wo_pad + 1

    # space-to-depth(2): (N, hs, ws, 4*cin_pad); channel order (si, sj, c) matches weight packing.
    xs2d = xp.reshape(n, hs, 2, ws, 2, cin_pad)
    xs2d = jnp.transpose(xs2d, (0, 1, 3, 2, 4, 5)).reshape(n, hs, ws, c4)
    if ws_pad > ws:
        xs2d = jnp.pad(xs2d, ((0, 0), (0, 0), (0, ws_pad - ws), (0, 0)))

    out_itemsize = jnp.dtype(out_dtype).itemsize
    vmem_limit = _vmem_limit_bytes()
    th = _choose_row_tile(ho_k, ws_pad, c4, wo_pad, cout_pad, n, out_itemsize,
                          (vmem_limit * 3) // 4)
    r_blocks = ho_k // th

    kernel = functools.partial(_conv4x4s2_kernel, th=th, wo_pad=wo_pad, c4=c4,
                               apply_act=apply_act)
    m_total = n * ho_k * wo_pad
    cost = pl.CostEstimate(
        flops=2 * m_total * (4 * c4) * cout_pad,
        transcendentals=0,
        bytes_accessed=int(xs2d.size * 2 + w_taps.size * 2 + b_pad.size * 4
                           + m_total * cout_pad * out_itemsize),
    )
    y = pl.pallas_call(
        kernel,
        out_shape=jax.ShapeDtypeStruct((n, ho_k * wo_pad, cout_pad), out_dtype),
        grid_spec=pltpu.PrefetchScalarGridSpec(
            num_scalar_prefetch=0,
            grid=(n, r_blocks),
            in_specs=[
                # main block: th s2d rows
                pl.BlockSpec((None, th, ws_pad, c4), lambda b, r: (b, r, 0, 0)),
                # halo: the single s2d row just below the block
                pl.BlockSpec((None, None, ws_pad, c4), lambda b, r: (b, (r + 1) * th, 0, 0)),
                # resident tap weights + bias
                pl.BlockSpec((4, c4, cout_pad), lambda b, r: (0, 0, 0)),
                pl.BlockSpec((1, cout_pad), lambda b, r: (0, 0)),
            ],
            out_specs=pl.BlockSpec((None, th * wo_pad, cout_pad), lambda b, r: (b, r, 0)),
            scratch_shapes=[pltpu.VMEM((th + 1, ws_pad, c4), jnp.bfloat16)],
        ),
        compiler_params=pltpu.CompilerParams(
            dimension_semantics=("parallel", "parallel"),
            vmem_limit_bytes=vmem_limit,
        ),
        cost_estimate=cost,
    )(xs2d, xs2d, w_taps, b_pad)

    y = y.reshape(n, ho_k, wo_pad, cout_pad)
    if ho_k > ho or wo_pad > wo:
        y = y[:, :ho, :wo, :]
    return y


# ------------------------- weight packing (one-time) -------------------------
def _pack_weight(w_oihw, cin_pad, cout_pad):
    """OIHW (Cout,Cin,4,4) -> (4, 4*Cin_pad, Cout_pad) bf16 tap matrices.
    Tap t = 2*dh + dw holds W[o, c, 2*dh+si, 2*dw+sj] at row (si*2+sj)*Cin_pad + c,
    matching the space-to-depth(2) channel packing of the activations."""
    cout, cin, kh, kw = w_oihw.shape
    assert (kh, kw) == (KSIZE, KSIZE)
    wpad = jnp.pad(w_oihw, ((0, cout_pad - cout), (0, cin_pad - cin), (0, 0), (0, 0)))
    wpad = jnp.transpose(wpad, (2, 3, 1, 0))                  # (kh, kw, cin_pad, cout_pad)
    wpad = wpad.reshape(2, 2, 2, 2, cin_pad, cout_pad)        # (dh, si, dw, sj, c, o)
    wpad = jnp.transpose(wpad, (0, 2, 1, 3, 4, 5))            # (dh, dw, si, sj, c, o)
    return wpad.reshape(4, 4 * cin_pad, cout_pad).astype(jnp.bfloat16)


def pack_fc_discriminator_params(params):
    """Pre-pack weights/biases once (hoisted out of the per-call forward path)."""
    packed = []
    prev_out_pad = None
    for i, (w, b) in enumerate(params):
        cout, cin = int(w.shape[0]), int(w.shape[1])
        cin_pad = _round_up(cin, 8) if prev_out_pad is None else prev_out_pad
        assert cin_pad >= cin
        is_last = i == len(params) - 1
        cout_pad = 128 if is_last else _round_up(cout, 8)     # lane-dense classifier stores
        w_taps = _pack_weight(w, cin_pad, cout_pad)
        b_pad = jnp.pad(b.astype(jnp.float32), (0, cout_pad - cout)).reshape(1, cout_pad)
        packed.append((w_taps, b_pad))
        prev_out_pad = cout_pad
    return packed


# ------------------------------ forward pass ---------------------------------
def fc_discriminator_forward(packed_params, x_nchw):
    """packed_params from pack_fc_discriminator_params; x_nchw: (N, num_classes, H, W) f32."""
    x = jnp.transpose(x_nchw, (0, 2, 3, 1)).astype(jnp.bfloat16)   # NHWC, bf16 activations
    n_layers = len(packed_params)
    for i, (w_taps, b_pad) in enumerate(packed_params):
        is_last = i == n_layers - 1
        x = _conv4x4s2(x, w_taps, b_pad, apply_act=not is_last,
                       out_dtype=jnp.float32 if is_last else jnp.bfloat16)
    x = x[..., :1]                              # classifier's real Cout = 1 (rest is zero padding)
    return jnp.transpose(x, (0, 3, 1, 2))       # back to NCHW (f32)


def init_fc_discriminator_params(key, num_classes=1, ndf=64):
    """Deterministic synthetic init; shapes mirror the PyTorch module."""
    chans = [
        (num_classes, ndf),
        (ndf, ndf * 2),
        (ndf * 2, ndf * 4),
        (ndf * 4, ndf * 8),
        (ndf * 8, 1),
    ]
    params = []
    for cin, cout in chans:
        key, kw, kb = jax.random.split(key, 3)
        fan_in = cin * KSIZE * KSIZE
        w = jax.random.normal(kw, (cout, cin, KSIZE, KSIZE), jnp.float32) / np.sqrt(fan_in)
        b = 0.01 * jax.random.normal(kb, (cout,), jnp.float32)
        params.append((w, b))
    return params


# ------------------------------ references -----------------------------------
def _ref_forward_f32(params, x_nchw):
    x = x_nchw
    for i, (w, b) in enumerate(params):
        x = jax.lax.conv_general_dilated(
            x, w, window_strides=(STRIDE, STRIDE), padding=((PAD, PAD), (PAD, PAD)),
            dimension_numbers=("NCHW", "OIHW", "NCHW"),
        ) + b.reshape(1, -1, 1, 1)
        if i < len(params) - 1:
            x = jnp.maximum(x, NEG_SLOPE * x)
    return x


def _ref_forward_bf16(params, x_nchw):
    """Same bf16 operand / f32 accumulate / bf16 intermediate recipe as the Pallas path."""
    x = x_nchw.astype(jnp.bfloat16)
    n = len(params)
    for i, (w, b) in enumerate(params):
        y = jax.lax.conv_general_dilated(
            x, w.astype(jnp.bfloat16),
            window_strides=(STRIDE, STRIDE), padding=((PAD, PAD), (PAD, PAD)),
            dimension_numbers=("NCHW", "OIHW", "NCHW"),
            preferred_element_type=jnp.float32,
        ) + b.reshape(1, -1, 1, 1)
        if i < n - 1:
            y = jnp.maximum(y, NEG_SLOPE * y)
            x = y.astype(jnp.bfloat16)
        else:
            x = y
    return x


if __name__ == "__main__":
    key = jax.random.PRNGKey(0)
    key, kx1, kx2 = jax.random.split(key, 3)

    num_classes, ndf = 1, 8
    params = init_fc_discriminator_params(key, num_classes=num_classes, ndf=ndf)
    packed = pack_fc_discriminator_params(params)          # one-time weight packing (hoisted)

    fwd = jax.jit(fc_discriminator_forward)

    # Case 1: 32x32 (all-even spatial chain), batch 2 -> 1x1 output.
    x1 = jax.random.normal(kx1, (2, num_classes, 32, 32), jnp.float32)
    out1 = jax.block_until_ready(fwd(packed, x1))
    out1_np = np.asarray(out1, dtype=np.float32)
    ref1_bf16 = np.asarray(_ref_forward_bf16(params, x1), dtype=np.float32)
    ref1_f32 = np.asarray(_ref_forward_f32(params, x1), dtype=np.float32)
    assert out1.shape == ref1_f32.shape == (2, 1, 1, 1), (out1.shape, ref1_f32.shape)
    np.testing.assert_allclose(out1_np, ref1_bf16, rtol=2e-2, atol=1e-2)
    np.testing.assert_allclose(out1_np, ref1_f32, rtol=6e-2, atol=6e-2)

    # Case 2: 48x48, batch 3 -> exercises odd intermediate spatial sizes and W/H padding paths.
    x2 = jax.random.normal(kx2, (3, num_classes, 48, 48), jnp.float32)
    out2 = jax.block_until_ready(fwd(packed, x2))
    out2_np = np.asarray(out2, dtype=np.float32)
    ref2_bf16 = np.asarray(_ref_forward_bf16(params, x2), dtype=np.float32)
    ref2_f32 = np.asarray(_ref_forward_f32(params, x2), dtype=np.float32)
    assert out2.shape == ref2_f32.shape == (3, 1, 1, 1), (out2.shape, ref2_f32.shape)
    np.testing.assert_allclose(out2_np, ref2_bf16, rtol=2e-2, atol=1e-2)
    np.testing.assert_allclose(out2_np, ref2_f32, rtol=6e-2, atol=6e-2)

    print("KERNEL_OK")
</pallas_src>

<mosaic_0001>
module attributes {stable_mosaic.version = 11 : i64} {
  func.func @_conv4x4s2_kernel(%arg0: i32, %arg1: i32, %arg2: memref<1x16x17x32xbf16, #tpu.memory_space<vmem>>, %arg3: memref<1x1x17x32xbf16, #tpu.memory_space<vmem>>, %arg4: memref<4x32x8xbf16, #tpu.memory_space<vmem>>, %arg5: memref<1x8xf32, #tpu.memory_space<vmem>>, %arg6: memref<1x256x8xbf16, #tpu.memory_space<vmem>>, %arg7: memref<17x17x32xbf16, #tpu.memory_space<vmem>>) attributes {dimension_semantics = [#tpu.dimension_semantics<parallel>, #tpu.dimension_semantics<parallel>], iteration_bounds = array<i64: 2, 1>, scalar_prefetch = 0 : i64, scratch_operands = 1 : i64, tpu.core_type = #tpu.core_type<tc>, window_params = [{transform_indices = @transform_0, window_bounds = array<i64: 1, 16, 17, 32>}, {transform_indices = @transform_1, window_bounds = array<i64: 1, 1, 17, 32>}, {pipeline_mode = #tpu.pipeline_mode<synchronous>, transform_indices = @transform_2, window_bounds = array<i64: 4, 32, 8>}, {pipeline_mode = #tpu.pipeline_mode<synchronous>, transform_indices = @transform_3, window_bounds = array<i64: 1, 8>}, {transform_indices = @transform_4, window_bounds = array<i64: 1, 256, 8>}]} {
    %c0 = arith.constant 0 : index
    %c0_0 = arith.constant 0 : index
    %c0_1 = arith.constant 0 : index
    %c0_2 = arith.constant 0 : index
    %0 = vector.load %arg2[%c0, %c0_0, %c0_1, %c0_2] : memref<1x16x17x32xbf16, #tpu.memory_space<vmem>>, vector<1x16x17x32xbf16>
    %1 = vector.shape_cast %0 : vector<1x16x17x32xbf16> to vector<16x17x32xbf16>
    %c0_3 = arith.constant 0 : index
    %c0_4 = arith.constant 0 : index
    %c0_5 = arith.constant 0 : index
    %2 = vector.load %arg7[%c0_3, %c0_4, %c0_5] : memref<17x17x32xbf16, #tpu.memory_space<vmem>>, vector<16x17x32xbf16>
    tpu.vector_store %arg7[%c0_3, %c0_4, %c0_5], %1 {strides = array<i32>} : memref<17x17x32xbf16, #tpu.memory_space<vmem>>, vector<16x17x32xbf16>,
    %c0_6 = arith.constant 0 : index
    %c0_7 = arith.constant 0 : index
    %c0_8 = arith.constant 0 : index
    %c0_9 = arith.constant 0 : index
    %3 = vector.load %arg3[%c0_6, %c0_7, %c0_8, %c0_9] : memref<1x1x17x32xbf16, #tpu.memory_space<vmem>>, vector<1x1x17x32xbf16>
    %4 = vector.shape_cast %3 : vector<1x1x17x32xbf16> to vector<17x32xbf16>
    %c16 = arith.constant 16 : index
    %c0_10 = arith.constant 0 : index
    %c0_11 = arith.constant 0 : index
    %5 = vector.load %arg7[%c16, %c0_10, %c0_11] : memref<17x17x32xbf16, #tpu.memory_space<vmem>>, vector<1x17x32xbf16>
    %6 = vector.shape_cast %5 : vector<1x17x32xbf16> to vector<17x32xbf16>
    %7 = vector.shape_cast %4 : vector<17x32xbf16> to vector<1x17x32xbf16>
    tpu.vector_store %arg7[%c16, %c0_10, %c0_11], %7 {strides = array<i32>} : memref<17x17x32xbf16, #tpu.memory_space<vmem>>, vector<1x17x32xbf16>,
    %cst = arith.constant 0.000000e+00 : f32
    %8 = vector.broadcast %cst : f32 to vector<256x8xf32>
    %c0_12 = arith.constant 0 : index
    %c0_13 = arith.constant 0 : index
    %c0_14 = arith.constant 0 : index
    %9 = vector.load %arg7[%c0_12, %c0_13, %c0_14] : memref<17x17x32xbf16, #tpu.memory_space<vmem>>, vector<16x16x32xbf16>
    %10 = vector.shape_cast %9 : vector<16x16x32xbf16> to vector<256x32xbf16>
    %c0_15 = arith.constant 0 : index
    %c0_16 = arith.constant 0 : index
    %c0_17 = arith.constant 0 : index
    %11 = vector.load %arg4[%c0_15, %c0_16, %c0_17] : memref<4x32x8xbf16, #tpu.memory_space<vmem>>, vector<1x32x8xbf16>
    %12 = vector.shape_cast %11 : vector<1x32x8xbf16> to vector<32x8xbf16>
    %cst_18 = arith.constant dense<0.000000e+00> : vector<256x8xf32>
    %13 = tpu.matmul %10, %12, %cst_18 {dimension_numbers = #tpu.dot_dimension_numbers<[1], [0], [0], [1], [0, 0, 1, 1], [], []>} : vector<256x32xbf16>, vector<32x8xbf16>, vector<256x8xf32> -> vector<256x8xf32>
    %14 = arith.addf %8, %13 : vector<256x8xf32>
    %c0_19 = arith.constant 0 : index
    %c1 = arith.constant 1 : index
    %c0_20 = arith.constant 0 : index
    %15 = vector.load %arg7[%c0_19, %c1, %c0_20] : memref<17x17x32xbf16, #tpu.memory_space<vmem>>, vector<16x16x32xbf16>
    %16 = vector.shape_cast %15 : vector<16x16x32xbf16> to vector<256x32xbf16>
    %c1_21 = arith.constant 1 : index
    %c0_22 = arith.constant 0 : index
    %c0_23 = arith.constant 0 : index
    %17 = vector.load %arg4[%c1_21, %c0_22, %c0_23] : memref<4x32x8xbf16, #tpu.memory_space<vmem>>, vector<1x32x8xbf16>
    %18 = vector.shape_cast %17 : vector<1x32x8xbf16> to vector<32x8xbf16>
    %cst_24 = arith.constant dense<0.000000e+00> : vector<256x8xf32>
    %19 = tpu.matmul %16, %18, %cst_24 {dimension_numbers = #tpu.dot_dimension_numbers<[1], [0], [0], [1], [0, 0, 1, 1], [], []>} : vector<256x32xbf16>, vector<32x8xbf16>, vector<256x8xf32> -> vector<256x8xf32>
    %20 = arith.addf %14, %19 : vector<256x8xf32>
    %c1_25 = arith.constant 1 : index
    %c0_26 = arith.constant 0 : index
    %c0_27 = arith.constant 0 : index
    %21 = vector.load %arg7[%c1_25, %c0_26, %c0_27] : memref<17x17x32xbf16, #tpu.memory_space<vmem>>, vector<16x16x32xbf16>
    %22 = vector.shape_cast %21 : vector<16x16x32xbf16> to vector<256x32xbf16>
    %c2 = arith.constant 2 : index
    %c0_28 = arith.constant 0 : index
    %c0_29 = arith.constant 0 : index
    %23 = vector.load %arg4[%c2, %c0_28, %c0_29] : memref<4x32x8xbf16, #tpu.memory_space<vmem>>, vector<1x32x8xbf16>
    %24 = vector.shape_cast %23 : vector<1x32x8xbf16> to vector<32x8xbf16>
    %cst_30 = arith.constant dense<0.000000e+00> : vector<256x8xf32>
    %25 = tpu.matmul %22, %24, %cst_30 {dimension_numbers = #tpu.dot_dimension_numbers<[1], [0], [0], [1], [0, 0, 1, 1], [], []>} : vector<256x32xbf16>, vector<32x8xbf16>, vector<256x8xf32> -> vector<256x8xf32>
    %26 = arith.addf %20, %25 : vector<256x8xf32>
    %c1_31 = arith.constant 1 : index
    %c1_32 = arith.constant 1 : index
    %c0_33 = arith.constant 0 : index
    %27 = vector.load %arg7[%c1_31, %c1_32, %c0_33] : memref<17x17x32xbf16, #tpu.memory_space<vmem>>, vector<16x16x32xbf16>
    %28 = vector.shape_cast %27 : vector<16x16x32xbf16> to vector<256x32xbf16>
    %c3 = arith.constant 3 : index
    %c0_34 = arith.constant 0 : index
    %c0_35 = arith.constant 0 : index
    %29 = vector.load %arg4[%c3, %c0_34, %c0_35] : memref<4x32x8xbf16, #tpu.memory_space<vmem>>, vector<1x32x8xbf16>
    %30 = vector.shape_cast %29 : vector<1x32x8xbf16> to vector<32x8xbf16>
    %cst_36 = arith.constant dense<0.000000e+00> : vector<256x8xf32>
    %31 = tpu.matmul %28, %30, %cst_36 {dimension_numbers = #tpu.dot_dimension_numbers<[1], [0], [0], [1], [0, 0, 1, 1], [], []>} : vector<256x32xbf16>, vector<32x8xbf16>, vector<256x8xf32> -> vector<256x8xf32>
    %32 = arith.addf %26, %31 : vector<256x8xf32>
    %c0_37 = arith.constant 0 : index
    %c0_38 = arith.constant 0 : index
    %33 = vector.load %arg5[%c0_37, %c0_38] : memref<1x8xf32, #tpu.memory_space<vmem>>, vector<1x8xf32>
    %34 = vector.broadcast %33 : vector<1x8xf32> to vector<256x8xf32>
    %35 = arith.addf %32, %34 : vector<256x8xf32>
    %cst_39 = arith.constant 2.000000e-01 : f32
    %36 = vector.broadcast %cst_39 : f32 to vector<256x8xf32>
    %37 = arith.mulf %36, %35 : vector<256x8xf32>
    %38 = arith.maximumf %35, %37 : vector<256x8xf32>
    %39 = arith.truncf %38 : vector<256x8xf32> to vector<256x8xbf16>
    %c0_40 = arith.constant 0 : index
    %c0_41 = arith.constant 0 : index
    %c0_42 = arith.constant 0 : index
    %40 = vector.load %arg6[%c0_40, %c0_41, %c0_42] : memref<1x256x8xbf16, #tpu.memory_space<vmem>>, vector<1x256x8xbf16>
    %41 = vector.shape_cast %40 : vector<1x256x8xbf16> to vector<256x8xbf16>
    %42 = vector.shape_cast %39 : vector<256x8xbf16> to vector<1x256x8xbf16>
    tpu.vector_store %arg6[%c0_40, %c0_41, %c0_42], %42 {strides = array<i32>} : memref<1x256x8xbf16, #tpu.memory_space<vmem>>, vector<1x256x8xbf16>,
    return
  }
  func.func @transform_0(%arg0: i32, %arg1: i32) -> (i32, i32, i32, i32) {
    %c0_i32 = arith.constant 0 : i32
    %c0_i32_0 = arith.constant 0 : i32
    %c0_i32_1 = arith.constant 0 : i32
    return %arg0, %arg1, %c0_i32, %c0_i32_0 : i32, i32, i32, i32
  }
  func.func @transform_1(%arg0: i32, %arg1: i32) -> (i32, i32, i32, i32) {
    %c1_i32 = arith.constant 1 : i32
    %0 = arith.addi %arg1, %c1_i32 : i32
    %c16_i32 = arith.constant 16 : i32
    %1 = arith.muli %0, %c16_i32 : i32
    %c0_i32 = arith.constant 0 : i32
    %c0_i32_0 = arith.constant 0 : i32
    %c0_i32_1 = arith.constant 0 : i32
    return %arg0, %1, %c0_i32, %c0_i32_0 : i32, i32, i32, i32
  }
  func.func @transform_2(%arg0: i32, %arg1: i32) -> (i32, i32, i32) {
    %c0_i32 = arith.constant 0 : i32
    %c0_i32_0 = arith.constant 0 : i32
    %c0_i32_1 = arith.constant 0 : i32
    %c0_i32_2 = arith.constant 0 : i32
    return %c0_i32, %c0_i32_0, %c0_i32_1 : i32, i32, i32
  }
  func.func @transform_3(%arg0: i32, %arg1: i32) -> (i32, i32) {
    %c0_i32 = arith.constant 0 : i32
    %c0_i32_0 = arith.constant 0 : i32
    %c0_i32_1 = arith.constant 0 : i32
    return %c0_i32, %c0_i32_0 : i32, i32
  }
  func.func @transform_4(%arg0: i32, %arg1: i32) -> (i32, i32, i32) {
    %c0_i32 = arith.constant 0 : i32
    %c0_i32_0 = arith.constant 0 : i32
    return %arg0, %arg1, %c0_i32 : i32, i32, i32
  }
}

module attributes {stable_mosaic.version = 11 : i64} {
  func.func @_conv4x4s2_kernel(%arg0: i32, %arg1: i32, %arg2: memref<1x8x9x32xbf16, #tpu.memory_space<vmem>>, %arg3: memref<1x1x9x32xbf16, #tpu.memory_space<vmem>>, %arg4: memref<4x32x16xbf16, #tpu.memory_space<vmem>>, %arg5: memref<1x16xf32, #tpu.memory_space<vmem>>, %arg6: memref<1x64x16xbf16, #tpu.memory_space<vmem>>, %arg7: memref<9x9x32xbf16, #tpu.memory_space<vmem>>) attributes {dimension_semantics = [#tpu.dimension_semantics<parallel>, #tpu.dimension_semantics<parallel>], iteration_bounds = array<i64: 2, 1>, scalar_prefetch = 0 : i64, scratch_operands = 1 : i64, tpu.core_type = #tpu.core_type<tc>, window_params = [{transform_indices = @transform_0, window_bounds = array<i64: 1, 8, 9, 32>}, {transform_indices = @transform_1, window_bounds = array<i64: 1, 1, 9, 32>}, {pipeline_mode = #tpu.pipeline_mode<synchronous>, transform_indices = @transform_2, window_bounds = array<i64: 4, 32, 16>}, {pipeline_mode = #tpu.pipeline_mode<synchronous>, transform_indices = @transform_3, window_bounds = array<i64: 1, 16>}, {transform_indices = @transform_4, window_bounds = array<i64: 1, 64, 16>}]} {
    %c0 = arith.constant 0 : index
    %c0_0 = arith.constant 0 : index
    %c0_1 = arith.constant 0 : index
    %c0_2 = arith.constant 0 : index
    %0 = vector.load %arg2[%c0, %c0_0, %c0_1, %c0_2] : memref<1x8x9x32xbf16, #tpu.memory_space<vmem>>, vector<1x8x9x32xbf16>
    %1 = vector.shape_cast %0 : vector<1x8x9x32xbf16> to vector<8x9x32xbf16>
    %c0_3 = arith.constant 0 : index
    %c0_4 = arith.constant 0 : index
    %c0_5 = arith.constant 0 : index
    %2 = vector.load %arg7[%c0_3, %c0_4, %c0_5] : memref<9x9x32xbf16, #tpu.memory_space<vmem>>, vector<8x9x32xbf16>
    tpu.vector_store %arg7[%c0_3, %c0_4, %c0_5], %1 {strides = array<i32>} : memref<9x9x32xbf16, #tpu.memory_space<vmem>>, vector<8x9x32xbf16>,
    %c0_6 = arith.constant 0 : index
    %c0_7 = arith.constant 0 : index
    %c0_8 = arith.constant 0 : index
    %c0_9 = arith.constant 0 : index
    %3 = vector.load %arg3[%c0_6, %c0_7, %c0_8, %c0_9] : memref<1x1x9x32xbf16, #tpu.memory_space<vmem>>, vector<1x1x9x32xbf16>
    %4 = vector.shape_cast %3 : vector<1x1x9x32xbf16> to vector<9x32xbf16>
    %c8 = arith.constant 8 : index
    %c0_10 = arith.constant 0 : index
    %c0_11 = arith.constant 0 : index
    %5 = vector.load %arg7[%c8, %c0_10, %c0_11] : memref<9x9x32xbf16, #tpu.memory_space<vmem>>, vector<1x9x32xbf16>
    %6 = vector.shape_cast %5 : vector<1x9x32xbf16> to vector<9x32xbf16>
    %7 = vector.shape_cast %4 : vector<9x32xbf16> to vector<1x9x32xbf16>
    tpu.vector_store %arg7[%c8, %c0_10, %c0_11], %7 {strides = array<i32>} : memref<9x9x32xbf16, #tpu.memory_space<vmem>>, vector<1x9x32xbf16>,
    %cst = arith.constant 0.000000e+00 : f32
    %8 = vector.broadcast %cst : f32 to vector<64x16xf32>
    %c0_12 = arith.constant 0 : index
    %c0_13 = arith.constant 0 : index
    %c0_14 = arith.constant 0 : index
    %9 = vector.load %arg7[%c0_12, %c0_13, %c0_14] : memref<9x9x32xbf16, #tpu.memory_space<vmem>>, vector<8x8x32xbf16>
    %10 = vector.shape_cast %9 : vector<8x8x32xbf16> to vector<64x32xbf16>
    %c0_15 = arith.constant 0 : index
    %c0_16 = arith.constant 0 : index
    %c0_17 = arith.constant 0 : index
    %11 = vector.load %arg4[%c0_15, %c0_16, %c0_17] : memref<4x32x16xbf16, #tpu.memory_space<vmem>>, vector<1x32x16xbf16>
    %12 = vector.shape_cast %11 : vector<1x32x16xbf16> to vector<32x16xbf16>
    %cst_18 = arith.constant dense<0.000000e+00> : vector<64x16xf32>
    %13 = tpu.matmul %10, %12, %cst_18 {dimension_numbers = #tpu.dot_dimension_numbers<[1], [0], [0], [1], [0, 0, 1, 1], [], []>} : vector<64x32xbf16>, vector<32x16xbf16>, vector<64x16xf32> -> vector<64x16xf32>
    %14 = arith.addf %8, %13 : vector<64x16xf32>
    %c0_19 = arith.constant 0 : index
    %c1 = arith.constant 1 : index
    %c0_20 = arith.constant 0 : index
    %15 = vector.load %arg7[%c0_19, %c1, %c0_20] : memref<9x9x32xbf16, #tpu.memory_space<vmem>>, vector<8x8x32xbf16>
    %16 = vector.shape_cast %15 : vector<8x8x32xbf16> to vector<64x32xbf16>
    %c1_21 = arith.constant 1 : index
    %c0_22 = arith.constant 0 : index
    %c0_23 = arith.constant 0 : index
    %17 = vector.load %arg4[%c1_21, %c0_22, %c0_23] : memref<4x32x16xbf16, #tpu.memory_space<vmem>>, vector<1x32x16xbf16>
    %18 = vector.shape_cast %17 : vector<1x32x16xbf16> to vector<32x16xbf16>
    %cst_24 = arith.constant dense<0.000000e+00> : vector<64x16xf32>
    %19 = tpu.matmul %16, %18, %cst_24 {dimension_numbers = #tpu.dot_dimension_numbers<[1], [0], [0], [1], [0, 0, 1, 1], [], []>} : vector<64x32xbf16>, vector<32x16xbf16>, vector<64x16xf32> -> vector<64x16xf32>
    %20 = arith.addf %14, %19 : vector<64x16xf32>
    %c1_25 = arith.constant 1 : index
    %c0_26 = arith.constant 0 : index
    %c0_27 = arith.constant 0 : index
    %21 = vector.load %arg7[%c1_25, %c0_26, %c0_27] : memref<9x9x32xbf16, #tpu.memory_space<vmem>>, vector<8x8x32xbf16>
    %22 = vector.shape_cast %21 : vector<8x8x32xbf16> to vector<64x32xbf16>
    %c2 = arith.constant 2 : index
    %c0_28 = arith.constant 0 : index
    %c0_29 = arith.constant 0 : index
    %23 = vector.load %arg4[%c2, %c0_28, %c0_29] : memref<4x32x16xbf16, #tpu.memory_space<vmem>>, vector<1x32x16xbf16>
    %24 = vector.shape_cast %23 : vector<1x32x16xbf16> to vector<32x16xbf16>
    %cst_30 = arith.constant dense<0.000000e+00> : vector<64x16xf32>
    %25 = tpu.matmul %22, %24, %cst_30 {dimension_numbers = #tpu.dot_dimension_numbers<[1], [0], [0], [1], [0, 0, 1, 1], [], []>} : vector<64x32xbf16>, vector<32x16xbf16>, vector<64x16xf32> -> vector<64x16xf32>
    %26 = arith.addf %20, %25 : vector<64x16xf32>
    %c1_31 = arith.constant 1 : index
    %c1_32 = arith.constant 1 : index
    %c0_33 = arith.constant 0 : index
    %27 = vector.load %arg7[%c1_31, %c1_32, %c0_33] : memref<9x9x32xbf16, #tpu.memory_space<vmem>>, vector<8x8x32xbf16>
    %28 = vector.shape_cast %27 : vector<8x8x32xbf16> to vector<64x32xbf16>
    %c3 = arith.constant 3 : index
    %c0_34 = arith.constant 0 : index
    %c0_35 = arith.constant 0 : index
    %29 = vector.load %arg4[%c3, %c0_34, %c0_35] : memref<4x32x16xbf16, #tpu.memory_space<vmem>>, vector<1x32x16xbf16>
    %30 = vector.shape_cast %29 : vector<1x32x16xbf16> to vector<32x16xbf16>
    %cst_36 = arith.constant dense<0.000000e+00> : vector<64x16xf32>
    %31 = tpu.matmul %28, %30, %cst_36 {dimension_numbers = #tpu.dot_dimension_numbers<[1], [0], [0], [1], [0, 0, 1, 1], [], []>} : vector<64x32xbf16>, vector<32x16xbf16>, vector<64x16xf32> -> vector<64x16xf32>
    %32 = arith.addf %26, %31 : vector<64x16xf32>
    %c0_37 = arith.constant 0 : index
    %c0_38 = arith.constant 0 : index
    %33 = vector.load %arg5[%c0_37, %c0_38] : memref<1x16xf32, #tpu.memory_space<vmem>>, vector<1x16xf32>
    %34 = vector.broadcast %33 : vector<1x16xf32> to vector<64x16xf32>
    %35 = arith.addf %32, %34 : vector<64x16xf32>
    %cst_39 = arith.constant 2.000000e-01 : f32
    %36 = vector.broadcast %cst_39 : f32 to vector<64x16xf32>
    %37 = arith.mulf %36, %35 : vector<64x16xf32>
    %38 = arith.maximumf %35, %37 : vector<64x16xf32>
    %39 = arith.truncf %38 : vector<64x16xf32> to vector<64x16xbf16>
    %c0_40 = arith.constant 0 : index
    %c0_41 = arith.constant 0 : index
    %c0_42 = arith.constant 0 : index
    %40 = vector.load %arg6[%c0_40, %c0_41, %c0_42] : memref<1x64x16xbf16, #tpu.memory_space<vmem>>, vector<1x64x16xbf16>
    %41 = vector.shape_cast %40 : vector<1x64x16xbf16> to vector<64x16xbf16>
    %42 = vector.shape_cast %39 : vector<64x16xbf16> to vector<1x64x16xbf16>
    tpu.vector_store %arg6[%c0_40, %c0_41, %c0_42], %42 {strides = array<i32>} : memref<1x64x16xbf16, #tpu.memory_space<vmem>>, vector<1x64x16xbf16>,
    return
  }
  func.func @transform_0(%arg0: i32, %arg1: i32) -> (i32, i32, i32, i32) {
    %c0_i32 = arith.constant 0 : i32
    %c0_i32_0 = arith.constant 0 : i32
    %c0_i32_1 = arith.constant 0 : i32
    return %arg0, %arg1, %c0_i32, %c0_i32_0 : i32, i32, i32, i32
  }
  func.func @transform_1(%arg0: i32, %arg1: i32) -> (i32, i32, i32, i32) {
    %c1_i32 = arith.constant 1 : i32
    %0 = arith.addi %arg1, %c1_i32 : i32
    %c8_i32 = arith.constant 8 : i32
    %1 = arith.muli %0, %c8_i32 : i32
    %c0_i32 = arith.constant 0 : i32
    %c0_i32_0 = arith.constant 0 : i32
    %c0_i32_1 = arith.constant 0 : i32
    return %arg0, %1, %c0_i32, %c0_i32_0 : i32, i32, i32, i32
  }
  func.func @transform_2(%arg0: i32, %arg1: i32) -> (i32, i32, i32) {
    %c0_i32 = arith.constant 0 : i32
    %c0_i32_0 = arith.constant 0 : i32
    %c0_i32_1 = arith.constant 0 : i32
    %c0_i32_2 = arith.constant 0 : i32
    return %c0_i32, %c0_i32_0, %c0_i32_1 : i32, i32, i32
  }
  func.func @transform_3(%arg0: i32, %arg1: i32) -> (i32, i32) {
    %c0_i32 = arith.constant 0 : i32
    %c0_i32_0 = arith.constant 0 : i32
    %c0_i32_1 = arith.constant 0 : i32
    return %c0_i32, %c0_i32_0 : i32, i32
  }
  func.func @transform_4(%arg0: i32, %arg1: i32) -> (i32, i32, i32) {
    %c0_i32 = arith.constant 0 : i32
    %c0_i32_0 = arith.constant 0 : i32
    return %arg0, %arg1, %c0_i32 : i32, i32, i32
  }
}

module attributes {stable_mosaic.version = 11 : i64} {
  func.func @_conv4x4s2_kernel(%arg0: i32, %arg1: i32, %arg2: memref<1x4x9x64xbf16, #tpu.memory_space<vmem>>, %arg3: memref<1x1x9x64xbf16, #tpu.memory_space<vmem>>, %arg4: memref<4x64x32xbf16, #tpu.memory_space<vmem>>, %arg5: memref<1x32xf32, #tpu.memory_space<vmem>>, %arg6: memref<1x32x32xbf16, #tpu.memory_space<vmem>>, %arg7: memref<5x9x64xbf16, #tpu.memory_space<vmem>>) attributes {dimension_semantics = [#tpu.dimension_semantics<parallel>, #tpu.dimension_semantics<parallel>], iteration_bounds = array<i64: 2, 1>, scalar_prefetch = 0 : i64, scratch_operands = 1 : i64, tpu.core_type = #tpu.core_type<tc>, window_params = [{transform_indices = @transform_0, window_bounds = array<i64: 1, 4, 9, 64>}, {transform_indices = @transform_1, window_bounds = array<i64: 1, 1, 9, 64>}, {pipeline_mode = #tpu.pipeline_mode<synchronous>, transform_indices = @transform_2, window_bounds = array<i64: 4, 64, 32>}, {pipeline_mode = #tpu.pipeline_mode<synchronous>, transform_indices = @transform_3, window_bounds = array<i64: 1, 32>}, {transform_indices = @transform_4, window_bounds = array<i64: 1, 32, 32>}]} {
    %c0 = arith.constant 0 : index
    %c0_0 = arith.constant 0 : index
    %c0_1 = arith.constant 0 : index
    %c0_2 = arith.constant 0 : index
    %0 = vector.load %arg2[%c0, %c0_0, %c0_1, %c0_2] : memref<1x4x9x64xbf16, #tpu.memory_space<vmem>>, vector<1x4x9x64xbf16>
    %1 = vector.shape_cast %0 : vector<1x4x9x64xbf16> to vector<4x9x64xbf16>
    %c0_3 = arith.constant 0 : index
    %c0_4 = arith.constant 0 : index
    %c0_5 = arith.constant 0 : index
    %2 = vector.load %arg7[%c0_3, %c0_4, %c0_5] : memref<5x9x64xbf16, #tpu.memory_space<vmem>>, vector<4x9x64xbf16>
    tpu.vector_store %arg7[%c0_3, %c0_4, %c0_5], %1 {strides = array<i32>} : memref<5x9x64xbf16, #tpu.memory_space<vmem>>, vector<4x9x64xbf16>,
    %c0_6 = arith.constant 0 : index
    %c0_7 = arith.constant 0 : index
    %c0_8 = arith.constant 0 : index
    %c0_9 = arith.constant 0 : index
    %3 = vector.load %arg3[%c0_6, %c0_7, %c0_8, %c0_9] : memref<1x1x9x64xbf16, #tpu.memory_space<vmem>>, vector<1x1x9x64xbf16>
    %4 = vector.shape_cast %3 : vector<1x1x9x64xbf16> to vector<9x64xbf16>
    %c4 = arith.constant 4 : index
    %c0_10 = arith.constant 0 : index
    %c0_11 = arith.constant 0 : index
    %5 = vector.load %arg7[%c4, %c0_10, %c0_11] : memref<5x9x64xbf16, #tpu.memory_space<vmem>>, vector<1x9x64xbf16>
    %6 = vector.shape_cast %5 : vector<1x9x64xbf16> to vector<9x64xbf16>
    %7 = vector.shape_cast %4 : vector<9x64xbf16> to vector<1x9x64xbf16>
    tpu.vector_store %arg7[%c4, %c0_10, %c0_11], %7 {strides = array<i32>} : memref<5x9x64xbf16, #tpu.memory_space<vmem>>, vector<1x9x64xbf16>,
    %cst = arith.constant 0.000000e+00 : f32
    %8 = vector.broadcast %cst : f32 to vector<32x32xf32>
    %c0_12 = arith.constant 0 : index
    %c0_13 = arith.constant 0 : index
    %c0_14 = arith.constant 0 : index
    %9 = vector.load %arg7[%c0_12, %c0_13, %c0_14] : memref<5x9x64xbf16, #tpu.memory_space<vmem>>, vector<4x8x64xbf16>
    %10 = vector.shape_cast %9 : vector<4x8x64xbf16> to vector<32x64xbf16>
    %c0_15 = arith.constant 0 : index
    %c0_16 = arith.constant 0 : index
    %c0_17 = arith.constant 0 : index
    %11 = vector.load %arg4[%c0_15, %c0_16, %c0_17] : memref<4x64x32xbf16, #tpu.memory_space<vmem>>, vector<1x64x32xbf16>
    %12 = vector.shape_cast %11 : vector<1x64x32xbf16> to vector<64x32xbf16>
    %cst_18 = arith.constant dense<0.000000e+00> : vector<32x32xf32>
    %13 = tpu.matmul %10, %12, %cst_18 {dimension_numbers = #tpu.dot_dimension_numbers<[1], [0], [0], [1], [0, 0, 1, 1], [], []>} : vector<32x64xbf16>, vector<64x32xbf16>, vector<32x32xf32> -> vector<32x32xf32>
    %14 = arith.addf %8, %13 : vector<32x32xf32>
    %c0_19 = arith.constant 0 : index
    %c1 = arith.constant 1 : index
    %c0_20 = arith.constant 0 : index
    %15 = vector.load %arg7[%c0_19, %c1, %c0_20] : memref<5x9x64xbf16, #tpu.memory_space<vmem>>, vector<4x8x64xbf16>
    %16 = vector.shape_cast %15 : vector<4x8x64xbf16> to vector<32x64xbf16>
    %c1_21 = arith.constant 1 : index
    %c0_22 = arith.constant 0 : index
    %c0_23 = arith.constant 0 : index
    %17 = vector.load %arg4[%c1_21, %c0_22, %c0_23] : memref<4x64x32xbf16, #tpu.memory_space<vmem>>, vector<1x64x32xbf16>
    %18 = vector.shape_cast %17 : vector<1x64x32xbf16> to vector<64x32xbf16>
    %cst_24 = arith.constant dense<0.000000e+00> : vector<32x32xf32>
    %19 = tpu.matmul %16, %18, %cst_24 {dimension_numbers = #tpu.dot_dimension_numbers<[1], [0], [0], [1], [0, 0, 1, 1], [], []>} : vector<32x64xbf16>, vector<64x32xbf16>, vector<32x32xf32> -> vector<32x32xf32>
    %20 = arith.addf %14, %19 : vector<32x32xf32>
    %c1_25 = arith.constant 1 : index
    %c0_26 = arith.constant 0 : index
    %c0_27 = arith.constant 0 : index
    %21 = vector.load %arg7[%c1_25, %c0_26, %c0_27] : memref<5x9x64xbf16, #tpu.memory_space<vmem>>, vector<4x8x64xbf16>
    %22 = vector.shape_cast %21 : vector<4x8x64xbf16> to vector<32x64xbf16>
    %c2 = arith.constant 2 : index
    %c0_28 = arith.constant 0 : index
    %c0_29 = arith.constant 0 : index
    %23 = vector.load %arg4[%c2, %c0_28, %c0_29] : memref<4x64x32xbf16, #tpu.memory_space<vmem>>, vector<1x64x32xbf16>
    %24 = vector.shape_cast %23 : vector<1x64x32xbf16> to vector<64x32xbf16>
    %cst_30 = arith.constant dense<0.000000e+00> : vector<32x32xf32>
    %25 = tpu.matmul %22, %24, %cst_30 {dimension_numbers = #tpu.dot_dimension_numbers<[1], [0], [0], [1], [0, 0, 1, 1], [], []>} : vector<32x64xbf16>, vector<64x32xbf16>, vector<32x32xf32> -> vector<32x32xf32>
    %26 = arith.addf %20, %25 : vector<32x32xf32>
    %c1_31 = arith.constant 1 : index
    %c1_32 = arith.constant 1 : index
    %c0_33 = arith.constant 0 : index
    %27 = vector.load %arg7[%c1_31, %c1_32, %c0_33] : memref<5x9x64xbf16, #tpu.memory_space<vmem>>, vector<4x8x64xbf16>
    %28 = vector.shape_cast %27 : vector<4x8x64xbf16> to vector<32x64xbf16>
    %c3 = arith.constant 3 : index
    %c0_34 = arith.constant 0 : index
    %c0_35 = arith.constant 0 : index
    %29 = vector.load %arg4[%c3, %c0_34, %c0_35] : memref<4x64x32xbf16, #tpu.memory_space<vmem>>, vector<1x64x32xbf16>
    %30 = vector.shape_cast %29 : vector<1x64x32xbf16> to vector<64x32xbf16>
    %cst_36 = arith.constant dense<0.000000e+00> : vector<32x32xf32>
    %31 = tpu.matmul %28, %30, %cst_36 {dimension_numbers = #tpu.dot_dimension_numbers<[1], [0], [0], [1], [0, 0, 1, 1], [], []>} : vector<32x64xbf16>, vector<64x32xbf16>, vector<32x32xf32> -> vector<32x32xf32>
    %32 = arith.addf %26, %31 : vector<32x32xf32>
    %c0_37 = arith.constant 0 : index
    %c0_38 = arith.constant 0 : index
    %33 = vector.load %arg5[%c0_37, %c0_38] : memref<1x32xf32, #tpu.memory_space<vmem>>, vector<1x32xf32>
    %34 = vector.broadcast %33 : vector<1x32xf32> to vector<32x32xf32>
    %35 = arith.addf %32, %34 : vector<32x32xf32>
    %cst_39 = arith.constant 2.000000e-01 : f32
    %36 = vector.broadcast %cst_39 : f32 to vector<32x32xf32>
    %37 = arith.mulf %36, %35 : vector<32x32xf32>
    %38 = arith.maximumf %35, %37 : vector<32x32xf32>
    %39 = arith.truncf %38 : vector<32x32xf32> to vector<32x32xbf16>
    %c0_40 = arith.constant 0 : index
    %c0_41 = arith.constant 0 : index
    %c0_42 = arith.constant 0 : index
    %40 = vector.load %arg6[%c0_40, %c0_41, %c0_42] : memref<1x32x32xbf16, #tpu.memory_space<vmem>>, vector<1x32x32xbf16>
    %41 = vector.shape_cast %40 : vector<1x32x32xbf16> to vector<32x32xbf16>
    %42 = vector.shape_cast %39 : vector<32x32xbf16> to vector<1x32x32xbf16>
    tpu.vector_store %arg6[%c0_40, %c0_41, %c0_42], %42 {strides = array<i32>} : memref<1x32x32xbf16, #tpu.memory_space<vmem>>, vector<1x32x32xbf16>,
    return
  }
  func.func @transform_0(%arg0: i32, %arg1: i32) -> (i32, i32, i32, i32) {
    %c0_i32 = arith.constant 0 : i32
    %c0_i32_0 = arith.constant 0 : i32
    %c0_i32_1 = arith.constant 0 : i32
    return %arg0, %arg1, %c0_i32, %c0_i32_0 : i32, i32, i32, i32
  }
  func.func @transform_1(%arg0: i32, %arg1: i32) -> (i32, i32, i32, i32) {
    %c1_i32 = arith.constant 1 : i32
    %0 = arith.addi %arg1, %c1_i32 : i32
    %c4_i32 = arith.constant 4 : i32
    %1 = arith.muli %0, %c4_i32 : i32
    %c0_i32 = arith.constant 0 : i32
    %c0_i32_0 = arith.constant 0 : i32
    %c0_i32_1 = arith.constant 0 : i32
    return %arg0, %1, %c0_i32, %c0_i32_0 : i32, i32, i32, i32
  }
  func.func @transform_2(%arg0: i32, %arg1: i32) -> (i32, i32, i32) {
    %c0_i32 = arith.constant 0 : i32
    %c0_i32_0 = arith.constant 0 : i32
    %c0_i32_1 = arith.constant 0 : i32
    %c0_i32_2 = arith.constant 0 : i32
    return %c0_i32, %c0_i32_0, %c0_i32_1 : i32, i32, i32
  }
  func.func @transform_3(%arg0: i32, %arg1: i32) -> (i32, i32) {
    %c0_i32 = arith.constant 0 : i32
    %c0_i32_0 = arith.constant 0 : i32
    %c0_i32_1 = arith.constant 0 : i32
    return %c0_i32, %c0_i32_0 : i32, i32
  }
  func.func @transform_4(%arg0: i32, %arg1: i32) -> (i32, i32, i32) {
    %c0_i32 = arith.constant 0 : i32
    %c0_i32_0 = arith.constant 0 : i32
    return %arg0, %arg1, %c0_i32 : i32, i32, i32
  }
}

module attributes {stable_mosaic.version = 11 : i64} {
  func.func @_conv4x4s2_kernel(%arg0: i32, %arg1: i32, %arg2: memref<1x2x9x128xbf16, #tpu.memory_space<vmem>>, %arg3: memref<1x1x9x128xbf16, #tpu.memory_space<vmem>>, %arg4: memref<4x128x64xbf16, #tpu.memory_space<vmem>>, %arg5: memref<1x64xf32, #tpu.memory_space<vmem>>, %arg6: memref<1x16x64xbf16, #tpu.memory_space<vmem>>, %arg7: memref<3x9x128xbf16, #tpu.memory_space<vmem>>) attributes {dimension_semantics = [#tpu.dimension_semantics<parallel>, #tpu.dimension_semantics<parallel>], iteration_bounds = array<i64: 2, 1>, scalar_prefetch = 0 : i64, scratch_operands = 1 : i64, tpu.core_type = #tpu.core_type<tc>, window_params = [{transform_indices = @transform_0, window_bounds = array<i64: 1, 2, 9, 128>}, {transform_indices = @transform_1, window_bounds = array<i64: 1, 1, 9, 128>}, {pipeline_mode = #tpu.pipeline_mode<synchronous>, transform_indices = @transform_2, window_bounds = array<i64: 4, 128, 64>}, {pipeline_mode = #tpu.pipeline_mode<synchronous>, transform_indices = @transform_3, window_bounds = array<i64: 1, 64>}, {transform_indices = @transform_4, window_bounds = array<i64: 1, 16, 64>}]} {
    %c0 = arith.constant 0 : index
    %c0_0 = arith.constant 0 : index
    %c0_1 = arith.constant 0 : index
    %c0_2 = arith.constant 0 : index
    %0 = vector.load %arg2[%c0, %c0_0, %c0_1, %c0_2] : memref<1x2x9x128xbf16, #tpu.memory_space<vmem>>, vector<1x2x9x128xbf16>
    %1 = vector.shape_cast %0 : vector<1x2x9x128xbf16> to vector<2x9x128xbf16>
    %c0_3 = arith.constant 0 : index
    %c0_4 = arith.constant 0 : index
    %c0_5 = arith.constant 0 : index
    %2 = vector.load %arg7[%c0_3, %c0_4, %c0_5] : memref<3x9x128xbf16, #tpu.memory_space<vmem>>, vector<2x9x128xbf16>
    tpu.vector_store %arg7[%c0_3, %c0_4, %c0_5], %1 {strides = array<i32>} : memref<3x9x128xbf16, #tpu.memory_space<vmem>>, vector<2x9x128xbf16>,
    %c0_6 = arith.constant 0 : index
    %c0_7 = arith.constant 0 : index
    %c0_8 = arith.constant 0 : index
    %c0_9 = arith.constant 0 : index
    %3 = vector.load %arg3[%c0_6, %c0_7, %c0_8, %c0_9] : memref<1x1x9x128xbf16, #tpu.memory_space<vmem>>, vector<1x1x9x128xbf16>
    %4 = vector.shape_cast %3 : vector<1x1x9x128xbf16> to vector<9x128xbf16>
    %c2 = arith.constant 2 : index
    %c0_10 = arith.constant 0 : index
    %c0_11 = arith.constant 0 : index
    %5 = vector.load %arg7[%c2, %c0_10, %c0_11] : memref<3x9x128xbf16, #tpu.memory_space<vmem>>, vector<1x9x128xbf16>
    %6 = vector.shape_cast %5 : vector<1x9x128xbf16> to vector<9x128xbf16>
    %7 = vector.shape_cast %4 : vector<9x128xbf16> to vector<1x9x128xbf16>
    tpu.vector_store %arg7[%c2, %c0_10, %c0_11], %7 {strides = array<i32>} : memref<3x9x128xbf16, #tpu.memory_space<vmem>>, vector<1x9x128xbf16>,
    %cst = arith.constant 0.000000e+00 : f32
    %8 = vector.broadcast %cst : f32 to vector<16x64xf32>
    %c0_12 = arith.constant 0 : index
    %c0_13 = arith.constant 0 : index
    %c0_14 = arith.constant 0 : index
    %9 = vector.load %arg7[%c0_12, %c0_13, %c0_14] : memref<3x9x128xbf16, #tpu.memory_space<vmem>>, vector<2x8x128xbf16>
    %10 = vector.shape_cast %9 : vector<2x8x128xbf16> to vector<16x128xbf16>
    %c0_15 = arith.constant 0 : index
    %c0_16 = arith.constant 0 : index
    %c0_17 = arith.constant 0 : index
    %11 = vector.load %arg4[%c0_15, %c0_16, %c0_17] : memref<4x128x64xbf16, #tpu.memory_space<vmem>>, vector<1x128x64xbf16>
    %12 = vector.shape_cast %11 : vector<1x128x64xbf16> to vector<128x64xbf16>
    %cst_18 = arith.constant dense<0.000000e+00> : vector<16x64xf32>
    %13 = tpu.matmul %10, %12, %cst_18 {dimension_numbers = #tpu.dot_dimension_numbers<[1], [0], [0], [1], [0, 0, 1, 1], [], []>} : vector<16x128xbf16>, vector<128x64xbf16>, vector<16x64xf32> -> vector<16x64xf32>
    %14 = arith.addf %8, %13 : vector<16x64xf32>
    %c0_19 = arith.constant 0 : index
    %c1 = arith.constant 1 : index
    %c0_20 = arith.constant 0 : index
    %15 = vector.load %arg7[%c0_19, %c1, %c0_20] : memref<3x9x128xbf16, #tpu.memory_space<vmem>>, vector<2x8x128xbf16>
    %16 = vector.shape_cast %15 : vector<2x8x128xbf16> to vector<16x128xbf16>
    %c1_21 = arith.constant 1 : index
    %c0_22 = arith.constant 0 : index
    %c0_23 = arith.constant 0 : index
    %17 = vector.load %arg4[%c1_21, %c0_22, %c0_23] : memref<4x128x64xbf16, #tpu.memory_space<vmem>>, vector<1x128x64xbf16>
    %18 = vector.shape_cast %17 : vector<1x128x64xbf16> to vector<128x64xbf16>
    %cst_24 = arith.constant dense<0.000000e+00> : vector<16x64xf32>
    %19 = tpu.matmul %16, %18, %cst_24 {dimension_numbers = #tpu.dot_dimension_numbers<[1], [0], [0], [1], [0, 0, 1, 1], [], []>} : vector<16x128xbf16>, vector<128x64xbf16>, vector<16x64xf32> -> vector<16x64xf32>
    %20 = arith.addf %14, %19 : vector<16x64xf32>
    %c1_25 = arith.constant 1 : index
    %c0_26 = arith.constant 0 : index
    %c0_27 = arith.constant 0 : index
    %21 = vector.load %arg7[%c1_25, %c0_26, %c0_27] : memref<3x9x128xbf16, #tpu.memory_space<vmem>>, vector<2x8x128xbf16>
    %22 = vector.shape_cast %21 : vector<2x8x128xbf16> to vector<16x128xbf16>
    %c2_28 = arith.constant 2 : index
    %c0_29 = arith.constant 0 : index
    %c0_30 = arith.constant 0 : index
    %23 = vector.load %arg4[%c2_28, %c0_29, %c0_30] : memref<4x128x64xbf16, #tpu.memory_space<vmem>>, vector<1x128x64xbf16>
    %24 = vector.shape_cast %23 : vector<1x128x64xbf16> to vector<128x64xbf16>
    %cst_31 = arith.constant dense<0.000000e+00> : vector<16x64xf32>
    %25 = tpu.matmul %22, %24, %cst_31 {dimension_numbers = #tpu.dot_dimension_numbers<[1], [0], [0], [1], [0, 0, 1, 1], [], []>} : vector<16x128xbf16>, vector<128x64xbf16>, vector<16x64xf32> -> vector<16x64xf32>
    %26 = arith.addf %20, %25 : vector<16x64xf32>
    %c1_32 = arith.constant 1 : index
    %c1_33 = arith.constant 1 : index
    %c0_34 = arith.constant 0 : index
    %27 = vector.load %arg7[%c1_32, %c1_33, %c0_34] : memref<3x9x128xbf16, #tpu.memory_space<vmem>>, vector<2x8x128xbf16>
    %28 = vector.shape_cast %27 : vector<2x8x128xbf16> to vector<16x128xbf16>
    %c3 = arith.constant 3 : index
    %c0_35 = arith.constant 0 : index
    %c0_36 = arith.constant 0 : index
    %29 = vector.load %arg4[%c3, %c0_35, %c0_36] : memref<4x128x64xbf16, #tpu.memory_space<vmem>>, vector<1x128x64xbf16>
    %30 = vector.shape_cast %29 : vector<1x128x64xbf16> to vector<128x64xbf16>
    %cst_37 = arith.constant dense<0.000000e+00> : vector<16x64xf32>
    %31 = tpu.matmul %28, %30, %cst_37 {dimension_numbers = #tpu.dot_dimension_numbers<[1], [0], [0], [1], [0, 0, 1, 1], [], []>} : vector<16x128xbf16>, vector<128x64xbf16>, vector<16x64xf32> -> vector<16x64xf32>
    %32 = arith.addf %26, %31 : vector<16x64xf32>
    %c0_38 = arith.constant 0 : index
    %c0_39 = arith.constant 0 : index
    %33 = vector.load %arg5[%c0_38, %c0_39] : memref<1x64xf32, #tpu.memory_space<vmem>>, vector<1x64xf32>
    %34 = vector.broadcast %33 : vector<1x64xf32> to vector<16x64xf32>
    %35 = arith.addf %32, %34 : vector<16x64xf32>
    %cst_40 = arith.constant 2.000000e-01 : f32
    %36 = vector.broadcast %cst_40 : f32 to vector<16x64xf32>
    %37 = arith.mulf %36, %35 : vector<16x64xf32>
    %38 = arith.maximumf %35, %37 : vector<16x64xf32>
    %39 = arith.truncf %38 : vector<16x64xf32> to vector<16x64xbf16>
    %c0_41 = arith.constant 0 : index
    %c0_42 = arith.constant 0 : index
    %c0_43 = arith.constant 0 : index
    %40 = vector.load %arg6[%c0_41, %c0_42, %c0_43] : memref<1x16x64xbf16, #tpu.memory_space<vmem>>, vector<1x16x64xbf16>
    %41 = vector.shape_cast %40 : vector<1x16x64xbf16> to vector<16x64xbf16>
    %42 = vector.shape_cast %39 : vector<16x64xbf16> to vector<1x16x64xbf16>
    tpu.vector_store %arg6[%c0_41, %c0_42, %c0_43], %42 {strides = array<i32>} : memref<1x16x64xbf16, #tpu.memory_space<vmem>>, vector<1x16x64xbf16>,
    return
  }
  func.func @transform_0(%arg0: i32, %arg1: i32) -> (i32, i32, i32, i32) {
    %c0_i32 = arith.constant 0 : i32
    %c0_i32_0 = arith.constant 0 : i32
    %c0_i32_1 = arith.constant 0 : i32
    return %arg0, %arg1, %c0_i32, %c0_i32_0 : i32, i32, i32, i32
  }
  func.func @transform_1(%arg0: i32, %arg1: i32) -> (i32, i32, i32, i32) {
    %c1_i32 = arith.constant 1 : i32
    %0 = arith.addi %arg1, %c1_i32 : i32
    %c2_i32 = arith.constant 2 : i32
    %1 = arith.muli %0, %c2_i32 : i32
    %c0_i32 = arith.constant 0 : i32
    %c0_i32_0 = arith.constant 0 : i32
    %c0_i32_1 = arith.constant 0 : i32
    return %arg0, %1, %c0_i32, %c0_i32_0 : i32, i32, i32, i32
  }
  func.func @transform_2(%arg0: i32, %arg1: i32) -> (i32, i32, i32) {
    %c0_i32 = arith.constant 0 : i32
    %c0_i32_0 = arith.constant 0 : i32
    %c0_i32_1 = arith.constant 0 : i32
    %c0_i32_2 = arith.constant 0 : i32
    return %c0_i32, %c0_i32_0, %c0_i32_1 : i32, i32, i32
  }
  func.func @transform_3(%arg0: i32, %arg1: i32) -> (i32, i32) {
    %c0_i32 = arith.constant 0 : i32
    %c0_i32_0 = arith.constant 0 : i32
    %c0_i32_1 = arith.constant 0 : i32
    return %c0_i32, %c0_i32_0 : i32, i32
  }
  func.func @transform_4(%arg0: i32, %arg1: i32) -> (i32, i32, i32) {
    %c0_i32 = arith.constant 0 : i32
    %c0_i32_0 = arith.constant 0 : i32
    return %arg0, %arg1, %c0_i32 : i32, i32, i32
  }
}

module attributes {stable_mosaic.version = 11 : i64} {
  func.func @_conv4x4s2_kernel(%arg0: i32, %arg1: i32, %arg2: memref<1x1x9x256xbf16, #tpu.memory_space<vmem>>, %arg3: memref<1x1x9x256xbf16, #tpu.memory_space<vmem>>, %arg4: memref<4x256x128xbf16, #tpu.memory_space<vmem>>, %arg5: memref<1x128xf32, #tpu.memory_space<vmem>>, %arg6: memref<1x8x128xf32, #tpu.memory_space<vmem>>, %arg7: memref<2x9x256xbf16, #tpu.memory_space<vmem>>) attributes {dimension_semantics = [#tpu.dimension_semantics<parallel>, #tpu.dimension_semantics<parallel>], iteration_bounds = array<i64: 2, 1>, scalar_prefetch = 0 : i64, scratch_operands = 1 : i64, tpu.core_type = #tpu.core_type<tc>, window_params = [{transform_indices = @transform_0, window_bounds = array<i64: 1, 1, 9, 256>}, {transform_indices = @transform_1, window_bounds = array<i64: 1, 1, 9, 256>}, {pipeline_mode = #tpu.pipeline_mode<synchronous>, transform_indices = @transform_2, window_bounds = array<i64: 4, 256, 128>}, {pipeline_mode = #tpu.pipeline_mode<synchronous>, transform_indices = @transform_3, window_bounds = array<i64: 1, 128>}, {transform_indices = @transform_4, window_bounds = array<i64: 1, 8, 128>}]} {
    %c0 = arith.constant 0 : index
    %c0_0 = arith.constant 0 : index
    %c0_1 = arith.constant 0 : index
    %c0_2 = arith.constant 0 : index
    %0 = vector.load %arg2[%c0, %c0_0, %c0_1, %c0_2] : memref<1x1x9x256xbf16, #tpu.memory_space<vmem>>, vector<1x1x9x256xbf16>
    %1 = vector.shape_cast %0 : vector<1x1x9x256xbf16> to vector<1x9x256xbf16>
    %c0_3 = arith.constant 0 : index
    %c0_4 = arith.constant 0 : index
    %c0_5 = arith.constant 0 : index
    %2 = vector.load %arg7[%c0_3, %c0_4, %c0_5] : memref<2x9x256xbf16, #tpu.memory_space<vmem>>, vector<1x9x256xbf16>
    tpu.vector_store %arg7[%c0_3, %c0_4, %c0_5], %1 {strides = array<i32>} : memref<2x9x256xbf16, #tpu.memory_space<vmem>>, vector<1x9x256xbf16>,
    %c0_6 = arith.constant 0 : index
    %c0_7 = arith.constant 0 : index
    %c0_8 = arith.constant 0 : index
    %c0_9 = arith.constant 0 : index
    %3 = vector.load %arg3[%c0_6, %c0_7, %c0_8, %c0_9] : memref<1x1x9x256xbf16, #tpu.memory_space<vmem>>, vector<1x1x9x256xbf16>
    %4 = vector.shape_cast %3 : vector<1x1x9x256xbf16> to vector<9x256xbf16>
    %c1 = arith.constant 1 : index
    %c0_10 = arith.constant 0 : index
    %c0_11 = arith.constant 0 : index
    %5 = vector.load %arg7[%c1, %c0_10, %c0_11] : memref<2x9x256xbf16, #tpu.memory_space<vmem>>, vector<1x9x256xbf16>
    %6 = vector.shape_cast %5 : vector<1x9x256xbf16> to vector<9x256xbf16>
    %7 = vector.shape_cast %4 : vector<9x256xbf16> to vector<1x9x256xbf16>
    tpu.vector_store %arg7[%c1, %c0_10, %c0_11], %7 {strides = array<i32>} : memref<2x9x256xbf16, #tpu.memory_space<vmem>>, vector<1x9x256xbf16>,
    %cst = arith.constant 0.000000e+00 : f32
    %8 = vector.broadcast %cst : f32 to vector<8x128xf32>
    %c0_12 = arith.constant 0 : index
    %c0_13 = arith.constant 0 : index
    %c0_14 = arith.constant 0 : index
    %9 = vector.load %arg7[%c0_12, %c0_13, %c0_14] : memref<2x9x256xbf16, #tpu.memory_space<vmem>>, vector<1x8x256xbf16>
    %10 = vector.shape_cast %9 : vector<1x8x256xbf16> to vector<8x256xbf16>
    %c0_15 = arith.constant 0 : index
    %c0_16 = arith.constant 0 : index
    %c0_17 = arith.constant 0 : index
    %11 = vector.load %arg4[%c0_15, %c0_16, %c0_17] : memref<4x256x128xbf16, #tpu.memory_space<vmem>>, vector<1x256x128xbf16>
    %12 = vector.shape_cast %11 : vector<1x256x128xbf16> to vector<256x128xbf16>
    %cst_18 = arith.constant dense<0.000000e+00> : vector<8x128xf32>
    %13 = tpu.matmul %10, %12, %cst_18 {dimension_numbers = #tpu.dot_dimension_numbers<[1], [0], [0], [1], [0, 0, 1, 1], [], []>} : vector<8x256xbf16>, vector<256x128xbf16>, vector<8x128xf32> -> vector<8x128xf32>
    %14 = arith.addf %8, %13 : vector<8x128xf32>
    %c0_19 = arith.constant 0 : index
    %c1_20 = arith.constant 1 : index
    %c0_21 = arith.constant 0 : index
    %15 = vector.load %arg7[%c0_19, %c1_20, %c0_21] : memref<2x9x256xbf16, #tpu.memory_space<vmem>>, vector<1x8x256xbf16>
    %16 = vector.shape_cast %15 : vector<1x8x256xbf16> to vector<8x256xbf16>
    %c1_22 = arith.constant 1 : index
    %c0_23 = arith.constant 0 : index
    %c0_24 = arith.constant 0 : index
    %17 = vector.load %arg4[%c1_22, %c0_23, %c0_24] : memref<4x256x128xbf16, #tpu.memory_space<vmem>>, vector<1x256x128xbf16>
    %18 = vector.shape_cast %17 : vector<1x256x128xbf16> to vector<256x128xbf16>
    %cst_25 = arith.constant dense<0.000000e+00> : vector<8x128xf32>
    %19 = tpu.matmul %16, %18, %cst_25 {dimension_numbers = #tpu.dot_dimension_numbers<[1], [0], [0], [1], [0, 0, 1, 1], [], []>} : vector<8x256xbf16>, vector<256x128xbf16>, vector<8x128xf32> -> vector<8x128xf32>
    %20 = arith.addf %14, %19 : vector<8x128xf32>
    %c1_26 = arith.constant 1 : index
    %c0_27 = arith.constant 0 : index
    %c0_28 = arith.constant 0 : index
    %21 = vector.load %arg7[%c1_26, %c0_27, %c0_28] : memref<2x9x256xbf16, #tpu.memory_space<vmem>>, vector<1x8x256xbf16>
    %22 = vector.shape_cast %21 : vector<1x8x256xbf16> to vector<8x256xbf16>
    %c2 = arith.constant 2 : index
    %c0_29 = arith.constant 0 : index
    %c0_30 = arith.constant 0 : index
    %23 = vector.load %arg4[%c2, %c0_29, %c0_30] : memref<4x256x128xbf16, #tpu.memory_space<vmem>>, vector<1x256x128xbf16>
    %24 = vector.shape_cast %23 : vector<1x256x128xbf16> to vector<256x128xbf16>
    %cst_31 = arith.constant dense<0.000000e+00> : vector<8x128xf32>
    %25 = tpu.matmul %22, %24, %cst_31 {dimension_numbers = #tpu.dot_dimension_numbers<[1], [0], [0], [1], [0, 0, 1, 1], [], []>} : vector<8x256xbf16>, vector<256x128xbf16>, vector<8x128xf32> -> vector<8x128xf32>
    %26 = arith.addf %20, %25 : vector<8x128xf32>
    %c1_32 = arith.constant 1 : index
    %c1_33 = arith.constant 1 : index
    %c0_34 = arith.constant 0 : index
    %27 = vector.load %arg7[%c1_32, %c1_33, %c0_34] : memref<2x9x256xbf16, #tpu.memory_space<vmem>>, vector<1x8x256xbf16>
    %28 = vector.shape_cast %27 : vector<1x8x256xbf16> to vector<8x256xbf16>
    %c3 = arith.constant 3 : index
    %c0_35 = arith.constant 0 : index
    %c0_36 = arith.constant 0 : index
    %29 = vector.load %arg4[%c3, %c0_35, %c0_36] : memref<4x256x128xbf16, #tpu.memory_space<vmem>>, vector<1x256x128xbf16>
    %30 = vector.shape_cast %29 : vector<1x256x128xbf16> to vector<256x128xbf16>
    %cst_37 = arith.constant dense<0.000000e+00> : vector<8x128xf32>
    %31 = tpu.matmul %28, %30, %cst_37 {dimension_numbers = #tpu.dot_dimension_numbers<[1], [0], [0], [1], [0, 0, 1, 1], [], []>} : vector<8x256xbf16>, vector<256x128xbf16>, vector<8x128xf32> -> vector<8x128xf32>
    %32 = arith.addf %26, %31 : vector<8x128xf32>
    %c0_38 = arith.constant 0 : index
    %c0_39 = arith.constant 0 : index
    %33 = vector.load %arg5[%c0_38, %c0_39] : memref<1x128xf32, #tpu.memory_space<vmem>>, vector<1x128xf32>
    %34 = vector.broadcast %33 : vector<1x128xf32> to vector<8x128xf32>
    %35 = arith.addf %32, %34 : vector<8x128xf32>
    %c0_40 = arith.constant 0 : index
    %c0_41 = arith.constant 0 : index
    %c0_42 = arith.constant 0 : index
    %36 = vector.load %arg6[%c0_40, %c0_41, %c0_42] : memref<1x8x128xf32, #tpu.memory_space<vmem>>, vector<1x8x128xf32>
    %37 = vector.shape_cast %36 : vector<1x8x128xf32> to vector<8x128xf32>
    %38 = vector.shape_cast %35 : vector<8x128xf32> to vector<1x8x128xf32>
    tpu.vector_store %arg6[%c0_40, %c0_41, %c0_42], %38 {strides = array<i32>} : memref<1x8x128xf32, #tpu.memory_space<vmem>>, vector<1x8x128xf32>,
    return
  }
  func.func @transform_0(%arg0: i32, %arg1: i32) -> (i32, i32, i32, i32) {
    %c0_i32 = arith.constant 0 : i32
    %c0_i32_0 = arith.constant 0 : i32
    %c0_i32_1 = arith.constant 0 : i32
    return %arg0, %arg1, %c0_i32, %c0_i32_0 : i32, i32, i32, i32
  }
  func.func @transform_1(%arg0: i32, %arg1: i32) -> (i32, i32, i32, i32) {
    %c1_i32 = arith.constant 1 : i32
    %0 = arith.addi %arg1, %c1_i32 : i32
    %c1_i32_0 = arith.constant 1 : i32
    %1 = arith.muli %0, %c1_i32_0 : i32
    %c0_i32 = arith.constant 0 : i32
    %c0_i32_1 = arith.constant 0 : i32
    %c0_i32_2 = arith.constant 0 : i32
    return %arg0, %1, %c0_i32, %c0_i32_1 : i32, i32, i32, i32
  }
  func.func @transform_2(%arg0: i32, %arg1: i32) -> (i32, i32, i32) {
    %c0_i32 = arith.constant 0 : i32
    %c0_i32_0 = arith.constant 0 : i32
    %c0_i32_1 = arith.constant 0 : i32
    %c0_i32_2 = arith.constant 0 : i32
    return %c0_i32, %c0_i32_0, %c0_i32_1 : i32, i32, i32
  }
  func.func @transform_3(%arg0: i32, %arg1: i32) -> (i32, i32) {
    %c0_i32 = arith.constant 0 : i32
    %c0_i32_0 = arith.constant 0 : i32
    %c0_i32_1 = arith.constant 0 : i32
    return %c0_i32, %c0_i32_0 : i32, i32
  }
  func.func @transform_4(%arg0: i32, %arg1: i32) -> (i32, i32, i32) {
    %c0_i32 = arith.constant 0 : i32
    %c0_i32_0 = arith.constant 0 : i32
    return %arg0, %arg1, %c0_i32 : i32, i32, i32
  }
}

</mosaic_0001>

<bundles_post_ra>
// kernel: fc_discriminator_forward.5
= control target key start
LH: loop header
LB: loop body
LE: loop exit
PB: predicated region body
PF: predicated region fallthrough
CT: control target
= control target key end

     0   :  { %s2935_s15 = smov 0   ;;  %s2937_s16 = smov 0   ;;  %s3524_s0 = inlined_call_operand.vmem [shape: bf16[2,17,17,32], index: 0, kind: input, shape index: {}, may-alias: {0,1}]   ;;  %s3525_s1 = inlined_call_operand.vmem [shape: bf16[2,17,17,32], index: 1, kind: input, shape index: {}, may-alias: {0,1}]   ;;  %s3526_s2 = inlined_call_operand.vmem [shape: bf16[4,32,8], index: 2, kind: input, shape index: {}]   ;;  %s3527_s3 = inlined_call_operand.vmem [shape: f32[1,8], index: 3, kind: input, shape index: {}]   ;;  %s3528_s4 = inlined_call_operand.vmem [shape: bf16[2,256,8], index: 4, kind: output, shape index: {}]  }
   0x1   :  { %s2939_s17 = smov 0  }
   0x2 LB: > { %s26_s18 = sadd.s32 1, %s2904_s16  ;;  %p2571_p0 = scmp.ge.s32.totalorder %s2908_s17, 1  ;;  %s2908_s17 = sphi %s2939_s17, %s14_s17   ;;  %s2904_s16 = sphi %s2937_s16, %s3534_s16   ;;  %s2900_s15 = sphi %s2935_s15, %s3533_s15  }
   0x3   : > { %p28_p1 = scmp.ge.s32.totalorder %s26_s18, 2  ;;  %p218_p2 = scmp.lt.s32.totalorder %s2908_s17, 3 }
   0x5   : > { %s3536_s18 = smov (%p28_p1, %s26_s18), 0  ;;  %p219_p3 = pnand %p2571_p0, %p218_p2 }
   0x6   : > { %p275_p4 = scmp.lt.s32.totalorder (!%p219_p3), %s2900_s15, 1 }
   0x7   : > { %222 = sbr.rel (%p219_p3) target bundleno = 432 (0x1b0), region = 36 }
   0xc   : > { %v2854_v0 = vld [vmem:[%s3526_s2 + $0x28] sm:$0xff]  ;;  %v2836_v2 = vld [vmem:[%s3526_s2 + $0x18] sm:$0xff]  ;;  %v2853_v4 = vld [vmem:[%s3526_s2 + $0x20] sm:$0xff]  ;;  %s3538_s15 = smov (!%p275_p4, %s2900_s15), 1  ;;  %vm365_vm0 = vcmask 253952   ;;  %vm362_vm2 = vcmask 257024  }
   0xd   : > { %v2834_v1 = vld [vmem:[%s3526_s2 + $0x8] sm:$0xff]  ;;  %v2856_v3 = vld [vmem:[%s3526_s2 + $0x38] sm:$0xff]  ;;  %1510 = vmatpush.bf16.msra.mxu2 %v2854_v0  ;;  %v2833_v5 = vld [vmem:[%s3526_s2] sm:$0xff]  ;;  %1014 = vmatpush.bf16.msra.mxu0 %v2836_v2  ;;  %vm366_vm1 = vsmask.f32 256  ;;  %s2857_s9 = smul.u32 204, %s3538_s15 }
   0xe   : > { %1243 = vmatpush.bf16.msra.mxu1 %v2834_v1  ;;  %2176 = vmatpush.bf16.msra.mxu3 %v2856_v3  ;;  %v2835_v6 = vld [vmem:[%s3526_s2 + $0x10] sm:$0xff]  ;;  %vm2987_vm3 = vmand %vm365_vm0, %vm366_vm1  ;;  %v368_v9 = vld [vmem:[#allocation2 + $0x8] sm:$0x1]  ;;  %vm959_vm4 = vcmask 261120   ;;  %vm507_vm5 = vsmask.f32 3328 }
   0xf   : > { %v2855_v7 = vld [vmem:[%s3526_s2 + $0x30] sm:$0xff]  ;;  %s2985_s12 = scalar_lea.vmem %s3524_s0, %s2857_s9  ;;  %vm508_vm6 = vsmask.f32 7440  ;;  %v378_v21 = vld [vmem:[#allocation2 + $0x20] sm:$0x1]  ;;  %s2816_s19 = sshll.u32 %s3538_s15, 7 }
  0x10   : > { %v373_v10 = vld [vmem:[#allocation2 + $0x14] sm:$0x1]  ;;  %v317_v11 = vld [vmem:[%s2985_s12 + $0xc] sm:$0xf]  ;;  %v318_v12 = vld [vmem:[%s2985_s12 + $0x10] sm:$0xf]  ;;  %s3244_s22 = scalar_lea.vmem %s3528_s4, %s2816_s19 }
  0x11   : > { %1511 = vmatpush.bf16.msra.mxu2 %v2853_v4  ;;  %v314_v13 = vld [vmem:[%s2985_s12] sm:$0xf]  ;;  %1015 = vmatpush.bf16.msra.mxu0 %v2835_v6  ;;  %371 = vst.msk [vmem:[#allocation2 + $0xc] sm:$0xf] %vm362_vm2, %v317_v11  ;;  %v315_v14 = vld [vmem:[%s2985_s12 + $0x4] sm:$0xf]  ;;  %vm3026_vm7 = vmor %vm507_vm5, %vm508_vm6 }
  0x12   : > { %1244 = vmatpush.bf16.msra.mxu1 %v2833_v5  ;;  %2177 = vmatpush.bf16.msra.mxu3 %v2855_v7  ;;  %v316_v15 = vld [vmem:[%s2985_s12 + $0x8] sm:$0x1]  ;;  %372 = vst.msk [vmem:[#allocation2 + $0x10] sm:$0xf] %vm362_vm2, %v318_v12  ;;  %v319_v17 = vld [vmem:[%s2985_s12 + $0x14] sm:$0x1] }
  0x13   : > { %v369_v16 = vsel %vm2987_vm3, %v316_v15, %v368_v9  ;;  %363 = vst.msk [vmem:[#allocation2] sm:$0xf] %vm362_vm2, %v314_v13  ;;  %v374_v18 = vsel %vm2987_vm3, %v319_v17, %v373_v10  ;;  %v320_v19 = vld [vmem:[%s2985_s12 + $0x18] sm:$0xf]  ;;  %v321_v20 = vld [vmem:[%s2985_s12 + $0x1c] sm:$0xf] }
  0x14   : > { %364 = vst.msk [vmem:[#allocation2 + $0x4] sm:$0xf] %vm362_vm2, %v315_v14  ;;  %v322_v22 = vld [vmem:[%s2985_s12 + $0x20] sm:$0x1]  ;;  %v3010_v23 = vld [vmem:[%s2985_s12 + $0x2c] sm:$0x1] }
  0x15   : > { %370 = vst [vmem:[#allocation2 + $0x8] sm:$0x1] %v369_v16  ;;  %v3013_v25 = vld [vmem:[#allocation2 + $0x2c] sm:$0x1]  ;;  %v379_v34 = vsel %vm2987_vm3, %v322_v22, %v378_v21  ;;  %v323_v51 = vld [vmem:[%s2985_s12 + $0x24] sm:$0xf] }
  0x16   : > { %375 = vst [vmem:[#allocation2 + $0x14] sm:$0x1] %v374_v18  ;;  %v384_v40 = vsel %vm2987_vm3, %v3010_v23, %v3013_v25  ;;  %v324_v62 = vld [vmem:[%s2985_s12 + $0x28] sm:$0xf]  ;;  %v326_v23 = vld [vmem:[%s2985_s12 + $0x30] sm:$0xf] }
  0x17   : > { %376 = vst.msk [vmem:[#allocation2 + $0x18] sm:$0xf] %vm362_vm2, %v320_v19  ;;  %vm2423_vm8 = vcmask 60416   ;;  %s2815_s23 = sadd.s32 192, %s2857_s9 }
  0x18   : > { %v1625_v24 = vld [vmem:[#allocation2 + $0xc] sm:$0xf]  ;;  %377 = vst.msk [vmem:[#allocation2 + $0x1c] sm:$0xf] %vm362_vm2, %v321_v20  ;;  %s300_s25 = scalar_lea.vmem %s3525_s1, %s2815_s23 }
  0x19   : > { %v2837_v26 = vld [vmem:[#allocation2 + $0xc] sm:$0xff]  ;;  %v1674_v28 = vshrl.u32 %v1625_v24, 16  ;;  %v1677_v29 = vshll.u32 %v1625_v24, 16  ;;  %380 = vst [vmem:[#allocation2 + $0x20] sm:$0x1] %v379_v34 }
  0x1a   : > { %v1626_v27 = vld [vmem:[#allocation2 + $0x10] sm:$0xf]  ;;  %v455_v30 = vld [vmem:[#allocation2] sm:$0xf]  ;;  %v457_v33 = vld [vmem:[#allocation2 + $0xc] sm:$0xf]  ;;  %2768 = vmatmul.msk.bf16.vlgmr.msra.gmra.mxu2 %vm959_vm4, %v2837_v26 }
  0x1b   : > { %v1683_v31 = vshll.u32 %v1626_v27, 16  ;;  %v1687_v32 = vshrl.u32 %v1626_v27, 16  ;;  %v2817_v35 = vld [vmem:[#allocation2] sm:$0xff]  ;;  %v511_v37 = vshrl.u32 %v455_v30, 16  ;;  %v514_v38 = vshll.u32 %v455_v30, 16 }
  0x1c   : > { %v456_v36 = vld [vmem:[#allocation2 + $0x4] sm:$0xf]  ;;  %v1676_v39 = vrot.slane %v1674_v28, 4  ;;  %v491_v41 = vld [vmem:[#allocation2 + $0x8] sm:$0x1]  ;;  %v1679_v44 = vrot.slane %v1677_v29, 5  ;;  %2676 = vmatmul.msk.bf16.vlgmr.msra.gmra.mxu1 %vm959_vm4, %v2817_v35 }
  0x1d   : > { %v520_v42 = vshll.u32 %v456_v36, 16  ;;  %v524_v43 = vshrl.u32 %v456_v36, 16  ;;  %v1685_v45 = vrot.slane %v1683_v31, 5  ;;  %v513_v46 = vrot.slane %v511_v37, 4  ;;  %v1627_v49 = vld [vmem:[#allocation2 + $0x14] sm:$0x1] }
  0x1e   : > { %v516_v47 = vrot.slane %v514_v38, 5  ;;  %v530_v48 = vshll.u32 %v491_v41, 16  ;;  %v1689_v50 = vrot.slane %v1687_v32, 4  ;;  %v1680_v54 = vor.u32 %v1679_v44, %v1676_v39  ;;  %v458_v56 = vld [vmem:[#allocation2 + $0x10] sm:$0xf] }
  0x1f   : > { %v522_v52 = vrot.slane %v520_v42, 5  ;;  %v526_v53 = vrot.slane %v524_v43, 4  ;;  %v1693_v55 = vshll.u32 %v1627_v49, 16  ;;  %v535_v61 = vshrl.u32 %v457_v33, 16  ;;  %v492_v2 = vld [vmem:[#allocation2 + $0x14] sm:$0x1] }
  0x20   : > { %v517_v58 = vor.u32 %v516_v47, %v513_v46  ;;  %v532_v59 = vrot.slane %v530_v48, 5  ;;  %v1690_v60 = vor.u32 %v1689_v50, %v1685_v45  ;;  %v1681_v0 = vrot.slane %v1680_v54, 4  ;;  %v1628_v9 = vld [vmem:[#allocation2 + $0x18] sm:$0xf]  ;;  %381 = vst.msk [vmem:[#allocation2 + $0x24] sm:$0xf] %vm362_vm2, %v323_v51 }
  0x21   : > { %v527_v63 = vor.u32 %v526_v53, %v522_v52  ;;  %v1695_v1 = vrot.slane %v1693_v55, 5  ;;  %v538_v3 = vshll.u32 %v457_v33, 16  ;;  %v537_v6 = vrot.slane %v535_v61, 4  ;;  %v1629_v18 = vld [vmem:[#allocation2 + $0x1c] sm:$0xf]  ;;  %v2818_v44 = vld [vmem:[#allocation2 + $0xc] sm:$0xff] }
  0x22   : > { %v518_v4 = vrot.slane %v517_v58, 4  ;;  %v1691_v5 = vrot.slane %v1690_v60, 4  ;;  %v544_v7 = vshll.u32 %v458_v56, 16  ;;  %v1686_v11 = vsel %vm3026_vm7, %v1681_v0, %v1685_v45  ;;  %382 = vst.msk [vmem:[#allocation2 + $0x28] sm:$0xf] %vm362_vm2, %v324_v62  ;;  %v2838_v25 = vld [vmem:[#allocation2 + $0x18] sm:$0xff] }
  0x23   : > { %v528_v10 = vrot.slane %v527_v63, 4  ;;  %v540_v12 = vrot.slane %v538_v3, 5  ;;  %v548_v13 = vshrl.u32 %v458_v56, 16  ;;  %v2062_v16 = vunpack.c.l.b16 %v1686_v11  ;;  %385 = vst [vmem:[#allocation2 + $0x2c] sm:$0x1] %v384_v40 }
  0x24   : > { %v523_v14 = vsel %vm3026_vm7, %v518_v4, %v522_v52  ;;  %v1696_v15 = vsel %vm3026_vm7, %v1691_v5, %v1695_v1  ;;  %v546_v17 = vrot.slane %v544_v7, 5  ;;  %v554_v27 = vshll.u32 %v492_v2, 16  ;;  %v327_v29 = vld [vmem:[%s2985_s12 + $0x34] sm:$0xf]  ;;  %v1630_v31 = vld [vmem:[#allocation2 + $0x20] sm:$0x1] }
  0x25   : > { %v533_v19 = vsel %vm3026_vm7, %v528_v10, %v532_v59  ;;  %v899_v20 = vunpack.c.l.b16 %v523_v14  ;;  %v2063_v21 = vunpack.c.l.b16 %v1696_v15  ;;  %v541_v22 = vor.u32 %v540_v12, %v537_v6  ;;  %v459_v34 = vld [vmem:[#allocation2 + $0x18] sm:$0xf]  ;;  %v460_v39 = vld [vmem:[#allocation2 + $0x1c] sm:$0xf]  ;;  %386 = vst.msk [vmem:[#allocation2 + $0x30] sm:$0xf] %vm362_vm2, %v326_v23 }
  0x26   : > { %v900_v24 = vunpack.c.l.b16 %v533_v19  ;;  %v550_v26 = vrot.slane %v548_v13, 4  ;;  %v1698_v28 = vshrl.u32 %v1628_v9, 16  ;;  %v1701_v32 = vshll.u32 %v1628_v9, 16  ;;  %387 = vst.msk [vmem:[#allocation2 + $0x34] sm:$0xf] %vm362_vm2, %v327_v29 }
  0x27   : > { %v2094_v30 = vpack.c.b16 %v2063_v21, %v2062_v16  ;;  %v1707_v33 = vshll.u32 %v1629_v18, 16  ;;  %v542_v36 = vrot.slane %v541_v22, 4  ;;  %v556_v40 = vrot.slane %v554_v27, 5  ;;  %v1631_v49 = vld [vmem:[#allocation2 + $0x24] sm:$0xf] }
  0x28   : > { %v931_v35 = vpack.c.b16 %v900_v24, %v899_v20  ;;  %v551_v37 = vor.u32 %v550_v26, %v546_v17  ;;  %v1700_v38 = vrot.slane %v1698_v28, 4  ;;  %v1703_v41 = vrot.slane %v1701_v32, 5  ;;  %v493_v11 = vld [vmem:[#allocation2 + $0x20] sm:$0x1]  ;;  %v388_v19 = vld [vmem:[#allocation2 + $0x38] sm:$0x1] }
  0x29   : > { %2796 = vmatmul.msk.bf16.vlgmr.msra.gmra.mxu3 %vm959_vm4, %v2094_v30  ;;  %v1709_v42 = vrot.slane %v1707_v33, 5  ;;  %v1711_v43 = vshrl.u32 %v1629_v18, 16  ;;  %v1717_v46 = vshll.u32 %v1630_v31, 16  ;;  %v547_v50 = vsel %vm3026_vm7, %v542_v36, %v546_v17  ;;  %v1632_v60 = vld [vmem:[#allocation2 + $0x28] sm:$0xf]  ;;  %v2819_v33 = vld [vmem:[#allocation2 + $0x18] sm:$0xff] }
  0x2a   : > { %2588 = vmatmul.msk.bf16.vlgmr.msra.gmra.mxu0 %vm959_vm4, %v931_v35  ;;  %v552_v45 = vrot.slane %v551_v37, 4  ;;  %v1704_v47 = vor.u32 %v1703_v41, %v1700_v38  ;;  %2769 = vmatmul.msk.bf16.gmra.mxu2 %vm959_vm4, %v2838_v25  ;;  %v559_v51 = vshrl.u32 %v459_v34, 16  ;;  %v562_v52 = vshll.u32 %v459_v34, 16  ;;  %v1633_v13 = vld [vmem:[#allocation2 + $0x2c] sm:$0x1]  ;;  %v2839_v32 = vld [vmem:[#allocation2 + $0x24] sm:$0xff] }
  0x2b   : > { %v1713_v48 = vrot.slane %v1711_v43, 4  ;;  %v568_v53 = vshll.u32 %v460_v39, 16  ;;  %v1719_v58 = vrot.slane %v1717_v46, 5  ;;  %v572_v59 = vshrl.u32 %v460_v39, 16  ;;  %v328_v18 = vld [vmem:[%s2985_s12 + $0x38] sm:$0x1] }
  0x2c   : > { %v557_v54 = vsel %vm3026_vm7, %v552_v45, %v556_v40  ;;  %v1705_v55 = vrot.slane %v1704_v47, 4  ;;  %2677 = vmatmul.msk.bf16.gmra.mxu1 %vm959_vm4, %v2818_v44  ;;  %v1722_v61 = vshrl.u32 %v1631_v49, 16  ;;  %v901_v62 = vunpack.c.l.b16 %v547_v50  ;;  %v329_v21 = vld [vmem:[%s2985_s12 + $0x3c] sm:$0xf]  ;;  %v330_v22 = vld [vmem:[%s2985_s12 + $0x40] sm:$0xf] }
  0x2d   : > { %v1714_v56 = vor.u32 %v1713_v48, %v1709_v42  ;;  %v902_v1 = vunpack.c.l.b16 %v557_v54  ;;  %v561_v2 = vrot.slane %v559_v51, 4  ;;  %v564_v3 = vrot.slane %v562_v52, 5  ;;  %391 = vst.msk [vmem:[#allocation2 + $0x3c] sm:$0xf] %vm362_vm2, %v329_v21  ;;  %v1634_v34 = vld [vmem:[#allocation2 + $0x30] sm:$0xf] }
  0x2e   : > { %v1710_v63 = vsel %vm3026_vm7, %v1705_v55, %v1709_v42  ;;  %v3055_v4 = vrot.slane %v568_v53, 5  ;;  %v1725_v7 = vshll.u32 %v1631_v49, 16  ;;  %v1731_v9 = vshll.u32 %v1632_v60, 16  ;;  %392 = vst.msk [vmem:[#allocation2 + $0x40] sm:$0xf] %vm362_vm2, %v330_v22  ;;  %v2840_v22 = vld [vmem:[#allocation2 + $0x30] sm:$0xff] }
  0x2f   : > { %v1715_v0 = vrot.slane %v1714_v56, 4  ;;  %v2064_v6 = vunpack.c.l.b16 %v1710_v63  ;;  %v574_v12 = vrot.slane %v572_v59, 4  ;;  %v1724_v14 = vrot.slane %v1722_v61, 4  ;;  %v331_v35 = vld [vmem:[%s2985_s12 + $0x44] sm:$0x1] }
  0x30   : > { %v1735_v15 = vshrl.u32 %v1632_v60, 16  ;;  %v1727_v16 = vrot.slane %v1725_v7, 5  ;;  %v1733_v17 = vrot.slane %v1731_v9, 5  ;;  %v932_v23 = vpack.c.b16 %v902_v1, %v901_v62  ;;  %v393_v36 = vld [vmem:[#allocation2 + $0x44] sm:$0x1] }
  0x31   : > { %v1720_v5 = vsel %vm3026_vm7, %v1715_v0, %v1719_v58  ;;  %v565_v25 = vor.u32 %v564_v3, %v561_v2  ;;  %v1741_v28 = vshll.u32 %v1633_v13, 16  ;;  %v575_v29 = vor.u32 %v574_v12, %v3055_v4  ;;  %v1635_v41 = vld [vmem:[#allocation2 + $0x34] sm:$0xf]  ;;  %v461_v44 = vld [vmem:[#allocation2 + $0x24] sm:$0xf] }
  0x32   : > { %v2065_v10 = vunpack.c.l.b16 %v1720_v5  ;;  %v1737_v20 = vrot.slane %v1735_v15, 4  ;;  %v1728_v26 = vor.u32 %v1727_v16, %v1724_v14  ;;  %v578_v30 = vshll.u32 %v493_v11, 16  ;;  %v462_v45 = vld [vmem:[#allocation2 + $0x28] sm:$0xf]  ;;  %v494_v5 = vld [vmem:[#allocation2 + $0x2c] sm:$0x1] }
  0x33   : > { %v389_v31 = vsel %vm2987_vm3, %v328_v18, %v388_v19  ;;  %v566_v37 = vrot.slane %v565_v25, 4  ;;  %v1743_v40 = vrot.slane %v1741_v28, 5  ;;  %v576_v42 = vrot.slane %v575_v29, 4  ;;  %v332_v12 = vld [vmem:[%s2985_s12 + $0x48] sm:$0xf] }
  0x34   : > { %v2095_v24 = vpack.c.b16 %v2065_v10, %v2064_v6  ;;  %v1738_v27 = vor.u32 %v1737_v20, %v1733_v17  ;;  %390 = vst [vmem:[#allocation2 + $0x38] sm:$0x1] %v389_v31  ;;  %v1729_v38 = vrot.slane %v1728_v26, 4  ;;  %v580_v43 = vrot.slane %v578_v30, 5  ;;  %v333_v16 = vld [vmem:[%s2985_s12 + $0x4c] sm:$0xf] }
  0x35   : > { %v1746_v46 = vshrl.u32 %v1634_v34, 16  ;;  %v1749_v47 = vshll.u32 %v1634_v34, 16  ;;  %v394_v48 = vsel %vm2987_vm3, %v331_v35, %v393_v36  ;;  %v1755_v49 = vshll.u32 %v1635_v41, 16  ;;  %396 = vst.msk [vmem:[#allocation2 + $0x48] sm:$0xf] %vm362_vm2, %v332_v12  ;;  %v2820_v31 = vld [vmem:[#allocation2 + $0x24] sm:$0xff] }
  0x36   : > { %v1739_v39 = vrot.slane %v1738_v27, 4  ;;  %v1759_v50 = vshrl.u32 %v1635_v41, 16  ;;  %v571_v51 = vsel %vm3026_vm7, %v566_v37, %v3055_v4  ;;  %v1734_v52 = vsel %vm3026_vm7, %v1729_v38, %v1733_v17  ;;  %395 = vst [vmem:[#allocation2 + $0x44] sm:$0x1] %v394_v48  ;;  %v334_v21 = vld [vmem:[%s2985_s12 + $0x50] sm:$0x1] }
  0x37   : > { %v583_v54 = vshrl.u32 %v461_v44, 16  ;;  %v581_v55 = vsel %vm3026_vm7, %v576_v42, %v580_v43  ;;  %v586_v56 = vshll.u32 %v461_v44, 16  ;;  %v592_v58 = vshll.u32 %v462_v45, 16  ;;  %397 = vst.msk [vmem:[#allocation2 + $0x4c] sm:$0xf] %vm362_vm2, %v333_v16 }
  0x38   : > { %v1744_v53 = vsel %vm3026_vm7, %v1739_v39, %v1743_v40  ;;  %v596_v59 = vshrl.u32 %v462_v45, 16  ;;  %v1748_v60 = vrot.slane %v1746_v46, 4  ;;  %v1751_v61 = vrot.slane %v1749_v47, 5  ;;  %v398_v25 = vld [vmem:[#allocation2 + $0x50] sm:$0x1] }
  0x39   : > { %2797 = vmatmul.msk.bf16.gmra.mxu3 %vm959_vm4, %v2095_v24  ;;  %v2066_v62 = vunpack.c.l.b16 %v1734_v52  ;;  %v2067_v63 = vunpack.c.l.b16 %v1744_v53  ;;  %v1757_v0 = vrot.slane %v1755_v49, 5  ;;  %v1761_v1 = vrot.slane %v1759_v50, 4  ;;  %v463_v24 = vld [vmem:[#allocation2 + $0x30] sm:$0xf]  ;;  %v464_v28 = vld [vmem:[#allocation2 + $0x34] sm:$0xf] }
  0x3a   : > { %2589 = vmatmul.msk.bf16.gmra.mxu0 %vm959_vm4, %v932_v23  ;;  %2770 = vmatmul.msk.bf16.gmra.mxu2 %vm959_vm4, %v2839_v32  ;;  %v903_v2 = vunpack.c.l.b16 %v571_v51  ;;  %v904_v3 = vunpack.c.l.b16 %v581_v55  ;;  %v585_v6 = vrot.slane %v583_v54, 4  ;;  %v588_v7 = vrot.slane %v586_v56, 5  ;;  %v1637_v29 = vld [vmem:[#allocation2 + $0x3c] sm:$0xf] }
  0x3b   : > { %v1636_v4 = vld [vmem:[#allocation2 + $0x38] sm:$0x1]  ;;  %v594_v9 = vrot.slane %v592_v58, 5  ;;  %v598_v10 = vrot.slane %v596_v59, 4  ;;  %v1752_v11 = vor.u32 %v1751_v61, %v1748_v60  ;;  %v2096_v13 = vpack.c.b16 %v2067_v63, %v2066_v62  ;;  %v403_v12 = vld [vmem:[#allocation2 + $0x5c] sm:$0x1] }
  0x3c   : > { %2678 = vmatmul.msk.bf16.gmra.mxu1 %vm959_vm4, %v2819_v33  ;;  %v1762_v14 = vor.u32 %v1761_v1, %v1757_v0  ;;  %v1765_v15 = vshll.u32 %v1636_v4, 16  ;;  %v933_v17 = vpack.c.b16 %v904_v3, %v903_v2  ;;  %v602_v18 = vshll.u32 %v494_v5, 16  ;;  %v1638_v33 = vld [vmem:[#allocation2 + $0x40] sm:$0xf]  ;;  %v495_v54 = vld [vmem:[#allocation2 + $0x38] sm:$0x1] }
  0x3d   : > { %v589_v19 = vor.u32 %v588_v7, %v585_v6  ;;  %v599_v20 = vor.u32 %v598_v10, %v594_v9  ;;  %v1753_v23 = vrot.slane %v1752_v11, 4  ;;  %v399_v30 = vsel %vm2987_vm3, %v334_v21, %v398_v25  ;;  %v1639_v62 = vld [vmem:[#allocation2 + $0x44] sm:$0x1]  ;;  %v335_v2 = vld [vmem:[%s2985_s12 + $0x54] sm:$0xf]  ;;  %v2841_v10 = vld [vmem:[#allocation2 + $0x3c] sm:$0xff] }
  0x3e   : > { %v1763_v26 = vrot.slane %v1762_v14, 4  ;;  %v1767_v27 = vrot.slane %v1765_v15, 5  ;;  %v604_v32 = vrot.slane %v602_v18, 5  ;;  %400 = vst [vmem:[#allocation2 + $0x50] sm:$0x1] %v399_v30  ;;  %v607_v36 = vshrl.u32 %v463_v24, 16 }
  0x3f   : > { %v590_v34 = vrot.slane %v589_v19, 4  ;;  %v600_v35 = vrot.slane %v599_v20, 4  ;;  %v610_v37 = vshll.u32 %v463_v24, 16  ;;  %v1758_v38 = vsel %vm3026_vm7, %v1753_v23, %v1757_v0  ;;  %v336_v7 = vld [vmem:[%s2985_s12 + $0x58] sm:$0xf] }
  0x40   : > { %v616_v39 = vshll.u32 %v464_v28, 16  ;;  %v620_v40 = vshrl.u32 %v464_v28, 16  ;;  %v1770_v41 = vshrl.u32 %v1637_v29, 16  ;;  %v1768_v42 = vsel %vm3026_vm7, %v1763_v26, %v1767_v27  ;;  %401 = vst.msk [vmem:[#allocation2 + $0x54] sm:$0xf] %vm362_vm2, %v335_v2 }
  0x41   : > { %v1773_v43 = vshll.u32 %v1637_v29, 16  ;;  %v1779_v44 = vshll.u32 %v1638_v33, 16  ;;  %v1783_v45 = vshrl.u32 %v1638_v33, 16  ;;  %v595_v46 = vsel %vm3026_vm7, %v590_v34, %v594_v9  ;;  %402 = vst.msk [vmem:[#allocation2 + $0x58] sm:$0xf] %vm362_vm2, %v336_v7  ;;  %v2822_v7 = vld [vmem:[#allocation2 + $0x3c] sm:$0xff] }
  0x42   : > { %v605_v47 = vsel %vm3026_vm7, %v600_v35, %v604_v32  ;;  %v609_v48 = vrot.slane %v607_v36, 4  ;;  %v612_v49 = vrot.slane %v610_v37, 5  ;;  %v2068_v50 = vunpack.c.l.b16 %v1758_v38  ;;  %v337_v11 = vld [vmem:[%s2985_s12 + $0x5c] sm:$0x1]  ;;  %v1640_v15 = vld [vmem:[#allocation2 + $0x48] sm:$0xf] }
  0x43   : > { %v2069_v51 = vunpack.c.l.b16 %v1768_v42  ;;  %v618_v52 = vrot.slane %v616_v39, 5  ;;  %v622_v53 = vrot.slane %v620_v40, 4  ;;  %v1772_v55 = vrot.slane %v1770_v41, 4  ;;  %v1641_v16 = vld [vmem:[#allocation2 + $0x4c] sm:$0xf] }
  0x44   : > { %v1775_v56 = vrot.slane %v1773_v43, 5  ;;  %v1781_v58 = vrot.slane %v1779_v44, 5  ;;  %v1785_v59 = vrot.slane %v1783_v45, 4  ;;  %v905_v60 = vunpack.c.l.b16 %v595_v46  ;;  %v465_v23 = vld [vmem:[#allocation2 + $0x3c] sm:$0xf] }
  0x45   : > { %v906_v61 = vunpack.c.l.b16 %v605_v47  ;;  %v613_v63 = vor.u32 %v612_v49, %v609_v48  ;;  %v623_v0 = vor.u32 %v622_v53, %v618_v52  ;;  %v626_v1 = vshll.u32 %v495_v54, 16  ;;  %v466_v24 = vld [vmem:[#allocation2 + $0x40] sm:$0xf]  ;;  %v1642_v37 = vld [vmem:[#allocation2 + $0x50] sm:$0x1] }
  0x46   : > { %v2097_v3 = vpack.c.b16 %v2069_v51, %v2068_v50  ;;  %v1776_v4 = vor.u32 %v1775_v56, %v1772_v55  ;;  %v1786_v5 = vor.u32 %v1785_v59, %v1781_v58  ;;  %v1789_v6 = vshll.u32 %v1639_v62, 16  ;;  %v496_v49 = vld [vmem:[#allocation2 + $0x44] sm:$0x1]  ;;  %v338_v54 = vld [vmem:[%s2985_s12 + $0x60] sm:$0xf] }
  0x47   : > { %v934_v9 = vpack.c.b16 %v906_v61, %v905_v60  ;;  %v628_v14 = vrot.slane %v626_v1, 5  ;;  %v624_v18 = vrot.slane %v623_v0, 4  ;;  %v1794_v25 = vshrl.u32 %v1640_v15, 16  ;;  %v339_v55 = vld [vmem:[%s2985_s12 + $0x64] sm:$0xf] }
  0x48   : > { %v1777_v19 = vrot.slane %v1776_v4, 4  ;;  %v1787_v20 = vrot.slane %v1786_v5, 4  ;;  %v1791_v21 = vrot.slane %v1789_v6, 5  ;;  %v1797_v26 = vshll.u32 %v1640_v15, 16  ;;  %406 = vst.msk [vmem:[#allocation2 + $0x60] sm:$0xf] %vm362_vm2, %v338_v54 }
  0x49   : > { %2798 = vmatmul.msk.bf16.gmra.mxu3 %vm959_vm4, %v2096_v13  ;;  %v614_v13 = vrot.slane %v613_v63, 4  ;;  %v1803_v27 = vshll.u32 %v1641_v16, 16  ;;  %v1807_v28 = vshrl.u32 %v1641_v16, 16  ;;  %v629_v30 = vsel %vm3026_vm7, %v624_v18, %v628_v14  ;;  %407 = vst.msk [vmem:[#allocation2 + $0x64] sm:$0xf] %vm362_vm2, %v339_v55 }
  0x4a   : > { %2590 = vmatmul.msk.bf16.gmra.mxu0 %vm959_vm4, %v933_v17  ;;  %2771 = vmatmul.msk.bf16.gmra.mxu2 %vm959_vm4, %v2840_v22  ;;  %v404_v17 = vsel %vm2987_vm3, %v337_v11, %v403_v12  ;;  %v2821_v22 = vld [vmem:[#allocation2 + $0x30] sm:$0xff]  ;;  %v1792_v32 = vsel %vm3026_vm7, %v1787_v20, %v1791_v21  ;;  %v631_v33 = vshrl.u32 %v465_v23, 16  ;;  %v634_v34 = vshll.u32 %v465_v23, 16  ;;  %v340_v1 = vld [vmem:[%s2985_s12 + $0x68] sm:$0x1] }
  0x4b   : > { %405 = vst [vmem:[#allocation2 + $0x5c] sm:$0x1] %v404_v17  ;;  %v619_v29 = vsel %vm3026_vm7, %v614_v13, %v618_v52  ;;  %v640_v35 = vshll.u32 %v466_v24, 16  ;;  %v644_v36 = vshrl.u32 %v466_v24, 16  ;;  %v1796_v38 = vrot.slane %v1794_v25, 4 }
  0x4c   : > { %2679 = vmatmul.msk.bf16.gmra.mxu1 %vm959_vm4, %v2820_v31  ;;  %v1782_v31 = vsel %vm3026_vm7, %v1777_v19, %v1781_v58  ;;  %v1799_v39 = vrot.slane %v1797_v26, 5  ;;  %v1805_v40 = vrot.slane %v1803_v27, 5  ;;  %v1809_v41 = vrot.slane %v1807_v28, 4  ;;  %v408_v2 = vld [vmem:[#allocation2 + $0x68] sm:$0x1] }
  0x4d   : > { %v907_v42 = vunpack.c.l.b16 %v619_v29  ;;  %v2070_v43 = vunpack.c.l.b16 %v1782_v31  ;;  %v2071_v44 = vunpack.c.l.b16 %v1792_v32  ;;  %v908_v45 = vunpack.c.l.b16 %v629_v30  ;;  %v467_v5 = vld [vmem:[#allocation2 + $0x48] sm:$0xf]  ;;  %v468_v6 = vld [vmem:[#allocation2 + $0x4c] sm:$0xf]  ;;  %v1644_v11 = vld [vmem:[#allocation2 + $0x58] sm:$0xf] }
  0x4e   : > { %v633_v46 = vrot.slane %v631_v33, 4  ;;  %v636_v47 = vrot.slane %v634_v34, 5  ;;  %v1813_v48 = vshll.u32 %v1642_v37, 16  ;;  %v642_v50 = vrot.slane %v640_v35, 5  ;;  %v497_v32 = vld [vmem:[#allocation2 + $0x50] sm:$0x1] }
  0x4f   : > { %v646_v51 = vrot.slane %v644_v36, 4  ;;  %v1800_v52 = vor.u32 %v1799_v39, %v1796_v38  ;;  %v1810_v53 = vor.u32 %v1809_v41, %v1805_v40  ;;  %v2098_v56 = vpack.c.b16 %v2071_v44, %v2070_v43  ;;  %v341_v43 = vld [vmem:[%s2985_s12 + $0x6c] sm:$0xf]  ;;  %v342_v44 = vld [vmem:[%s2985_s12 + $0x70] sm:$0xf] }
  0x50   : > { %v935_v58 = vpack.c.b16 %v908_v45, %v907_v42  ;;  %v650_v59 = vshll.u32 %v496_v49, 16  ;;  %v1815_v60 = vrot.slane %v1813_v48, 5  ;;  %v637_v61 = vor.u32 %v636_v47, %v633_v46  ;;  %411 = vst.msk [vmem:[#allocation2 + $0x6c] sm:$0xf] %vm362_vm2, %v341_v43  ;;  %v471_v43 = vld [vmem:[#allocation2 + $0x60] sm:$0xf] }
  0x51   : > { %v647_v62 = vor.u32 %v646_v51, %v642_v50  ;;  %v1801_v63 = vrot.slane %v1800_v52, 4  ;;  %v1811_v0 = vrot.slane %v1810_v53, 4  ;;  %v409_v4 = vsel %vm2987_vm3, %v340_v1, %v408_v2  ;;  %412 = vst.msk [vmem:[#allocation2 + $0x70] sm:$0xf] %vm362_vm2, %v342_v44  ;;  %v413_v51 = vld [vmem:[#allocation2 + $0x74] sm:$0x1] }
  0x52   : > { %410 = vst [vmem:[#allocation2 + $0x68] sm:$0x1] %v409_v4  ;;  %v638_v12 = vrot.slane %v637_v61, 4  ;;  %v655_v16 = vshrl.u32 %v467_v5, 16  ;;  %v658_v17 = vshll.u32 %v467_v5, 16  ;;  %v664_v18 = vshll.u32 %v468_v6, 16 }
  0x53   : > { %v648_v13 = vrot.slane %v647_v62, 4  ;;  %v1806_v14 = vsel %vm3026_vm7, %v1801_v63, %v1805_v40  ;;  %v1816_v15 = vsel %vm3026_vm7, %v1811_v0, %v1815_v60  ;;  %v668_v19 = vshrl.u32 %v468_v6, 16  ;;  %v1645_v39 = vld [vmem:[#allocation2 + $0x5c] sm:$0x1]  ;;  %v2843_v52 = vld [vmem:[#allocation2 + $0x54] sm:$0xff]  ;;  %v2823_v61 = vld [vmem:[#allocation2 + $0x48] sm:$0xff] }
  0x54   : > { %v1831_v23 = vshrl.u32 %v1644_v11, 16  ;;  %v643_v24 = vsel %vm3026_vm7, %v638_v12, %v642_v50  ;;  %v2072_v26 = vunpack.c.l.b16 %v1806_v14  ;;  %v2073_v27 = vunpack.c.l.b16 %v1816_v15  ;;  %v343_v50 = vld [vmem:[%s2985_s12 + $0x74] sm:$0x1]  ;;  %v1646_v62 = vld [vmem:[#allocation2 + $0x60] sm:$0xf] }
  0x55   : > { %v657_v28 = vrot.slane %v655_v16, 4  ;;  %v660_v29 = vrot.slane %v658_v17, 5  ;;  %v666_v30 = vrot.slane %v664_v18, 5  ;;  %v670_v31 = vrot.slane %v668_v19, 4  ;;  %v1647_v63 = vld [vmem:[#allocation2 + $0x64] sm:$0xf] }
  0x56   : > { %v1833_v36 = vrot.slane %v1831_v23, 4  ;;  %v909_v37 = vunpack.c.l.b16 %v643_v24  ;;  %v2099_v40 = vpack.c.b16 %v2073_v27, %v2072_v26  ;;  %v674_v42 = vshll.u32 %v497_v32, 16  ;;  %v469_v0 = vld [vmem:[#allocation2 + $0x54] sm:$0xf]  ;;  %v470_v1 = vld [vmem:[#allocation2 + $0x58] sm:$0xf] }
  0x57   : > { %v661_v41 = vor.u32 %v660_v29, %v657_v28  ;;  %v671_v45 = vor.u32 %v670_v31, %v666_v30  ;;  %v1837_v48 = vshll.u32 %v1645_v39, 16  ;;  %v414_v55 = vsel %vm2987_vm3, %v343_v50, %v413_v51  ;;  %v498_v28 = vld [vmem:[#allocation2 + $0x5c] sm:$0x1]  ;;  %v344_v29 = vld [vmem:[%s2985_s12 + $0x78] sm:$0xf] }
  0x58   : > { %v676_v54 = vrot.slane %v674_v42, 5  ;;  %415 = vst [vmem:[#allocation2 + $0x74] sm:$0x1] %v414_v55  ;;  %v1842_v6 = vshrl.u32 %v1646_v62, 16  ;;  %v682_v12 = vshll.u32 %v469_v0, 16  ;;  %v692_v14 = vshrl.u32 %v470_v1, 16 }
  0x59   : > { %2799 = vmatmul.msk.bf16.gmra.mxu3 %vm959_vm4, %v2097_v3  ;;  %v2842_v3 = vld [vmem:[#allocation2 + $0x48] sm:$0xff]  ;;  %v662_v53 = vrot.slane %v661_v41, 4  ;;  %v1839_v60 = vrot.slane %v1837_v48, 5  ;;  %v345_v31 = vld [vmem:[%s2985_s12 + $0x7c] sm:$0xf]  ;;  %v2844_v41 = vld [vmem:[#allocation2 + $0x60] sm:$0xff] }
  0x5a   : > { %2591 = vmatmul.msk.bf16.gmra.mxu0 %vm959_vm4, %v934_v9  ;;  %2772 = vmatmul.msk.bf16.gmra.mxu2 %vm959_vm4, %v2841_v10  ;;  %v652_v9 = vrot.slane %v650_v59, 5  ;;  %v1643_v10 = vld [vmem:[#allocation2 + $0x54] sm:$0xf]  ;;  %v1844_v19 = vrot.slane %v1842_v6, 4  ;;  %v684_v24 = vrot.slane %v682_v12, 5  ;;  %v694_v26 = vrot.slane %v692_v14, 4 }
  0x5b   : > { %v1818_v20 = vshrl.u32 %v1643_v10, 16  ;;  %v1821_v21 = vshll.u32 %v1643_v10, 16  ;;  %v667_v2 = vsel %vm3026_vm7, %v662_v53, %v666_v30  ;;  %v1855_v10 = vshrl.u32 %v1647_v63, 16  ;;  %v1648_v27 = vld [vmem:[#allocation2 + $0x68] sm:$0x1] }
  0x5c   : > { %2680 = vmatmul.msk.bf16.gmra.mxu1 %vm959_vm4, %v2821_v22  ;;  %v1827_v22 = vshll.u32 %v1644_v11, 16  ;;  %v653_v25 = vsel %vm3026_vm7, %v648_v13, %v652_v9  ;;  %v1851_v9 = vshll.u32 %v1647_v63, 16  ;;  %v679_v11 = vshrl.u32 %v469_v0, 16  ;;  %416 = vst.msk [vmem:[#allocation2 + $0x78] sm:$0xf] %vm362_vm2, %v344_v29 }
  0x5d   : > { %v1820_v33 = vrot.slane %v1818_v20, 4  ;;  %v1823_v34 = vrot.slane %v1821_v21, 5  ;;  %v910_v38 = vunpack.c.l.b16 %v653_v25  ;;  %v688_v13 = vshll.u32 %v470_v1, 16  ;;  %417 = vst.msk [vmem:[#allocation2 + $0x7c] sm:$0xf] %vm362_vm2, %v345_v31 }
  0x5e   : > { %v1829_v35 = vrot.slane %v1827_v22, 5  ;;  %v911_v15 = vunpack.c.l.b16 %v667_v2  ;;  %v1853_v21 = vrot.slane %v1851_v9, 5  ;;  %v1857_v22 = vrot.slane %v1855_v10, 4  ;;  %v346_v39 = vld [vmem:[%s2985_s12 + $0x80] sm:$0x1] }
  0x5f   : > { %v1824_v46 = vor.u32 %v1823_v34, %v1820_v33  ;;  %v936_v49 = vpack.c.b16 %v910_v38, %v909_v37  ;;  %v681_v23 = vrot.slane %v679_v11, 4  ;;  %v690_v25 = vrot.slane %v688_v13, 5  ;;  %v472_v44 = vld [vmem:[#allocation2 + $0x64] sm:$0xf]  ;;  %v1650_v53 = vld [vmem:[#allocation2 + $0x70] sm:$0xf] }
  0x60   : > { %v1834_v47 = vor.u32 %v1833_v36, %v1829_v35  ;;  %v1858_v34 = vor.u32 %v1857_v22, %v1853_v21  ;;  %v698_v38 = vshll.u32 %v498_v28, 16  ;;  %v706_v55 = vshll.u32 %v471_v43, 16  ;;  %v499_v14 = vld [vmem:[#allocation2 + $0x68] sm:$0x1]  ;;  %v473_v29 = vld [vmem:[#allocation2 + $0x6c] sm:$0xf] }
  0x61   : > { %v685_v36 = vor.u32 %v684_v24, %v681_v23  ;;  %v695_v37 = vor.u32 %v694_v26, %v690_v25  ;;  %v1875_v63 = vshll.u32 %v1650_v53, 16  ;;  %v1879_v0 = vshrl.u32 %v1650_v53, 16  ;;  %v348_v24 = vld [vmem:[%s2985_s12 + $0x88] sm:$0xf]  ;;  %v2845_v26 = vld [vmem:[#allocation2 + $0x6c] sm:$0xff] }
  0x62   : > { %v1835_v59 = vrot.slane %v1834_v47, 4  ;;  %v1859_v47 = vrot.slane %v1858_v34, 4  ;;  %v722_v22 = vshll.u32 %v499_v14, 16  ;;  %422 = vst.msk [vmem:[#allocation2 + $0x88] sm:$0xf] %vm362_vm2, %v348_v24 }
  0x63   : > { %v686_v50 = vrot.slane %v685_v36, 4  ;;  %v696_v51 = vrot.slane %v695_v37, 4  ;;  %v423_v31 = vld [vmem:[#allocation2 + $0x8c] sm:$0x1]  ;;  %v474_v34 = vld [vmem:[#allocation2 + $0x70] sm:$0xf] }
  0x64   : > { %v1840_v5 = vsel %vm3026_vm7, %v1835_v59, %v1839_v60  ;;  %v724_v37 = vrot.slane %v722_v22, 5 }
  0x65   : > { %v2075_v18 = vunpack.c.l.b16 %v1840_v5  ;;  %v691_v1 = vsel %vm3026_vm7, %v686_v50, %v690_v25 }
  0x66   : > { %v913_v12 = vunpack.c.l.b16 %v691_v1 }
  0x69   : > { %2800 = vmatmul.msk.bf16.gmra.mxu3 %vm959_vm4, %v2098_v56  ;;  %v672_v56 = vrot.slane %v671_v45, 4  ;;  %v2824_v45 = vld [vmem:[#allocation2 + $0x54] sm:$0xff] }
  0x6a   : > { %2592 = vmatmul.msk.bf16.gmra.mxu0 %vm959_vm4, %v935_v58  ;;  %2773 = vmatmul.msk.bf16.gmra.mxu2 %vm959_vm4, %v2842_v3  ;;  %v1825_v58 = vrot.slane %v1824_v46, 4 }
  0x6b   : > { %v677_v3 = vsel %vm3026_vm7, %v672_v56, %v676_v54  ;;  %v703_v54 = vshrl.u32 %v471_v43, 16  ;;  %v712_v56 = vshll.u32 %v472_v44, 16  ;;  %v727_v43 = vshrl.u32 %v473_v29, 16 }
  0x6c   : > { %2681 = vmatmul.msk.bf16.gmra.mxu1 %vm959_vm4, %v2822_v7  ;;  %v1830_v4 = vsel %vm3026_vm7, %v1825_v58, %v1829_v35  ;;  %v1845_v7 = vshll.u32 %v1646_v62, 16  ;;  %v912_v16 = vunpack.c.l.b16 %v677_v3  ;;  %v1861_v35 = vshll.u32 %v1648_v27, 16 }
  0x6d   : > { %v2074_v17 = vunpack.c.l.b16 %v1830_v4  ;;  %v716_v58 = vshrl.u32 %v472_v44, 16  ;;  %v705_v3 = vrot.slane %v703_v54, 4  ;;  %v708_v4 = vrot.slane %v706_v55, 5 }
  0x6e   : > { %v1847_v20 = vrot.slane %v1845_v7, 5  ;;  %v937_v32 = vpack.c.b16 %v912_v16, %v911_v15  ;;  %v1863_v48 = vrot.slane %v1861_v35, 5  ;;  %v3178_v5 = vrot.slane %v712_v56, 5  ;;  %v1652_v35 = vld [vmem:[#allocation2 + $0x78] sm:$0xf] }
  0x6f   : > { %v2100_v30 = vpack.c.b16 %v2075_v18, %v2074_v17  ;;  %v718_v6 = vrot.slane %v716_v58, 4  ;;  %v1877_v15 = vrot.slane %v1875_v63, 5  ;;  %v1881_v16 = vrot.slane %v1879_v0, 4  ;;  %v1651_v17 = vld [vmem:[#allocation2 + $0x74] sm:$0x1] }
  0x70   : > { %v1848_v33 = vor.u32 %v1847_v20, %v1844_v19  ;;  %v1864_v62 = vsel %vm3026_vm7, %v1859_v47, %v1863_v48  ;;  %v709_v18 = vor.u32 %v708_v4, %v705_v3  ;;  %v347_v20 = vld [vmem:[%s2985_s12 + $0x84] sm:$0xf]  ;;  %v1885_v28 = vshll.u32 %v1651_v17, 16  ;;  %v351_v17 = vld [vmem:[%s2985_s12 + $0x94] sm:$0xf] }
  0x71   : > { %v2077_v9 = vunpack.c.l.b16 %v1864_v62  ;;  %v719_v19 = vor.u32 %v718_v6, %v3178_v5  ;;  %421 = vst.msk [vmem:[#allocation2 + $0x84] sm:$0xf] %vm362_vm2, %v347_v20  ;;  %v1882_v27 = vor.u32 %v1881_v16, %v1877_v15  ;;  %v730_v44 = vshll.u32 %v473_v29, 16  ;;  %v350_v16 = vld [vmem:[%s2985_s12 + $0x90] sm:$0xf]  ;;  %v2846_v29 = vld [vmem:[#allocation2 + $0x78] sm:$0xff] }
  0x72   : > { %v1849_v46 = vrot.slane %v1848_v33, 4  ;;  %v740_v47 = vshrl.u32 %v474_v34, 16  ;;  %v1890_v48 = vshrl.u32 %v1652_v35, 16  ;;  %v729_v56 = vrot.slane %v727_v43, 4  ;;  %426 = vst.msk [vmem:[#allocation2 + $0x90] sm:$0xf] %vm362_vm2, %v350_v16 }
  0x73   : > { %v720_v33 = vrot.slane %v719_v19, 4  ;;  %v732_v58 = vrot.slane %v730_v44, 5  ;;  %427 = vst.msk [vmem:[#allocation2 + $0x94] sm:$0xf] %vm362_vm2, %v351_v17 }
  0x74   : > { %v742_v62 = vrot.slane %v740_v47, 4  ;;  %v1892_v63 = vrot.slane %v1890_v48, 4 }
  0x75   : > { %v725_v53 = vsel %vm3026_vm7, %v720_v33, %v724_v37  ;;  %v1656_v37 = vld [vmem:[#allocation2 + $0x88] sm:$0xf] }
  0x78   : > { %v477_v16 = vld [vmem:[#allocation2 + $0x84] sm:$0xf] }
  0x79   : > { %2801 = vmatmul.msk.bf16.gmra.mxu3 %vm959_vm4, %v2099_v40  ;;  %v418_v40 = vld [vmem:[#allocation2 + $0x80] sm:$0x1]  ;;  %v1658_v17 = vld [vmem:[#allocation2 + $0x90] sm:$0xf] }
  0x7a   : > { %2593 = vmatmul.msk.bf16.gmra.mxu0 %vm959_vm4, %v936_v49  ;;  %2774 = vmatmul.msk.bf16.gmra.mxu2 %vm959_vm4, %v2843_v52  ;;  %v419_v42 = vsel %vm2987_vm3, %v346_v39, %v418_v40  ;;  %v1649_v49 = vld [vmem:[#allocation2 + $0x6c] sm:$0xf]  ;;  %v700_v52 = vrot.slane %v698_v38, 5  ;;  %v1653_v39 = vld [vmem:[#allocation2 + $0x7c] sm:$0xf]  ;;  %v2825_v40 = vld [vmem:[#allocation2 + $0x60] sm:$0xff] }
  0x7b   : > { %420 = vst [vmem:[#allocation2 + $0x80] sm:$0x1] %v419_v42  ;;  %v1866_v59 = vshrl.u32 %v1649_v49, 16  ;;  %v1869_v60 = vshll.u32 %v1649_v49, 16  ;;  %v1887_v42 = vrot.slane %v1885_v28, 5  ;;  %v1893_v49 = vshll.u32 %v1652_v35, 16 }
  0x7c   : > { %2682 = vmatmul.msk.bf16.gmra.mxu1 %vm959_vm4, %v2823_v61  ;;  %v1854_v61 = vsel %vm3026_vm7, %v1849_v46, %v1853_v21  ;;  %v701_v2 = vsel %vm3026_vm7, %v696_v51, %v700_v52  ;;  %v736_v46 = vshll.u32 %v474_v34, 16  ;;  %v1899_v50 = vshll.u32 %v1653_v39, 16  ;;  %v1655_v34 = vld [vmem:[#allocation2 + $0x84] sm:$0xf] }
  0x7d   : > { %v2076_v7 = vunpack.c.l.b16 %v1854_v61  ;;  %v1868_v10 = vrot.slane %v1866_v59, 4  ;;  %v1871_v11 = vrot.slane %v1869_v60, 5  ;;  %v914_v13 = vunpack.c.l.b16 %v701_v2  ;;  %v500_v60 = vld [vmem:[#allocation2 + $0x74] sm:$0x1] }
  0x7e   : > { %v1903_v51 = vshrl.u32 %v1653_v39, 16  ;;  %v738_v61 = vrot.slane %v736_v46, 5  ;;  %v1895_v0 = vrot.slane %v1893_v49, 5  ;;  %v1901_v1 = vrot.slane %v1899_v50, 5  ;;  %v476_v46 = vld [vmem:[#allocation2 + $0x7c] sm:$0xf] }
  0x7f   : > { %v2101_v21 = vpack.c.b16 %v2077_v9, %v2076_v7  ;;  %v1872_v23 = vor.u32 %v1871_v11, %v1868_v10  ;;  %v938_v25 = vpack.c.b16 %v914_v13, %v913_v12  ;;  %v916_v7 = vunpack.c.l.b16 %v725_v53 }
  0x80   : > { %v1905_v2 = vrot.slane %v1903_v51, 4  ;;  %v733_v9 = vor.u32 %v732_v58, %v729_v56  ;;  %v746_v10 = vshll.u32 %v500_v60, 16  ;;  %v743_v12 = vor.u32 %v742_v62, %v738_v61 }
  0x81   : > { %v1873_v38 = vrot.slane %v1872_v23, 4  ;;  %v1896_v13 = vor.u32 %v1895_v0, %v1892_v63  ;;  %v1914_v48 = vshrl.u32 %v1655_v34, 16  ;;  %v1917_v50 = vshll.u32 %v1655_v34, 16 }
  0x82   : > { %v1906_v14 = vor.u32 %v1905_v2, %v1901_v1  ;;  %v734_v20 = vrot.slane %v733_v9, 4  ;;  %v744_v24 = vrot.slane %v743_v12, 4  ;;  %v1923_v51 = vshll.u32 %v1656_v37, 16 }
  0x83   : > { %v1878_v54 = vsel %vm3026_vm7, %v1873_v38, %v1877_v15  ;;  %v3213_v38 = vld [vmem:[%s3527_s3] ss:$0 sm:$0xff]  ;;  %v764_v62 = vshrl.u32 %v476_v46, 16 }
  0x84   : > { %v2078_v3 = vunpack.c.l.b16 %v1878_v54 }
  0x89   : > { %2802 = vmatmul.msk.bf16.gmra.mxu3 %vm959_vm4, %v2100_v30  ;;  %v349_v30 = vld [vmem:[%s2985_s12 + $0x8c] sm:$0x1] }
  0x8a   : > { %2594 = vmatmul.msk.bf16.gmra.mxu0 %vm959_vm4, %v937_v32  ;;  %2775 = vmatmul.msk.bf16.gmra.mxu2 %vm959_vm4, %v2844_v41  ;;  %v710_v32 = vrot.slane %v709_v18, 4  ;;  %v424_v36 = vsel %vm2987_vm3, %v349_v30, %v423_v31  ;;  %v1883_v41 = vrot.slane %v1882_v27, 4  ;;  %v428_v27 = vld [vmem:[#allocation2 + $0x98] sm:$0x1]  ;;  %v1907_v30 = vrot.slane %v1906_v14, 4 }
  0x8b   : > { %425 = vst [vmem:[#allocation2 + $0x8c] sm:$0x1] %v424_v36  ;;  %v2826_v36 = vld [vmem:[#allocation2 + $0x6c] sm:$0xff] }
  0x8c   : > { %2683 = vmatmul.msk.bf16.gmra.mxu1 %vm959_vm4, %v2824_v45  ;;  %v715_v52 = vsel %vm3026_vm7, %v710_v32, %v3178_v5  ;;  %v1888_v55 = vsel %vm3026_vm7, %v1883_v41, %v1887_v42  ;;  %v1654_v5 = vld [vmem:[#allocation2 + $0x80] sm:$0x1]  ;;  %v475_v32 = vld [vmem:[#allocation2 + $0x78] sm:$0xf] }
  0x8d   : > { %v2079_v4 = vunpack.c.l.b16 %v1888_v55  ;;  %v915_v6 = vunpack.c.l.b16 %v715_v52  ;;  %v1909_v15 = vshll.u32 %v1654_v5, 16  ;;  %v751_v43 = vshrl.u32 %v475_v32, 16 }
  0x8e   : > { %v754_v47 = vshll.u32 %v475_v32, 16  ;;  %v1927_v52 = vshrl.u32 %v1656_v37, 16  ;;  %v1938_v32 = vshrl.u32 %v1658_v17, 16 }
  0x8f   : > { %v2102_v18 = vpack.c.b16 %v2079_v4, %v2078_v3  ;;  %v939_v19 = vpack.c.b16 %v916_v7, %v915_v6  ;;  %v1911_v31 = vrot.slane %v1909_v15, 5  ;;  %v753_v60 = vrot.slane %v751_v43, 4  ;;  %v2847_v43 = vld [vmem:[#allocation2 + $0x84] sm:$0xff] }
  0x90   : > { %v756_v2 = vrot.slane %v754_v47, 5  ;;  %v1916_v4 = vrot.slane %v1914_v48, 4  ;;  %v1919_v6 = vrot.slane %v1917_v50, 5  ;;  %v3233_v7 = vrot.slane %v1923_v51, 5  ;;  %v2827_v51 = vld [vmem:[#allocation2 + $0x78] sm:$0xff] }
  0x91   : > { %v1929_v9 = vrot.slane %v1927_v52, 4  ;;  %v766_v15 = vrot.slane %v764_v62, 4 }
  0x92   : > { %v1657_v3 = vld [vmem:[#allocation2 + $0x8c] sm:$0x1] }
  0x99   : > { %2803 = vmatmul.msk.bf16.gmra.mxu3 %vm959_vm4, %v2101_v21  ;;  %v1246_v45 = vpop.f32.mrf.mxu1  ;;  %v748_v21 = vrot.slane %v746_v10, 5 }
  0x9a   : > { %2595 = vmatmul.msk.bf16.gmra.mxu0 %vm959_vm4, %v938_v25  ;;  %2776 = vmatmul.msk.bf16.gmra.mxu2 %vm959_vm4, %v2845_v26  ;;  %v1897_v25 = vrot.slane %v1896_v13, 4  ;;  %v352_v26 = vld [vmem:[%s2985_s12 + $0x98] sm:$0x1] }
  0x9b   : > { %v429_v33 = vsel %vm2987_vm3, %v352_v26, %v428_v27  ;;  %v749_v41 = vsel %vm3026_vm7, %v744_v24, %v748_v21  ;;  %v1920_v26 = vor.u32 %v1919_v6, %v1916_v4  ;;  %v1930_v27 = vor.u32 %v1929_v9, %v3233_v7 }
  0x9c   : > { %2684 = vmatmul.msk.bf16.gmra.mxu1 %vm959_vm4, %v2825_v40  ;;  %430 = vst [vmem:[#allocation2 + $0x98] sm:$0x1] %v429_v33  ;;  %v739_v40 = vsel %vm3026_vm7, %v734_v20, %v738_v61  ;;  %v1902_v42 = vsel %vm3026_vm7, %v1897_v25, %v1901_v1  ;;  %v3229_v54 = vunpack.c.l.b16 %v749_v41  ;;  %v760_v61 = vshll.u32 %v476_v46, 16  ;;  %v501_v1 = vld [vmem:[#allocation2 + $0x80] sm:$0x1] }
  0x9d   : > { %v1513_v59 = vpop.f32.mrf.mxu2  ;;  %v3227_v53 = vunpack.c.l.b16 %v739_v40  ;;  %v2080_v55 = vunpack.c.l.b16 %v1902_v42  ;;  %v757_v20 = vor.u32 %v756_v2, %v753_v60  ;;  %v770_v21 = vshll.u32 %v501_v1, 16  ;;  %v355_v40 = vld [vmem:[%s2985_s12 + $0xa4] sm:$0x1] }
  0x9e   : > { %v1941_v33 = vshll.u32 %v1658_v17, 16  ;;  %v433_v41 = vld [vmem:[#allocation2 + $0xa4] sm:$0x1]  ;;  %v1921_v52 = vrot.slane %v1920_v26, 4 }
  0x9f   : > { %v940_v10 = vpack.c.b16 %v3229_v54, %v3227_v53  ;;  %v434_v46 = vsel %vm2987_vm3, %v355_v40, %v433_v41  ;;  %v758_v48 = vrot.slane %v757_v20, 4  ;;  %v1931_v53 = vrot.slane %v1930_v27, 4  ;;  %v356_v41 = vld [vmem:[%s2985_s12 + $0xa8] sm:$0xf] }
  0xa0   : > { %435 = vst [vmem:[#allocation2 + $0xa4] sm:$0x1] %v434_v46  ;;  %v357_v46 = vld [vmem:[%s2985_s12 + $0xac] sm:$0xf] }
  0xa1   : > { %v1248_v11 = vpop.f32.mrf.mxu1  ;;  %436 = vst.msk [vmem:[#allocation2 + $0xa8] sm:$0xf] %vm362_vm2, %v356_v41 }
  0xa2   : > { %437 = vst.msk [vmem:[#allocation2 + $0xac] sm:$0xf] %vm362_vm2, %v357_v46 }
  0xa3   : > { %v1660_v4 = vld [vmem:[#allocation2 + $0x98] sm:$0x1] }
  0xa5   : > { %v1515_v23 = vpop.f32.mrf.mxu2 }
  0xa7   : > { %v1017_v22 = vpop.f32.mrf.mxu0 }
  0xa8   : > { %v1247_v28 = vadd.f32 %v1246_v45, %v1017_v22  ;;  %v1912_v45 = vsel %vm3026_vm7, %v1907_v30, %v1911_v31  ;;  %v1933_v22 = vshll.u32 %v1657_v3, 16  ;;  %v775_v30 = vshrl.u32 %v477_v16, 16 }
  0xa9   : > { %2804 = vmatmul.msk.bf16.gmra.mxu3 %vm959_vm4, %v2102_v18  ;;  %v3215_v39 = vpop.f32.mrf.mxu1  ;;  %v2081_v0 = vunpack.c.l.b16 %v1912_v45  ;;  %v778_v31 = vshll.u32 %v477_v16, 16 }
  0xaa   : > { %2596 = vmatmul.msk.bf16.gmra.mxu0 %vm959_vm4, %v939_v19  ;;  %v1593_v35 = vadd.f32 %v1513_v59, %v1247_v28  ;;  %2777 = vmatmul.msk.bf16.gmra.mxu2 %vm959_vm4, %v2846_v29  ;;  %v1659_v28 = vld [vmem:[#allocation2 + $0x94] sm:$0xf]  ;;  %v354_v29 = vld [vmem:[%s2985_s12 + $0xa0] sm:$0xf]  ;;  %v1935_v54 = vrot.slane %v1933_v22, 5  ;;  %v777_v60 = vrot.slane %v775_v30, 4 }
  0xab   : > { %v2103_v19 = vpack.c.b16 %v2081_v0, %v2080_v55  ;;  %432 = vst.msk [vmem:[#allocation2 + $0xa0] sm:$0xf] %vm362_vm2, %v354_v29  ;;  %v1951_v45 = vshrl.u32 %v1659_v28, 16  ;;  %v1943_v0 = vrot.slane %v1941_v33, 5  ;;  %v1957_v22 = vshll.u32 %v1660_v4, 16  ;;  %v2828_v4 = vld [vmem:[#allocation2 + $0x84] sm:$0xff] }
  0xac   : > { %v2179_v44 = vpop.f32.mrf.mxu3  ;;  %2685 = vmatmul.msk.bf16.gmra.mxu1 %vm959_vm4, %v2826_v36  ;;  %v1936_v6 = vsel %vm3026_vm7, %v1931_v53, %v1935_v54  ;;  %v358_v54 = vld [vmem:[%s2985_s12 + $0xb0] sm:$0x1] }
  0xad   : > { %v2259_v49 = vadd.f32 %v2179_v44, %v1593_v35  ;;  %v1518_v59 = vpop.f32.mrf.mxu2  ;;  %v1947_v44 = vshll.u32 %v1659_v28, 16  ;;  %v1959_v40 = vrot.slane %v1957_v22, 5 }
  0xaf   : > { %v2295_v56 = vadd.f32 %v3213_v38, %v2259_v49  ;;  %v1019_v58 = vpop.f32.mrf.mxu0  ;;  %v772_v49 = vrot.slane %v770_v21, 5  ;;  %v3264_v1 = vrot.slane %v1947_v44, 5 }
  0xb0   : > { %v1249_v63 = vadd.f32 %v1248_v11, %v1019_v58  ;;  %v3239_v11 = vrot.slane %v760_v61, 5  ;;  %v478_v58 = vld [vmem:[#allocation2 + $0x88] sm:$0xf]  ;;  %v780_v61 = vrot.slane %v778_v31, 5 }
  0xb1   : > { %v2327_v5 = vmul.f32 0.2, %v2295_v56  ;;  %v3237_v14 = vpop.f32.mrf.mxu1  ;;  %v784_v9 = vshll.u32 %v478_v58, 16 }
  0xb2   : > { %v1594_v13 = vadd.f32 %v1515_v23, %v1249_v63  ;;  %v353_v23 = vld [vmem:[%s2985_s12 + $0x9c] sm:$0xf]  ;;  %v767_v37 = vor.u32 %v766_v15, %v3239_v11  ;;  %v1940_v63 = vrot.slane %v1938_v32, 4  ;;  %v763_v16 = vsel %vm3026_vm7, %v758_v48, %v3239_v11  ;;  %v479_v32 = vld [vmem:[#allocation2 + $0x90] sm:$0xf] }
  0xb3   : > { %v2359_v12 = vmax.f32 %v2295_v56, %v2327_v5  ;;  %431 = vst.msk [vmem:[#allocation2 + $0x9c] sm:$0xf] %vm362_vm2, %v353_v23  ;;  %v1926_v5 = vsel %vm3026_vm7, %v1921_v52, %v3233_v7  ;;  %v919_v26 = vunpack.c.l.b16 %v763_v16  ;;  %v3282_v28 = vrot.slane %v784_v9, 5 }
  0xb4   : > { %v2181_v18 = vpop.f32.mrf.mxu3  ;;  %v768_v56 = vrot.slane %v767_v37, 4  ;;  %v1944_v20 = vor.u32 %v1943_v0, %v1940_v63  ;;  %v799_v48 = vshrl.u32 %v479_v32, 16 }
  0xb5   : > { %v2391_v24 = vpack.c.bf16 %v2359_v12, %v2359_v12  ;;  %v2260_v25 = vadd.f32 %v2181_v18, %v1594_v13  ;;  %v1520_v36 = vpop.f32.mrf.mxu2  ;;  %v781_v18 = vor.u32 %v780_v61, %v777_v60 }
  0xb6   : > { %v773_v17 = vsel %vm3026_vm7, %v768_v56, %v772_v49  ;;  %v802_v49 = vshll.u32 %v479_v32, 16 }
  0xb7   : > { %2424 = vst.msk [vmem:[%s3244_s22] sm:$0xf] %vm2423_vm8, %v2391_v24  ;;  %v2296_v34 = vadd.f32 %v3213_v38, %v2260_v25  ;;  %v1022_v35 = vpop.f32.mrf.mxu0  ;;  %v2082_v24 = vunpack.c.l.b16 %v1926_v5  ;;  %v2083_v25 = vunpack.c.l.b16 %v1936_v6  ;;  %v920_v27 = vunpack.c.l.b16 %v773_v17 }
  0xb8   : > { %v1252_v42 = vadd.f32 %v3215_v39, %v1022_v35  ;;  %v1945_v35 = vrot.slane %v1944_v20, 4 }
  0xb9   : > { %v2328_v47 = vmul.f32 0.2, %v2296_v34  ;;  %2805 = vmatmul.msk.bf16.gmra.mxu3 %vm959_vm4, %v2103_v19  ;;  %v3261_v55 = vpop.f32.mrf.mxu1  ;;  %v502_v19 = vld [vmem:[#allocation2 + $0x8c] sm:$0x1]  ;;  %v2104_v44 = vpack.c.b16 %v2083_v25, %v2082_v24 }
  0xba   : > { %2597 = vmatmul.msk.bf16.gmra.mxu0 %vm959_vm4, %v940_v10  ;;  %v1595_v50 = vadd.f32 %v1518_v59, %v1252_v42  ;;  %2778 = vmatmul.msk.bf16.gmra.mxu2 %vm959_vm4, %v2847_v43  ;;  %v1953_v59 = vrot.slane %v1951_v45, 4  ;;  %v788_v10 = vshrl.u32 %v478_v58, 16  ;;  %v480_v45 = vld [vmem:[#allocation2 + $0x94] sm:$0xf] }
  0xbb   : > { %v2360_v39 = vmax.f32 %v2296_v34, %v2328_v47  ;;  %v3286_v34 = vrot.slane %v781_v18, 4  ;;  %v2848_v58 = vld [vmem:[#allocation2 + $0x90] sm:$0xff]  ;;  %v808_v60 = vshll.u32 %v480_v45, 16  ;;  %v812_v61 = vshrl.u32 %v480_v45, 16  ;;  %v503_v18 = vld [vmem:[#allocation2 + $0x98] sm:$0x1] }
  0xbc   : > { %v2184_v62 = vpop.f32.mrf.mxu3  ;;  %2686 = vmatmul.msk.bf16.gmra.mxu1 %vm959_vm4, %v2827_v51  ;;  %v1954_v21 = vor.u32 %v1953_v59, %v3264_v1  ;;  %v790_v11 = vrot.slane %v788_v10, 4 }
  0xbd   : > { %v2392_v2 = vpack.c.bf16 %v2360_v39, %v2360_v39  ;;  %v2261_v3 = vadd.f32 %v2184_v62, %v1595_v50  ;;  %v1523_v15 = vpop.f32.mrf.mxu2  ;;  %v1661_v50 = vld [vmem:[#allocation2 + $0x9c] sm:$0xf]  ;;  %v438_v39 = vld [vmem:[#allocation2 + $0xb0] sm:$0x1]  ;;  %v1662_v62 = vld [vmem:[#allocation2 + $0xa0] sm:$0xf]  ;;  %v787_v24 = vsel %vm3026_vm7, %v3286_v34, %v3282_v28 }
  0xbe   : > { %v1955_v37 = vrot.slane %v1954_v21, 4  ;;  %v791_v47 = vor.u32 %v790_v11, %v3282_v28  ;;  %v439_v63 = vsel %vm2987_vm3, %v358_v54, %v438_v39  ;;  %v1962_v59 = vshrl.u32 %v1661_v50, 16 }
  0xbf   : > { %2425 = vst.msk [vmem:[%s3244_s22 + $0x4] sm:$0xf] %vm2423_vm8, %v2392_v2  ;;  %v2297_v12 = vadd.f32 %v3213_v38, %v2261_v3  ;;  %v1024_v13 = vpop.f32.mrf.mxu0  ;;  %v1965_v2 = vshll.u32 %v1661_v50, 16  ;;  %v1971_v16 = vshll.u32 %v1662_v62, 16  ;;  %v1975_v20 = vshrl.u32 %v1662_v62, 16 }
  0xc0   : > { %v1254_v7 = vadd.f32 %v3237_v14, %v1024_v13  ;;  %v794_v14 = vshll.u32 %v502_v19, 16  ;;  %440 = vst [vmem:[#allocation2 + $0xb0] sm:$0x1] %v439_v63  ;;  %v792_v5 = vrot.slane %v791_v47, 4  ;;  %v801_v13 = vrot.slane %v799_v48, 4 }
  0xc1   : > { %v2329_v23 = vmul.f32 0.2, %v2297_v12  ;;  %v3284_v31 = vpop.f32.mrf.mxu1  ;;  %v814_v19 = vrot.slane %v812_v61, 4  ;;  %v482_v61 = vld [vmem:[#allocation2 + $0xa0] sm:$0xf] }
  0xc2   : > { %v1596_v30 = vadd.f32 %v1520_v36, %v1254_v7  ;;  %v941_v36 = vpack.c.b16 %v920_v27, %v919_v26  ;;  %v796_v6 = vrot.slane %v794_v14, 5  ;;  %v3308_v7 = vrot.slane %v808_v60, 5  ;;  %v481_v60 = vld [vmem:[#allocation2 + $0x9c] sm:$0xf] }
  0xc3   : > { %v2361_v29 = vmax.f32 %v2297_v12, %v2329_v23  ;;  %v1960_v12 = vsel %vm3026_vm7, %v1955_v37, %v1959_v40  ;;  %v1967_v23 = vrot.slane %v1965_v2, 5  ;;  %v818_v14 = vshll.u32 %v503_v18, 16  ;;  %v1663_v40 = vld [vmem:[#allocation2 + $0xa4] sm:$0x1]  ;;  %v443_v2 = vld [vmem:[#allocation2 + $0xbc] sm:$0x1] }
  0xc4   : > { %v2186_v33 = vpop.f32.mrf.mxu3  ;;  %v797_v25 = vsel %vm3026_vm7, %v792_v5, %v796_v6  ;;  %v1977_v37 = vrot.slane %v1975_v20, 4  ;;  %v815_v34 = vor.u32 %v814_v19, %v3308_v7  ;;  %v1981_v50 = vshll.u32 %v1663_v40, 16  ;;  %v2829_v18 = vld [vmem:[#allocation2 + $0x90] sm:$0xff] }
  0xc5   : > { %v2393_v42 = vpack.c.bf16 %v2361_v29, %v2361_v29  ;;  %v2262_v43 = vadd.f32 %v2186_v33, %v1596_v30  ;;  %v1525_v53 = vpop.f32.mrf.mxu2  ;;  %v2085_v30 = vunpack.c.l.b16 %v1960_v12  ;;  %v3326_v48 = vrot.slane %v818_v14, 5 }
  0xc6   : > { %v816_v39 = vrot.slane %v815_v34, 4  ;;  %v1983_v6 = vrot.slane %v1981_v50, 5  ;;  %v836_v19 = vshrl.u32 %v482_v61, 16 }
  0xc7   : > { %2426 = vst.msk [vmem:[%s3244_s22 + $0x8] sm:$0xf] %vm2423_vm8, %v2393_v42  ;;  %v2298_v51 = vadd.f32 %v3213_v38, %v2262_v43  ;;  %v1027_v52 = vpop.f32.mrf.mxu0  ;;  %v921_v42 = vunpack.c.l.b16 %v787_v24  ;;  %v922_v43 = vunpack.c.l.b16 %v797_v25 }
  0xc8   : > { %v1257_v56 = vadd.f32 %v3261_v55, %v1027_v52  ;;  %v1950_v55 = vsel %vm3026_vm7, %v1945_v35, %v3264_v1  ;;  %v1964_v1 = vrot.slane %v1962_v59, 4  ;;  %v3321_v35 = vrot.slane %v1971_v16, 5  ;;  %v361_v59 = vld [vmem:[%s2985_s12 + $0xbc] sm:$0x1] }
  0xc9   : > { %v2330_v0 = vmul.f32 0.2, %v2298_v51  ;;  %2806 = vmatmul.msk.bf16.gmra.mxu3 %vm959_vm4, %v2104_v44  ;;  %v1261_v10 = vpop.f32.mrf.mxu1  ;;  %v2084_v29 = vunpack.c.l.b16 %v1950_v55  ;;  %v1664_v55 = vld [vmem:[#allocation2 + $0xa8] sm:$0xf]  ;;  %v826_v16 = vshll.u32 %v481_v60, 16 }
  0xca   : > { %2598 = vmatmul.msk.bf16.gmra.mxu0 %vm959_vm4, %v941_v36  ;;  %v1597_v3 = vadd.f32 %v1523_v15, %v1257_v56  ;;  %2779 = vmatmul.msk.bf16.gmra.mxu2 %vm959_vm4, %v2848_v58  ;;  %v804_v15 = vrot.slane %v802_v49, 5  ;;  %v1968_v41 = vor.u32 %v1967_v23, %v1964_v1  ;;  %v1978_v49 = vor.u32 %v1977_v37, %v3321_v35  ;;  %v360_v58 = vld [vmem:[%s2985_s12 + $0xb8] sm:$0xf]  ;;  %v1665_v1 = vld [vmem:[#allocation2 + $0xac] sm:$0xf] }
  0xcb   : > { %v2362_v9 = vmax.f32 %v2298_v51, %v2330_v0  ;;  %v2105_v36 = vpack.c.b16 %v2085_v30, %v2084_v29  ;;  %v359_v51 = vld [vmem:[%s2985_s12 + $0xb4] sm:$0xf]  ;;  %442 = vst.msk [vmem:[#allocation2 + $0xb8] sm:$0xf] %vm362_vm2, %v360_v58  ;;  %v828_v30 = vrot.slane %v826_v16, 5  ;;  %v1999_v37 = vshrl.u32 %v1665_v1, 16 }
  0xcc   : > { %v2189_v17 = vpop.f32.mrf.mxu3  ;;  %2687 = vmatmul.msk.bf16.gmra.mxu1 %vm959_vm4, %v2828_v4  ;;  %v805_v33 = vor.u32 %v804_v15, %v801_v13  ;;  %v1969_v56 = vrot.slane %v1968_v41, 4  ;;  %441 = vst.msk [vmem:[#allocation2 + $0xb4] sm:$0xf] %vm362_vm2, %v359_v51  ;;  %v2849_v4 = vld [vmem:[#allocation2 + $0x9c] sm:$0xff]  ;;  %v1979_v5 = vrot.slane %v1978_v49, 4  ;;  %v823_v13 = vshrl.u32 %v481_v60, 16 }
  0xcd   : > { %v2394_v21 = vpack.c.bf16 %v2362_v9, %v2362_v9  ;;  %v2263_v22 = vadd.f32 %v2189_v17, %v1597_v3  ;;  %v1528_v11 = vpop.f32.mrf.mxu2  ;;  %v444_v9 = vsel %vm2987_vm3, %v361_v59, %v443_v2  ;;  %v832_v15 = vshll.u32 %v482_v61, 16  ;;  %v504_v41 = vld [vmem:[#allocation2 + $0xa4] sm:$0x1]  ;;  %v1666_v49 = vld [vmem:[#allocation2 + $0xb0] sm:$0x1] }
  0xce   : > { %445 = vst [vmem:[#allocation2 + $0xbc] sm:$0x1] %v444_v9  ;;  %v1974_v24 = vsel %vm3026_vm7, %v1969_v56, %v3321_v35  ;;  %v1984_v25 = vsel %vm3026_vm7, %v1979_v5, %v1983_v6  ;;  %v825_v29 = vrot.slane %v823_v13, 4  ;;  %v842_v51 = vshll.u32 %v504_v41, 16  ;;  %v446_v61 = vld [vmem:[%s300_s25] sm:$0xf] }
  0xcf   : > { %2427 = vst.msk [vmem:[%s3244_s22 + $0xc] sm:$0xf] %vm2423_vm8, %v2394_v21  ;;  %v2299_v26 = vadd.f32 %v3213_v38, %v2263_v22  ;;  %v1029_v27 = vpop.f32.mrf.mxu0  ;;  %v821_v22 = vsel %vm3026_vm7, %v816_v39, %v3326_v48  ;;  %v3356_v14 = vrot.slane %v832_v15, 5  ;;  %v2005_v60 = vshll.u32 %v1666_v49, 16  ;;  %v2850_v5 = vld [vmem:[#allocation2 + $0xa8] sm:$0xff] }
  0xd0   : > { %v1259_v32 = vadd.f32 %v3284_v31, %v1029_v27  ;;  %v806_v31 = vrot.slane %v805_v33, 4  ;;  %v1989_v27 = vshll.u32 %v1664_v55, 16  ;;  %v1995_v33 = vshll.u32 %v1665_v1, 16  ;;  %450 = vst.msk [vmem:[#allocation2 + $0xc0] sm:$0xf] %vm362_vm2, %v446_v61 }
  0xd1   : > { %v2331_v28 = vmul.f32 0.2, %v2299_v26  ;;  %v3324_v46 = vpop.f32.mrf.mxu1  ;;  %v829_v48 = vor.u32 %v828_v30, %v825_v29  ;;  %v483_v9 = vld [vmem:[#allocation2 + $0xa8] sm:$0xf] }
  0xd2   : > { %v1598_v45 = vadd.f32 %v1525_v53, %v1259_v32  ;;  %v942_v53 = vpack.c.b16 %v922_v43, %v921_v42  ;;  %v811_v21 = vsel %vm3026_vm7, %v806_v31, %v3308_v7  ;;  %v838_v32 = vrot.slane %v836_v19, 4 }
  0xd3   : > { %v2363_v44 = vmax.f32 %v2299_v26, %v2331_v28  ;;  %v1986_v26 = vshrl.u32 %v1664_v55, 16  ;;  %v923_v40 = vunpack.c.l.b16 %v811_v21  ;;  %v924_v43 = vunpack.c.l.b16 %v821_v22  ;;  %v484_v21 = vld [vmem:[#allocation2 + $0xac] sm:$0xf]  ;;  %v1667_v22 = vld [vmem:[#allocation2 + $0xb4] sm:$0xf] }
  0xd4   : > { %v2191_v47 = vpop.f32.mrf.mxu3  ;;  %v2087_v31 = vunpack.c.l.b16 %v1984_v25  ;;  %v839_v50 = vor.u32 %v838_v32, %v3356_v14  ;;  %v3372_v2 = vrot.slane %v829_v48, 4  ;;  %v856_v30 = vshll.u32 %v484_v21, 16 }
  0xd5   : > { %v2395_v52 = vpack.c.bf16 %v2363_v44, %v2363_v44  ;;  %v2264_v54 = vadd.f32 %v2191_v47, %v1598_v45  ;;  %v1530_v0 = vpop.f32.mrf.mxu2  ;;  %v1988_v44 = vrot.slane %v1986_v26, 4  ;;  %v1991_v45 = vrot.slane %v1989_v27, 5  ;;  %v2830_v26 = vld [vmem:[#allocation2 + $0x9c] sm:$0xff] }
  0xd6   : > { %v2086_v47 = vunpack.c.l.b16 %v1974_v24  ;;  %v3375_v6 = vrot.slane %v839_v50, 4  ;;  %v1668_v24 = vld [vmem:[#allocation2 + $0xb8] sm:$0xf]  ;;  %v860_v32 = vshrl.u32 %v484_v21, 16  ;;  %v3404_v48 = vrot.slane %v856_v30, 5 }
  0xd7   : > { %2428 = vst.msk [vmem:[%s3244_s22 + $0x10] sm:$0xf] %vm2423_vm8, %v2395_v52  ;;  %v2300_v62 = vadd.f32 %v3213_v38, %v2264_v54  ;;  %v1032_v63 = vpop.f32.mrf.mxu0  ;;  %v3368_v52 = vrot.slane %v1995_v33, 5  ;;  %v2001_v54 = vrot.slane %v1999_v37, 4  ;;  %v2010_v33 = vshrl.u32 %v1667_v22, 16 }
  0xd8   : > { %v1262_v3 = vadd.f32 %v1261_v10, %v1032_v63  ;;  %v2106_v59 = vpack.c.b16 %v2087_v31, %v2086_v47  ;;  %v2013_v37 = vshll.u32 %v1667_v22, 16  ;;  %v862_v49 = vrot.slane %v860_v32, 4  ;;  %v1669_v61 = vld [vmem:[#allocation2 + $0xbc] sm:$0x1] }
  0xd9   : > { %v2332_v12 = vmul.f32 0.2, %v2300_v62  ;;  %2807 = vmatmul.msk.bf16.gmra.mxu3 %vm959_vm4, %v2105_v36  ;;  %v3341_v20 = vpop.f32.mrf.mxu1  ;;  %v2002_v55 = vor.u32 %v2001_v54, %v3368_v52  ;;  %v2012_v50 = vrot.slane %v2010_v33, 4  ;;  %v505_v54 = vld [vmem:[#allocation2 + $0xb0] sm:$0x1] }
  0xda   : > { %2599 = vmatmul.msk.bf16.gmra.mxu0 %vm959_vm4, %v942_v53  ;;  %v1599_v17 = vadd.f32 %v1528_v11, %v1262_v3  ;;  %2780 = vmatmul.msk.bf16.gmra.mxu2 %vm959_vm4, %v2849_v4  ;;  %v1992_v53 = vor.u32 %v1991_v45, %v1988_v44  ;;  %v447_v3 = vld [vmem:[%s300_s25 + $0x4] sm:$0xf]  ;;  %v943_v4 = vpack.c.b16 %v924_v43, %v923_v40  ;;  %v1670_v33 = vld [vmem:[#allocation2 + $0xc0] sm:$0xf] }
  0xdb   : > { %v2364_v10 = vmax.f32 %v2300_v62, %v2332_v12  ;;  %451 = vst.msk [vmem:[#allocation2 + $0xc4] sm:$0xf] %vm362_vm2, %v447_v3  ;;  %v2003_v27 = vrot.slane %v2002_v55, 4 }
  0xdc   : > { %v2194_v23 = vpop.f32.mrf.mxu3  ;;  %2688 = vmatmul.msk.bf16.gmra.mxu1 %vm959_vm4, %v2829_v18  ;;  %v452_v18 = vld [vmem:[#allocation2 + $0xc8] sm:$0x1]  ;;  %v1993_v19 = vrot.slane %v1992_v53, 4 }
  0xdd   : > { %v2396_v7 = vpack.c.bf16 %v2364_v10, %v2364_v10  ;;  %v2265_v11 = vadd.f32 %v2194_v23, %v1599_v17  ;;  %v1533_v34 = vpop.f32.mrf.mxu2  ;;  %v448_v17 = vld [vmem:[%s300_s25 + $0x8] sm:$0x1]  ;;  %v2007_v10 = vrot.slane %v2005_v60, 5 }
  0xde   : > { %v453_v1 = vsel %vm2987_vm3, %v448_v17, %v452_v18  ;;  %v1998_v43 = vsel %vm3026_vm7, %v1993_v19, %v3368_v52 }
  0xdf   : > { %2429 = vst.msk [vmem:[%s3244_s22 + $0x14] sm:$0xf] %vm2423_vm8, %v2396_v7  ;;  %v2301_v35 = vadd.f32 %v3213_v38, %v2265_v11  ;;  %v1034_v28 = vpop.f32.mrf.mxu0  ;;  %v847_v7 = vshrl.u32 %v483_v9, 16  ;;  %v850_v11 = vshll.u32 %v483_v9, 16  ;;  %v2008_v44 = vsel %vm3026_vm7, %v2003_v27, %v2007_v10 }
  0xe0   : > { %v1264_v42 = vadd.f32 %v3324_v46, %v1034_v28  ;;  %454 = vst [vmem:[#allocation2 + $0xc8] sm:$0x1] %v453_v1  ;;  %v2023_v28 = vshrl.u32 %v1668_v24, 16  ;;  %v2088_v53 = vunpack.c.l.b16 %v1998_v43  ;;  %v2089_v60 = vunpack.c.l.b16 %v2008_v44 }
  0xe1   : > { %v2333_v36 = vmul.f32 0.2, %v2301_v35  ;;  %v3370_v56 = vpop.f32.mrf.mxu1  ;;  %v849_v45 = vrot.slane %v847_v7, 4  ;;  %v2029_v9 = vshll.u32 %v1669_v61, 16 }
  0xe2   : > { %v1600_v46 = vadd.f32 %v1530_v0, %v1264_v42  ;;  %v844_v0 = vrot.slane %v842_v51, 5  ;;  %v2107_v17 = vpack.c.b16 %v2089_v60, %v2088_v53 }
  0xe3   : > { %v2365_v39 = vmax.f32 %v2301_v35, %v2333_v36  ;;  %v2019_v35 = vshll.u32 %v1668_v24, 16  ;;  %v852_v36 = vrot.slane %v850_v11, 5  ;;  %v2831_v11 = vld [vmem:[#allocation2 + $0xa8] sm:$0xff] }
  0xe4   : > { %v2196_v58 = vpop.f32.mrf.mxu3  ;;  %v845_v42 = vsel %vm3026_vm7, %v3375_v6, %v844_v0  ;;  %v866_v6 = vshll.u32 %v505_v54, 16 }
  0xe5   : > { %v2397_v62 = vpack.c.bf16 %v2365_v39, %v2365_v39  ;;  %v2266_v63 = vadd.f32 %v2196_v58, %v1600_v46  ;;  %v1535_v16 = vpop.f32.mrf.mxu2  ;;  %v2015_v39 = vrot.slane %v2013_v37, 5  ;;  %v3407_v52 = vrot.slane %v2019_v35, 5 }
  0xe6   : > { %v2025_v46 = vrot.slane %v2023_v28, 4  ;;  %v868_v22 = vrot.slane %v866_v6, 5 }
  0xe7   : > { %2430 = vst.msk [vmem:[%s3244_s22 + $0x18] sm:$0xf] %vm2423_vm8, %v2397_v62  ;;  %v2302_v12 = vadd.f32 %v3213_v38, %v2266_v63  ;;  %v1037_v13 = vpop.f32.mrf.mxu0  ;;  %v926_v63 = vunpack.c.l.b16 %v845_v42  ;;  %v2016_v0 = vor.u32 %v2015_v39, %v2012_v50 }
  0xe8   : > { %v1267_v15 = vadd.f32 %v3341_v20, %v1037_v13  ;;  %v2026_v55 = vor.u32 %v2025_v46, %v3407_v52 }
  0xe9   : > { %v2334_v23 = vmul.f32 0.2, %v2302_v12  ;;  %2808 = vmatmul.msk.bf16.gmra.mxu3 %vm959_vm4, %v2106_v59  ;;  %v1271_v29 = vpop.f32.mrf.mxu1  ;;  %v853_v59 = vor.u32 %v852_v36, %v849_v45  ;;  %v2017_v24 = vrot.slane %v2016_v0, 4  ;;  %v2034_v45 = vshrl.u32 %v1670_v33, 16 }
  0xea   : > { %2600 = vmatmul.msk.bf16.gmra.mxu0 %vm959_vm4, %v943_v4  ;;  %v1601_v25 = vadd.f32 %v1533_v34, %v1267_v15  ;;  %2781 = vmatmul.msk.bf16.gmra.mxu2 %vm959_vm4, %v2850_v5  ;;  %v835_v34 = vsel %vm3026_vm7, %v3372_v2, %v3356_v14  ;;  %v863_v5 = vor.u32 %v862_v49, %v3404_v48  ;;  %v2037_v36 = vshll.u32 %v1670_v33, 16 }
  0xeb   : > { %v2366_v20 = vmax.f32 %v2302_v12, %v2334_v23  ;;  %v925_v62 = vunpack.c.l.b16 %v835_v34  ;;  %v2851_v23 = vld [vmem:[#allocation2 + $0xb4] sm:$0xff]  ;;  %v2022_v28 = vsel %vm3026_vm7, %v2017_v24, %v3407_v52 }
  0xec   : > { %v2199_v8 = vpop.f32.mrf.mxu3  ;;  %2689 = vmatmul.msk.bf16.gmra.mxu1 %vm959_vm4, %v2830_v26  ;;  %v864_v21 = vrot.slane %v863_v5, 4  ;;  %v2031_v26 = vrot.slane %v2029_v9, 5  ;;  %v2090_v46 = vunpack.c.l.b16 %v2022_v28 }
  0xed   : > { %v2398_v40 = vpack.c.bf16 %v2366_v20, %v2366_v20  ;;  %v2267_v41 = vadd.f32 %v2199_v8, %v1601_v25  ;;  %v1538_v31 = vpop.f32.mrf.mxu2  ;;  %v944_v18 = vpack.c.b16 %v926_v63, %v925_v62  ;;  %v2027_v25 = vrot.slane %v2026_v55, 4  ;;  %v485_v20 = vld [vmem:[#allocation2 + $0xb4] sm:$0xf]  ;;  %v1671_v8 = vld [vmem:[#allocation2 + $0xc4] sm:$0xf] }
  0xee   : > { %v869_v35 = vsel %vm3026_vm7, %v864_v21, %v868_v22  ;;  %v871_v43 = vshrl.u32 %v485_v20, 16  ;;  %v874_v44 = vshll.u32 %v485_v20, 16  ;;  %v2036_v62 = vrot.slane %v2034_v45, 4  ;;  %v1672_v55 = vld [vmem:[#allocation2 + $0xc8] sm:$0x1] }
  0xef   : > { %2431 = vst.msk [vmem:[%s3244_s22 + $0x1c] sm:$0xf] %vm2423_vm8, %v2398_v40  ;;  %v2303_v47 = vadd.f32 %v3213_v38, %v2267_v41  ;;  %v1039_v14 = vpop.f32.mrf.mxu0  ;;  %v2032_v40 = vsel %vm3026_vm7, %v2027_v25, %v2031_v26  ;;  %v486_v41 = vld [vmem:[#allocation2 + $0xb8] sm:$0xf]  ;;  %v928_v52 = vunpack.c.l.b16 %v869_v35  ;;  %v2039_v63 = vrot.slane %v2037_v36, 5  ;;  %v2852_v26 = vld [vmem:[#allocation2 + $0xc0] sm:$0xff] }
  0xf0   : > { %v1269_v51 = vadd.f32 %v3370_v56, %v1039_v14  ;;  %v2047_v14 = vshrl.u32 %v1671_v8, 16  ;;  %v880_v50 = vshll.u32 %v486_v41, 16  ;;  %v2091_v53 = vunpack.c.l.b16 %v2032_v40 }
  0xf1   : > { %v2335_v58 = vmul.f32 0.2, %v2303_v47  ;;  %v1273_v4 = vpop.f32.mrf.mxu1  ;;  %v873_v60 = vrot.slane %v871_v43, 4  ;;  %v876_v61 = vrot.slane %v874_v44, 5 }
  0xf2   : > { %v1602_v3 = vadd.f32 %v1535_v16, %v1269_v51  ;;  %v854_v16 = vrot.slane %v853_v59, 4  ;;  %v884_v51 = vshrl.u32 %v486_v41, 16 }
  0xf3   : > { %v2367_v2 = vmax.f32 %v2303_v47, %v2335_v58  ;;  %v2043_v47 = vshll.u32 %v1671_v8, 16 }
  0xf4   : > { %v2201_v56 = vpop.f32.mrf.mxu3  ;;  %v886_v0 = vrot.slane %v884_v51, 4 }
  0xf5   : > { %v2399_v12 = vpack.c.bf16 %v2367_v2, %v2367_v2  ;;  %v2268_v13 = vadd.f32 %v2201_v56, %v1602_v3  ;;  %v1540_v10 = vpop.f32.mrf.mxu2  ;;  %v2045_v59 = vrot.slane %v2043_v47, 5  ;;  %v2049_v2 = vrot.slane %v2047_v14, 4 }
  0xf6   : > { %v882_v56 = vrot.slane %v880_v50, 5 }
  0xf7   : > { %2432 = vst.msk [vmem:[%s3244_s22 + $0x20] sm:$0xf] %vm2423_vm8, %v2399_v12  ;;  %v2304_v15 = vadd.f32 %v3213_v38, %v2268_v13  ;;  %v1042_v19 = vpop.f32.mrf.mxu0 }
  0xf8   : > { %v1272_v1 = vadd.f32 %v1271_v29, %v1042_v19  ;;  %v859_v29 = vsel %vm3026_vm7, %v854_v16, %v3404_v48  ;;  %v2050_v19 = vor.u32 %v2049_v2, %v2045_v59  ;;  %v2053_v16 = vshll.u32 %v1672_v55, 16 }
  0xf9   : > { %v2336_v27 = vmul.f32 0.2, %v2304_v15  ;;  %2809 = vmatmul.msk.bf16.gmra.mxu3 %vm959_vm4, %v2107_v17  ;;  %v1276_v32 = vpop.f32.mrf.mxu1  ;;  %v927_v39 = vunpack.c.l.b16 %v859_v29  ;;  %v2108_v17 = vpack.c.b16 %v2091_v53, %v2090_v46 }
  0xfa   : > { %2601 = vmatmul.msk.bf16.gmra.mxu0 %vm959_vm4, %v944_v18  ;;  %v1603_v7 = vadd.f32 %v1538_v31, %v1272_v1  ;;  %2782 = vmatmul.msk.bf16.gmra.mxu2 %vm959_vm4, %v2851_v23  ;;  %v887_v23 = vor.u32 %v886_v0, %v882_v56  ;;  %v2055_v33 = vrot.slane %v2053_v16, 5 }
  0xfb   : > { %v2368_v30 = vmax.f32 %v2304_v15, %v2336_v27  ;;  %v945_v18 = vpack.c.b16 %v928_v52, %v927_v39  ;;  %v2040_v15 = vor.u32 %v2039_v63, %v2036_v62 }
  0xfc   : > { %v2204_v37 = vpop.f32.mrf.mxu3  ;;  %2690 = vmatmul.msk.bf16.gmra.mxu1 %vm959_vm4, %v2831_v11  ;;  %v2832_v11 = vld [vmem:[#allocation2 + $0xb4] sm:$0xff]  ;;  %v888_v35 = vrot.slane %v887_v23, 4 }
  0xfd   : > { %v2400_v34 = vpack.c.bf16 %v2368_v30, %v2368_v30  ;;  %v2269_v42 = vadd.f32 %v2204_v37, %v1603_v7  ;;  %v1543_v49 = vpop.f32.mrf.mxu2  ;;  %v2041_v20 = vrot.slane %v2040_v15, 4  ;;  %v2051_v30 = vrot.slane %v2050_v19, 4 }
  0xff   : > { %2433 = vst.msk [vmem:[%s3244_s22 + $0x24] sm:$0xf] %vm2423_vm8, %v2400_v34  ;;  %v2305_v31 = vadd.f32 %v3213_v38, %v2269_v42  ;;  %v1044_v48 = vpop.f32.mrf.mxu0  ;;  %v2046_v34 = vsel %vm3026_vm7, %v2041_v20, %v2045_v59  ;;  %v2056_v42 = vsel %vm3026_vm7, %v2051_v30, %v2055_v33 }
 0x100   : > { %v1274_v54 = vadd.f32 %v1273_v4, %v1044_v48  ;;  %v506_v4 = vld [vmem:[#allocation2 + $0xbc] sm:$0x1]  ;;  %v2092_v48 = vunpack.c.l.b16 %v2046_v34 }
 0x101   : > { %v2337_v58 = vmul.f32 0.2, %v2305_v31  ;;  %v1278_v6 = vpop.f32.mrf.mxu1  ;;  %v890_v24 = vshll.u32 %v506_v4, 16 }
 0x102   : > { %v1604_v5 = vadd.f32 %v1540_v10, %v1274_v54  ;;  %v877_v10 = vor.u32 %v876_v61, %v873_v60 }
 0x103   : > { %v2369_v3 = vmax.f32 %v2305_v31, %v2337_v58  ;;  %v892_v28 = vrot.slane %v890_v24, 5 }
 0x104   : > { %v2206_v9 = vpop.f32.mrf.mxu3  ;;  %v878_v29 = vrot.slane %v877_v10, 4 }
 0x105   : > { %v2401_v12 = vpack.c.bf16 %v2369_v3, %v2369_v3  ;;  %v2270_v13 = vadd.f32 %v2206_v9, %v1604_v5  ;;  %v1545_v1 = vpop.f32.mrf.mxu2  ;;  %v893_v47 = vsel %vm3026_vm7, %v888_v35, %v892_v28 }
 0x106   : > { %v883_v36 = vsel %vm3026_vm7, %v878_v29, %v882_v56  ;;  %v930_v51 = vunpack.c.l.b16 %v893_v47 }
 0x107   : > { %2434 = vst.msk [vmem:[%s3244_s22 + $0x28] sm:$0xf] %vm2423_vm8, %v2401_v12  ;;  %v2306_v21 = vadd.f32 %v3213_v38, %v2270_v13  ;;  %v1047_v22 = vpop.f32.mrf.mxu0  ;;  %v929_v50 = vunpack.c.l.b16 %v883_v36 }
 0x108   : > { %v1277_v25 = vadd.f32 %v1276_v32, %v1047_v22 }
 0x109   : > { %v2338_v27 = vmul.f32 0.2, %v2306_v21  ;;  %2810 = vmatmul.msk.bf16.gmra.mxu3 %vm959_vm4, %v2108_v17  ;;  %v1281_v37 = vpop.f32.mrf.mxu1  ;;  %v946_v61 = vpack.c.b16 %v930_v51, %v929_v50 }
 0x10a   : > { %2602 = vmatmul.msk.bf16.gmra.mxu0 %vm959_vm4, %v945_v18  ;;  %v1605_v7 = vadd.f32 %v1543_v49, %v1277_v25  ;;  %2783 = vmatmul.msk.bf16.gmra.mxu2 %vm959_vm4, %v2852_v26  ;;  %v2093_v49 = vunpack.c.l.b16 %v2056_v42 }
 0x10b   : > { %v2370_v8 = vmax.f32 %v2306_v21, %v2338_v27 }
 0x10c   : > { %v2209_v40 = vpop.f32.mrf.mxu3  ;;  %2691 = vmatmul.msk.bf16.gmra.mxu1 %vm959_vm4, %v2832_v11  ;;  %v2109_v60 = vpack.c.b16 %v2093_v49, %v2092_v48 }
 0x10d   : > { %v2402_v32 = vpack.c.bf16 %v2370_v8, %v2370_v8  ;;  %v2271_v41 = vadd.f32 %v2209_v40, %v1605_v7  ;;  %v1548_v45 = vpop.f32.mrf.mxu2 }
 0x10f   : > { %2435 = vst.msk [vmem:[%s3244_s22 + $0x2c] sm:$0xf] %vm2423_vm8, %v2402_v32  ;;  %v2307_v43 = vadd.f32 %v3213_v38, %v2271_v41  ;;  %v1049_v44 = vpop.f32.mrf.mxu0 }
 0x110   : > { %v1279_v14 = vadd.f32 %v1278_v6, %v1049_v44 }
 0x111   : > { %v2339_v31 = vmul.f32 0.2, %v2307_v43  ;;  %v1283_v52 = vpop.f32.mrf.mxu1 }
 0x112   : > { %v1606_v39 = vadd.f32 %v1545_v1, %v1279_v14 }
 0x113   : > { %v2371_v54 = vmax.f32 %v2307_v43, %v2339_v31 }
 0x114   : > { %v2211_v46 = vpop.f32.mrf.mxu3 }
 0x115   : > { %v2403_v58 = vpack.c.bf16 %v2371_v54, %v2371_v54  ;;  %v2272_v53 = vadd.f32 %v2211_v46, %v1606_v39  ;;  %v1550_v63 = vpop.f32.mrf.mxu2 }
 0x117   : > { %2436 = vst.msk [vmem:[%s3244_s22 + $0x30] sm:$0xf] %vm2423_vm8, %v2403_v58  ;;  %v2308_v57 = vadd.f32 %v3213_v38, %v2272_v53  ;;  %v1052_v62 = vpop.f32.mrf.mxu0  ;;  %v3459_v38 = vld [vmem:[%s3527_s3] ss:$0 sm:$0xff] }
 0x118   : > { %v1282_v59 = vadd.f32 %v1281_v37, %v1052_v62 }
 0x119   : > { %v2340_v2 = vmul.f32 0.2, %v2308_v57  ;;  %2811 = vmatmul.msk.bf16.gmra.mxu3 %vm959_vm4, %v2109_v60  ;;  %v1286_v6 = vpop.f32.mrf.mxu1 }
 0x11a   : > { %2603 = vmatmul.msk.bf16.gmra.mxu0 %vm959_vm4, %v946_v61  ;;  %v1607_v3 = vadd.f32 %v1548_v45, %v1282_v59 }
 0x11b   : > { %v2372_v5 = vmax.f32 %v2308_v57, %v2340_v2 }
 0x11c   : > { %v2214_v56 = vpop.f32.mrf.mxu3 }
 0x11d   : > { %v2404_v0 = vpack.c.bf16 %v2372_v5, %v2372_v5  ;;  %v2273_v55 = vadd.f32 %v2214_v56, %v1607_v3  ;;  %v1553_v12 = vpop.f32.mrf.mxu2 }
 0x11f   : > { %2437 = vst.msk [vmem:[%s3244_s22 + $0x34] sm:$0xf] %vm2423_vm8, %v2404_v0  ;;  %v2309_v9 = vadd.f32 %v3459_v38, %v2273_v55  ;;  %v1054_v4 = vpop.f32.mrf.mxu0 }
 0x120   : > { %v1284_v13 = vadd.f32 %v1283_v52, %v1054_v4 }
 0x121   : > { %v2341_v17 = vmul.f32 0.2, %v2309_v9  ;;  %v1288_v19 = vpop.f32.mrf.mxu1 }
 0x122   : > { %v1608_v15 = vadd.f32 %v1550_v63, %v1284_v13 }
 0x123   : > { %v2373_v18 = vmax.f32 %v2309_v9, %v2341_v17 }
 0x124   : > { %v2216_v16 = vpop.f32.mrf.mxu3 }
 0x125   : > { %v2405_v21 = vpack.c.bf16 %v2373_v18, %v2373_v18  ;;  %v2274_v22 = vadd.f32 %v2216_v16, %v1608_v15  ;;  %v1555_v23 = vpop.f32.mrf.mxu2 }
 0x127   : > { %2438 = vst.msk [vmem:[%s3244_s22 + $0x38] sm:$0xf] %vm2423_vm8, %v2405_v21  ;;  %v2310_v1 = vadd.f32 %v3459_v38, %v2274_v22  ;;  %v1057_v10 = vpop.f32.mrf.mxu0 }
 0x128   : > { %v1287_v24 = vadd.f32 %v1286_v6, %v1057_v10 }
 0x129   : > { %v2342_v25 = vmul.f32 0.2, %v2310_v1  ;;  %v1291_v7 = vpop.f32.mrf.mxu1 }
 0x12a   : > { %v1609_v26 = vadd.f32 %v1553_v12, %v1287_v24 }
 0x12b   : > { %v2374_v27 = vmax.f32 %v2310_v1, %v2342_v25 }
 0x12c   : > { %v2219_v11 = vpop.f32.mrf.mxu3 }
 0x12d   : > { %v2406_v20 = vpack.c.bf16 %v2374_v27, %v2374_v27  ;;  %v2275_v30 = vadd.f32 %v2219_v11, %v1609_v26  ;;  %v1558_v37 = vpop.f32.mrf.mxu2 }
 0x12f   : > { %2439 = vst.msk [vmem:[%s3244_s22 + $0x3c] sm:$0xf] %vm2423_vm8, %v2406_v20  ;;  %v2311_v33 = vadd.f32 %v3459_v38, %v2275_v30  ;;  %v1059_v8 = vpop.f32.mrf.mxu0 }
 0x130   : > { %v1289_v29 = vadd.f32 %v1288_v19, %v1059_v8 }
 0x131   : > { %v2343_v35 = vmul.f32 0.2, %v2311_v33  ;;  %v1293_v32 = vpop.f32.mrf.mxu1 }
 0x132   : > { %v1610_v40 = vadd.f32 %v1555_v23, %v1289_v29 }
 0x133   : > { %v2375_v28 = vmax.f32 %v2311_v33, %v2343_v35 }
 0x134   : > { %v2221_v41 = vpop.f32.mrf.mxu3 }
 0x135   : > { %v2407_v34 = vpack.c.bf16 %v2375_v28, %v2375_v28  ;;  %v2276_v42 = vadd.f32 %v2221_v41, %v1610_v40  ;;  %v1560_v45 = vpop.f32.mrf.mxu2 }
 0x137   : > { %2440 = vst.msk [vmem:[%s3244_s22 + $0x40] sm:$0xf] %vm2423_vm8, %v2407_v34  ;;  %v2312_v43 = vadd.f32 %v3459_v38, %v2276_v42  ;;  %v1062_v44 = vpop.f32.mrf.mxu0 }
 0x138   : > { %v1292_v36 = vadd.f32 %v1291_v7, %v1062_v44 }
 0x139   : > { %v2344_v47 = vmul.f32 0.2, %v2312_v43  ;;  %v1296_v48 = vpop.f32.mrf.mxu1 }
 0x13a   : > { %v1611_v14 = vadd.f32 %v1558_v37, %v1292_v36 }
 0x13b   : > { %v2376_v31 = vmax.f32 %v2312_v43, %v2344_v47 }
 0x13c   : > { %v2224_v49 = vpop.f32.mrf.mxu3 }
 0x13d   : > { %v2408_v50 = vpack.c.bf16 %v2376_v31, %v2376_v31  ;;  %v2277_v51 = vadd.f32 %v2224_v49, %v1611_v14  ;;  %v1563_v52 = vpop.f32.mrf.mxu2 }
 0x13f   : > { %2441 = vst.msk [vmem:[%s3244_s22 + $0x44] sm:$0xf] %vm2423_vm8, %v2408_v50  ;;  %v2313_v54 = vadd.f32 %v3459_v38, %v2277_v51  ;;  %v1064_v39 = vpop.f32.mrf.mxu0 }
 0x140   : > { %v1294_v46 = vadd.f32 %v1293_v32, %v1064_v39 }
 0x141   : > { %v2345_v58 = vmul.f32 0.2, %v2313_v54  ;;  %v1298_v61 = vpop.f32.mrf.mxu1 }
 0x142   : > { %v1612_v60 = vadd.f32 %v1560_v45, %v1294_v46 }
 0x143   : > { %v2377_v53 = vmax.f32 %v2313_v54, %v2345_v58 }
 0x144   : > { %v2226_v57 = vpop.f32.mrf.mxu3 }
 0x145   : > { %v2409_v62 = vpack.c.bf16 %v2377_v53, %v2377_v53  ;;  %v2278_v63 = vadd.f32 %v2226_v57, %v1612_v60  ;;  %v1565_v3 = vpop.f32.mrf.mxu2 }
 0x147   : > { %2442 = vst.msk [vmem:[%s3244_s22 + $0x48] sm:$0xf] %vm2423_vm8, %v2409_v62  ;;  %v2314_v59 = vadd.f32 %v3459_v38, %v2278_v63  ;;  %v1067_v2 = vpop.f32.mrf.mxu0 }
 0x148   : > { %v1297_v5 = vadd.f32 %v1296_v48, %v1067_v2 }
 0x149   : > { %v2346_v6 = vmul.f32 0.2, %v2314_v59  ;;  %v1301_v55 = vpop.f32.mrf.mxu1 }
 0x14a   : > { %v1613_v56 = vadd.f32 %v1563_v52, %v1297_v5 }
 0x14b   : > { %v2378_v0 = vmax.f32 %v2314_v59, %v2346_v6 }
 0x14c   : > { %v2229_v9 = vpop.f32.mrf.mxu3 }
 0x14d   : > { %v2410_v4 = vpack.c.bf16 %v2378_v0, %v2378_v0  ;;  %v2279_v12 = vadd.f32 %v2229_v9, %v1613_v56  ;;  %v1568_v18 = vpop.f32.mrf.mxu2 }
 0x14f   : > { %2443 = vst.msk [vmem:[%s3244_s22 + $0x4c] sm:$0xf] %vm2423_vm8, %v2410_v4  ;;  %v2315_v13 = vadd.f32 %v3459_v38, %v2279_v12  ;;  %v1069_v17 = vpop.f32.mrf.mxu0 }
 0x150   : > { %v1299_v15 = vadd.f32 %v1298_v61, %v1069_v17 }
 0x151   : > { %v2347_v19 = vmul.f32 0.2, %v2315_v13  ;;  %v1303_v22 = vpop.f32.mrf.mxu1 }
 0x152   : > { %v1614_v21 = vadd.f32 %v1565_v3, %v1299_v15 }
 0x153   : > { %v2379_v16 = vmax.f32 %v2315_v13, %v2347_v19 }
 0x154   : > { %v2231_v1 = vpop.f32.mrf.mxu3 }
 0x155   : > { %v2411_v10 = vpack.c.bf16 %v2379_v16, %v2379_v16  ;;  %v2280_v23 = vadd.f32 %v2231_v1, %v1614_v21  ;;  %v1570_v26 = vpop.f32.mrf.mxu2 }
 0x157   : > { %2444 = vst.msk [vmem:[%s3244_s22 + $0x50] sm:$0xf] %vm2423_vm8, %v2411_v10  ;;  %v2316_v24 = vadd.f32 %v3459_v38, %v2280_v23  ;;  %v1072_v25 = vpop.f32.mrf.mxu0 }
 0x158   : > { %v1302_v27 = vadd.f32 %v1301_v55, %v1072_v25 }
 0x159   : > { %v2348_v7 = vmul.f32 0.2, %v2316_v24  ;;  %v1306_v30 = vpop.f32.mrf.mxu1 }
 0x15a   : > { %v1615_v11 = vadd.f32 %v1568_v18, %v1302_v27 }
 0x15b   : > { %v2380_v20 = vmax.f32 %v2316_v24, %v2348_v7 }
 0x15c   : > { %v2234_v33 = vpop.f32.mrf.mxu3 }
 0x15d   : > { %v2412_v8 = vpack.c.bf16 %v2380_v20, %v2380_v20  ;;  %v2281_v37 = vadd.f32 %v2234_v33, %v1615_v11  ;;  %v1573_v28 = vpop.f32.mrf.mxu2 }
 0x15f   : > { %2445 = vst.msk [vmem:[%s3244_s22 + $0x54] sm:$0xf] %vm2423_vm8, %v2412_v8  ;;  %v2317_v29 = vadd.f32 %v3459_v38, %v2281_v37  ;;  %v1074_v35 = vpop.f32.mrf.mxu0 }
 0x160   : > { %v1304_v40 = vadd.f32 %v1303_v22, %v1074_v35 }
 0x161   : > { %v2349_v32 = vmul.f32 0.2, %v2317_v29  ;;  %v1308_v42 = vpop.f32.mrf.mxu1 }
 0x162   : > { %v1616_v34 = vadd.f32 %v1570_v26, %v1304_v40 }
 0x163   : > { %v2381_v41 = vmax.f32 %v2317_v29, %v2349_v32 }
 0x164   : > { %v2236_v43 = vpop.f32.mrf.mxu3 }
 0x165   : > { %v2413_v44 = vpack.c.bf16 %v2381_v41, %v2381_v41  ;;  %v2282_v45 = vadd.f32 %v2236_v43, %v1616_v34  ;;  %v1575_v14 = vpop.f32.mrf.mxu2 }
 0x167   : > { %2446 = vst.msk [vmem:[%s3244_s22 + $0x58] sm:$0xf] %vm2423_vm8, %v2413_v44  ;;  %v2318_v36 = vadd.f32 %v3459_v38, %v2282_v45  ;;  %v1077_v47 = vpop.f32.mrf.mxu0 }
 0x168   : > { %v1307_v31 = vadd.f32 %v1306_v30, %v1077_v47 }
 0x169   : > { %v2350_v48 = vmul.f32 0.2, %v2318_v36  ;;  %v1311_v52 = vpop.f32.mrf.mxu1 }
 0x16a   : > { %v1617_v49 = vadd.f32 %v1573_v28, %v1307_v31 }
 0x16b   : > { %v2382_v50 = vmax.f32 %v2318_v36, %v2350_v48 }
 0x16c   : > { %v2239_v51 = vpop.f32.mrf.mxu3 }
 0x16d   : > { %v2414_v54 = vpack.c.bf16 %v2382_v50, %v2382_v50  ;;  %v2283_v39 = vadd.f32 %v2239_v51, %v1617_v49  ;;  %v1578_v60 = vpop.f32.mrf.mxu2 }
 0x16f   : > { %2447 = vst.msk [vmem:[%s3244_s22 + $0x5c] sm:$0xf] %vm2423_vm8, %v2414_v54  ;;  %v2319_v46 = vadd.f32 %v3459_v38, %v2283_v39  ;;  %v1079_v58 = vpop.f32.mrf.mxu0 }
 0x170   : > { %v1309_v53 = vadd.f32 %v1308_v42, %v1079_v58 }
 0x171   : > { %v2351_v61 = vmul.f32 0.2, %v2319_v46  ;;  %v1313_v6 = vpop.f32.mrf.mxu1 }
 0x172   : > { %v1618_v62 = vadd.f32 %v1575_v14, %v1309_v53 }
 0x173   : > { %v2383_v57 = vmax.f32 %v2319_v46, %v2351_v61 }
 0x174   : > { %v2241_v63 = vpop.f32.mrf.mxu3 }
 0x175   : > { %v2415_v59 = vpack.c.bf16 %v2383_v57, %v2383_v57  ;;  %v2284_v2 = vadd.f32 %v2241_v63, %v1618_v62  ;;  %v1580_v55 = vpop.f32.mrf.mxu2 }
 0x177   : > { %2448 = vst.msk [vmem:[%s3244_s22 + $0x60] sm:$0xf] %vm2423_vm8, %v2415_v59  ;;  %v2320_v3 = vadd.f32 %v3459_v38, %v2284_v2  ;;  %v1082_v5 = vpop.f32.mrf.mxu0 }
 0x178   : > { %v1312_v56 = vadd.f32 %v1311_v52, %v1082_v5 }
 0x179   : > { %v2352_v0 = vmul.f32 0.2, %v2320_v3  ;;  %v1316_v21 = vpop.f32.mrf.mxu1 }
 0x17a   : > { %v1619_v9 = vadd.f32 %v1578_v60, %v1312_v56 }
 0x17b   : > { %v2384_v4 = vmax.f32 %v2320_v3, %v2352_v0 }
 0x17c   : > { %v2244_v12 = vpop.f32.mrf.mxu3 }
 0x17d   : > { %v2416_v13 = vpack.c.bf16 %v2384_v4, %v2384_v4  ;;  %v2285_v17 = vadd.f32 %v2244_v12, %v1619_v9  ;;  %v1583_v10 = vpop.f32.mrf.mxu2 }
 0x17f   : > { %2449 = vst.msk [vmem:[%s3244_s22 + $0x64] sm:$0xf] %vm2423_vm8, %v2416_v13  ;;  %v2321_v18 = vadd.f32 %v3459_v38, %v2285_v17  ;;  %v1084_v15 = vpop.f32.mrf.mxu0 }
 0x180   : > { %v1314_v19 = vadd.f32 %v1313_v6, %v1084_v15 }
 0x181   : > { %v2353_v16 = vmul.f32 0.2, %v2321_v18  ;;  %v1318_v33 = vpop.f32.mrf.mxu1 }
 0x182   : > { %v1620_v1 = vadd.f32 %v1580_v55, %v1314_v19 }
 0x183   : > { %v2385_v22 = vmax.f32 %v2321_v18, %v2353_v16 }
 0x184   : > { %v2246_v23 = vpop.f32.mrf.mxu3 }
 0x185   : > { %v2417_v24 = vpack.c.bf16 %v2385_v22, %v2385_v22  ;;  %v2286_v25 = vadd.f32 %v2246_v23, %v1620_v1  ;;  %v1585_v35 = vpop.f32.mrf.mxu2 }
 0x187   : > { %2450 = vst.msk [vmem:[%s3244_s22 + $0x68] sm:$0xf] %vm2423_vm8, %v2417_v24  ;;  %v2322_v26 = vadd.f32 %v3459_v38, %v2286_v25  ;;  %v1087_v27 = vpop.f32.mrf.mxu0 }
 0x188   : > { %v1317_v7 = vadd.f32 %v1316_v21, %v1087_v27 }
 0x189   : > { %v2354_v11 = vmul.f32 0.2, %v2322_v26  ;;  %v1321_v45 = vpop.f32.mrf.mxu1 }
 0x18a   : > { %v1621_v20 = vadd.f32 %v1583_v10, %v1317_v7 }
 0x18b   : > { %v2386_v30 = vmax.f32 %v2322_v26, %v2354_v11 }
 0x18c   : > { %v2249_v8 = vpop.f32.mrf.mxu3 }
 0x18d   : > { %v2418_v37 = vpack.c.bf16 %v2386_v30, %v2386_v30  ;;  %v2287_v29 = vadd.f32 %v2249_v8, %v1621_v20  ;;  %v1588_v31 = vpop.f32.mrf.mxu2 }
 0x18f   : > { %2451 = vst.msk [vmem:[%s3244_s22 + $0x6c] sm:$0xf] %vm2423_vm8, %v2418_v37  ;;  %v2323_v28 = vadd.f32 %v3459_v38, %v2287_v29  ;;  %v1089_v40 = vpop.f32.mrf.mxu0 }
 0x190   : > { %v1319_v32 = vadd.f32 %v1318_v33, %v1089_v40 }
 0x191   : > { %v2355_v41 = vmul.f32 0.2, %v2323_v28  ;;  %v1323_v46 = vpop.f32.mrf.mxu1 }
 0x192   : > { %v1622_v42 = vadd.f32 %v1585_v35, %v1319_v32 }
 0x193   : > { %v2387_v34 = vmax.f32 %v2323_v28, %v2355_v41 }
 0x194   : > { %v2251_v43 = vpop.f32.mrf.mxu3 }
 0x195   : > { %v2419_v44 = vpack.c.bf16 %v2387_v34, %v2387_v34  ;;  %v2288_v36 = vadd.f32 %v2251_v43, %v1622_v42  ;;  %v1590_v57 = vpop.f32.mrf.mxu2 }
 0x197   : > { %2452 = vst.msk [vmem:[%s3244_s22 + $0x70] sm:$0xf] %vm2423_vm8, %v2419_v44  ;;  %v2324_v47 = vadd.f32 %v3459_v38, %v2288_v36  ;;  %v1092_v14 = vpop.f32.mrf.mxu0 }
 0x198   : > { %v1322_v48 = vadd.f32 %v1321_v45, %v1092_v14 }
 0x199   : > { %v2356_v49 = vmul.f32 0.2, %v2324_v47 }
 0x19a   : > { %v1623_v50 = vadd.f32 %v1588_v31, %v1322_v48 }
 0x19b   : > { %v2388_v51 = vmax.f32 %v2324_v47, %v2356_v49 }
 0x19c   : > { %v2254_v54 = vpop.f32.mrf.mxu3 }
 0x19d   : > { %v2420_v39 = vpack.c.bf16 %v2388_v51, %v2388_v51  ;;  %v2289_v52 = vadd.f32 %v2254_v54, %v1623_v50 }
 0x19f   : > { %2453 = vst.msk [vmem:[%s3244_s22 + $0x74] sm:$0xf] %vm2423_vm8, %v2420_v39  ;;  %v2325_v58 = vadd.f32 %v3459_v38, %v2289_v52  ;;  %v1094_v53 = vpop.f32.mrf.mxu0 }
 0x1a0   : > { %v1324_v60 = vadd.f32 %v1323_v46, %v1094_v53 }
 0x1a1   : > { %v2357_v61 = vmul.f32 0.2, %v2325_v58 }
 0x1a2   : > { %v1624_v63 = vadd.f32 %v1590_v57, %v1324_v60 }
 0x1a3   : > { %v2389_v62 = vmax.f32 %v2325_v58, %v2357_v61 }
 0x1a4   : > { %v2256_v59 = vpop.f32.mrf.mxu3 }
 0x1a5   : > { %v2421_v2 = vpack.c.bf16 %v2389_v62, %v2389_v62  ;;  %v2290_v3 = vadd.f32 %v2256_v59, %v1624_v63 }
 0x1a7   : > { %2454 = vst.msk [vmem:[%s3244_s22 + $0x78] sm:$0xf] %vm2423_vm8, %v2421_v2  ;;  %v2326_v5 = vadd.f32 %v3459_v38, %v2290_v3 }
 0x1a9   : > { %v2358_v6 = vmul.f32 0.2, %v2326_v5 }
 0x1ab   : > { %v2390_v56 = vmax.f32 %v2326_v5, %v2358_v6 }
 0x1ad   : > { %v2422_v0 = vpack.c.bf16 %v2390_v56, %v2390_v56 }
 0x1af   : > { %2455 = vst.msk [vmem:[%s3244_s22 + $0x7c] sm:$0xf] %vm2423_vm8, %v2422_v0 }
 0x1b0 PF: > { %s14_s17 = sadd.s32 1, %s2908_s17   ;;  %s3533_s15 = smov %s2904_s16 }
 0x1b1   : > { %p11_p5 = scmp.ge.s32.totalorder %s14_s17, 4   ;;  %s3534_s16 = smov %s3536_s18 }
 0x1b3   :  { %13 = sbr.rel (!%p11_p5) target bundleno = 2 (0x2), region = 74 }

// kernel: fc_discriminator_forward.6
= control target key start
LH: loop header
LB: loop body
LE: loop exit
PB: predicated region body
PF: predicated region fallthrough
CT: control target
= control target key end

     0   :  { %s1308_s15 = smov 0   ;;  %s1310_s16 = smov 0   ;;  %s1519_s0 = inlined_call_operand.vmem [shape: bf16[2,9,9,32], index: 0, kind: input, shape index: {}, may-alias: {0,1}]   ;;  %s1520_s1 = inlined_call_operand.vmem [shape: bf16[2,9,9,32], index: 1, kind: input, shape index: {}, may-alias: {0,1}]   ;;  %s1521_s2 = inlined_call_operand.vmem [shape: bf16[4,32,16], index: 2, kind: input, shape index: {}]   ;;  %s1522_s3 = inlined_call_operand.vmem [shape: f32[1,16], index: 3, kind: input, shape index: {}]   ;;  %s1523_s4 = inlined_call_operand.vmem [shape: bf16[2,64,16], index: 4, kind: output, shape index: {}]  }
   0x1   :  { %s1312_s17 = smov 0  }
   0x2 LB: > { %s26_s18 = sadd.s32 1, %s1277_s16  ;;  %p1113_p0 = scmp.ge.s32.totalorder %s1281_s17, 1  ;;  %s1281_s17 = sphi %s1312_s17, %s14_s17   ;;  %s1277_s16 = sphi %s1310_s16, %s1529_s16   ;;  %s1273_s15 = sphi %s1308_s15, %s1528_s15  }
   0x3   : > { %p28_p1 = scmp.ge.s32.totalorder %s26_s18, 2  ;;  %p218_p2 = scmp.lt.s32.totalorder %s1281_s17, 3 }
   0x5   : > { %s1531_s18 = smov (%p28_p1, %s26_s18), 0  ;;  %p219_p3 = pnand %p1113_p0, %p218_p2 }
   0x6   : > { %p275_p4 = scmp.lt.s32.totalorder (!%p219_p3), %s1273_s15, 1 }
   0x7   : > { %222 = sbr.rel (%p219_p3) target bundleno = 245 (0xf5), region = 36 }
   0xc   : > { %v1228_v0 = vld [vmem:[%s1521_s2 + $0x28] sm:$0xff]  ;;  %v1222_v2 = vld [vmem:[%s1521_s2 + $0x18] sm:$0xff]  ;;  %v1227_v4 = vld [vmem:[%s1521_s2 + $0x20] sm:$0xff]  ;;  %s1533_s15 = smov (!%p275_p4, %s1273_s15), 1  ;;  %vm332_vm0 = vcmask 253952   ;;  %vm330_vm2 = vcmask 257024  }
   0xd   : > { %v1220_v1 = vld [vmem:[%s1521_s2 + $0x8] sm:$0xff]  ;;  %v1230_v3 = vld [vmem:[%s1521_s2 + $0x38] sm:$0xff]  ;;  %716 = vmatpush.bf16.msra.mxu2 %v1228_v0  ;;  %v1219_v5 = vld [vmem:[%s1521_s2] sm:$0xff]  ;;  %vm333_vm1 = vsmask.f32 256  ;;  %556 = vmatpush.bf16.msra.mxu0 %v1222_v2  ;;  %s1231_s9 = smul.u32 72, %s1533_s15 }
   0xe   : > { %629 = vmatpush.bf16.msra.mxu1 %v1220_v1  ;;  %922 = vmatpush.bf16.msra.mxu3 %v1230_v3  ;;  %v1221_v6 = vld [vmem:[%s1521_s2 + $0x10] sm:$0xff]  ;;  %vm1353_vm3 = vmand %vm332_vm0, %vm333_vm1  ;;  %v335_v9 = vld [vmem:[#allocation2 + $0x4] sm:$0x1]  ;;  %vm537_vm4 = vcmask 261120   ;;  %vm393_vm5 = vsmask.f32 3328 }
   0xf   : > { %v1229_v7 = vld [vmem:[%s1521_s2 + $0x30] sm:$0xff]  ;;  %s1362_s12 = scalar_lea.vmem %s1519_s0, %s1231_s9  ;;  %v339_v10 = vld [vmem:[#allocation2 + $0xc] sm:$0x1]  ;;  %vm394_vm6 = vsmask.f32 7440  ;;  %s1213_s13 = sadd.s32 64, %s1231_s9 }
  0x10   : > { %v343_v11 = vld [vmem:[#allocation2 + $0x14] sm:$0x1]  ;;  %v316_v12 = vld [vmem:[%s1362_s12 + $0x8] sm:$0xf]  ;;  %v318_v13 = vld [vmem:[%s1362_s12 + $0x10] sm:$0xf]  ;;  %s300_s20 = scalar_lea.vmem %s1520_s1, %s1213_s13 }
  0x11   : > { %717 = vmatpush.bf16.msra.mxu2 %v1227_v4  ;;  %v314_v14 = vld [vmem:[%s1362_s12] sm:$0xf]  ;;  %557 = vmatpush.bf16.msra.mxu0 %v1221_v6  ;;  %338 = vst.msk [vmem:[#allocation2 + $0x8] sm:$0xf] %vm330_vm2, %v316_v12  ;;  %v315_v15 = vld [vmem:[%s1362_s12 + $0x4] sm:$0x1]  ;;  %vm1391_vm7 = vmor %vm393_vm5, %vm394_vm6 }
  0x12   : > { %630 = vmatpush.bf16.msra.mxu1 %v1219_v5  ;;  %923 = vmatpush.bf16.msra.mxu3 %v1229_v7  ;;  %v317_v16 = vld [vmem:[%s1362_s12 + $0xc] sm:$0x1]  ;;  %342 = vst.msk [vmem:[#allocation2 + $0x10] sm:$0xf] %vm330_vm2, %v318_v13  ;;  %v336_v17 = vsel %vm1353_vm3, %v315_v15, %v335_v9  ;;  %v319_v19 = vld [vmem:[%s1362_s12 + $0x14] sm:$0x1] }
  0x13   : > { %v340_v18 = vsel %vm1353_vm3, %v317_v16, %v339_v10  ;;  %331 = vst.msk [vmem:[#allocation2] sm:$0xf] %vm330_vm2, %v314_v14  ;;  %v344_v20 = vsel %vm1353_vm3, %v319_v19, %v343_v11  ;;  %v320_v21 = vld [vmem:[%s1362_s12 + $0x18] sm:$0xf]  ;;  %v321_v22 = vld [vmem:[%s1362_s12 + $0x1c] sm:$0x1] }
  0x14   : > { %337 = vst [vmem:[#allocation2 + $0x4] sm:$0x1] %v336_v17  ;;  %v347_v23 = vld [vmem:[#allocation2 + $0x1c] sm:$0x1]  ;;  %v322_v31 = vld [vmem:[%s1362_s12 + $0x20] sm:$0xf] }
  0x15   : > { %341 = vst [vmem:[#allocation2 + $0xc] sm:$0x1] %v340_v18  ;;  %v323_v41 = vld [vmem:[%s1362_s12 + $0x24] sm:$0x1]  ;;  %v348_v47 = vsel %vm1353_vm3, %v321_v22, %v347_v23  ;;  %v324_v10 = vld [vmem:[%s1362_s12 + $0x28] sm:$0xf] }
  0x16   : > { %345 = vst [vmem:[#allocation2 + $0x14] sm:$0x1] %v344_v20  ;;  %v351_v42 = vld [vmem:[#allocation2 + $0x24] sm:$0x1]  ;;  %v326_v16 = vld [vmem:[%s1362_s12 + $0x30] sm:$0xf] }
  0x17   : > { %346 = vst.msk [vmem:[#allocation2 + $0x18] sm:$0xf] %vm330_vm2, %v320_v21  ;;  %v352_v2 = vsel %vm1353_vm3, %v323_v41, %v351_v42  ;;  %v1478_v57 = vld [vmem:[%s1522_s3] ss:$0 sm:$0xff]  ;;  %s1214_s23 = sshll.u32 %s1533_s15, 5  ;;  %vm989_vm8 = vcmask 125952  }
  0x18   : > { %v1168_v24 = vld [vmem:[#allocation2 + $0x8] sm:$0xf]  ;;  %350 = vst.msk [vmem:[#allocation2 + $0x20] sm:$0xf] %vm330_vm2, %v322_v31  ;;  %s1485_s26 = scalar_lea.vmem %s1523_s4, %s1214_s23 }
  0x19   : > { %v1215_v25 = vld [vmem:[#allocation2 + $0x4] sm:$0xf0]  ;;  %v1223_v27 = vld [vmem:[#allocation2 + $0xc] sm:$0xf0]  ;;  %349 = vst [vmem:[#allocation2 + $0x1c] sm:$0x1] %v348_v47 }
  0x1a   : > { %v374_v26 = vld [vmem:[#allocation2 + $0x8] sm:$0xf]  ;;  %v1169_v32 = vor.u32 %v1223_v27, %v1168_v24  ;;  %v1136_v33 = vld [vmem:[#allocation2] sm:$0xf]  ;;  %v749_v35 = vld [vmem:[#allocation2 + $0x10] sm:$0xf] }
  0x1b   : > { %v411_v28 = vshrl.u32 %v374_v26, 16  ;;  %v414_v29 = vshll.u32 %v374_v26, 16  ;;  %v747_v30 = vld [vmem:[#allocation2 + $0x8] sm:$0xf]  ;;  %v373_v34 = vld [vmem:[#allocation2] sm:$0xf]  ;;  %v1137_v36 = vor.u32 %v1215_v25, %v1136_v33 }
  0x1c   : > { %v385_v37 = vld [vmem:[#allocation2 + $0x4] sm:$0x1]  ;;  %v397_v38 = vshrl.u32 %v373_v34, 16  ;;  %v400_v39 = vshll.u32 %v373_v34, 16  ;;  %1190 = vmatmul.msk.bf16.vlgmr.msra.gmra.mxu2 %vm537_vm4, %v1169_v32  ;;  %v386_v43 = vld [vmem:[#allocation2 + $0xc] sm:$0x1] }
  0x1d   : > { %v413_v40 = vrot.slane %v411_v28, 4  ;;  %v406_v44 = vshll.u32 %v385_v37, 16  ;;  %v416_v45 = vrot.slane %v414_v29, 5  ;;  %v748_v46 = vld [vmem:[#allocation2 + $0xc] sm:$0x1]  ;;  %1158 = vmatmul.msk.bf16.vlgmr.msra.gmra.mxu1 %vm537_vm4, %v1137_v36  ;;  %v420_v50 = vshll.u32 %v386_v43, 16 }
  0x1e   : > { %v399_v48 = vrot.slane %v397_v38, 4  ;;  %v402_v49 = vrot.slane %v400_v39, 5  ;;  %v750_v51 = vld [vmem:[#allocation2 + $0x14] sm:$0x1]  ;;  %v764_v52 = vshrl.u32 %v747_v30, 16  ;;  %v767_v55 = vshll.u32 %v747_v30, 16 }
  0x1f   : > { %v408_v53 = vrot.slane %v406_v44, 5  ;;  %v417_v54 = vor.u32 %v416_v45, %v413_v40  ;;  %v773_v56 = vshll.u32 %v748_v46, 16  ;;  %v422_v59 = vrot.slane %v420_v50, 5  ;;  %v1395_v1 = vld [vmem:[#allocation2 + $0x10] sm:$0xf] }
  0x20   : > { %v403_v58 = vor.u32 %v402_v49, %v399_v48  ;;  %v766_v60 = vrot.slane %v764_v52, 4  ;;  %v778_v61 = vshrl.u32 %v749_v35, 16  ;;  %v769_v63 = vrot.slane %v767_v55, 5  ;;  %v1172_v7 = vld [vmem:[#allocation2 + $0x18] sm:$0xf] }
  0x21   : > { %v418_v62 = vrot.slane %v417_v54, 4  ;;  %v781_v0 = vshll.u32 %v749_v35, 16  ;;  %v775_v4 = vrot.slane %v773_v56, 5  ;;  %v787_v6 = vshll.u32 %v750_v51, 16  ;;  %v1399_v9 = vld [vmem:[#allocation2 + $0x14] sm:$0xf0] }
  0x22   : > { %v404_v3 = vrot.slane %v403_v58, 4  ;;  %v780_v5 = vrot.slane %v778_v61, 4  ;;  %v770_v12 = vor.u32 %v769_v63, %v766_v60  ;;  %v1141_v14 = vor.u32 %v1399_v9, %v1395_v1  ;;  %v375_v15 = vld [vmem:[#allocation2 + $0x10] sm:$0xf]  ;;  %v376_v20 = vld [vmem:[#allocation2 + $0x18] sm:$0xf] }
  0x23   : > { %v423_v11 = vsel %vm1391_vm7, %v418_v62, %v422_v59  ;;  %v783_v13 = vrot.slane %v781_v0, 5  ;;  %v789_v19 = vrot.slane %v787_v6, 5  ;;  %v387_v21 = vld [vmem:[#allocation2 + $0x14] sm:$0x1]  ;;  %v425_v22 = vshrl.u32 %v375_v15, 16 }
  0x24   : > { %v409_v17 = vsel %vm1391_vm7, %v404_v3, %v408_v53  ;;  %v514_v18 = vunpack.c.l.b16 %v423_v11  ;;  %v771_v24 = vrot.slane %v770_v12, 4  ;;  %v428_v26 = vshll.u32 %v375_v15, 16  ;;  %353 = vst [vmem:[#allocation2 + $0x24] sm:$0x1] %v352_v2  ;;  %v751_v27 = vld [vmem:[#allocation2 + $0x18] sm:$0xf] }
  0x25   : > { %v513_v23 = vunpack.c.l.b16 %v409_v17  ;;  %v784_v25 = vor.u32 %v783_v13, %v780_v5  ;;  %v1224_v28 = vld [vmem:[#allocation2 + $0x1c] sm:$0xf0]  ;;  %v427_v29 = vrot.slane %v425_v22, 4  ;;  %v434_v30 = vshll.u32 %v387_v21, 16  ;;  %354 = vst.msk [vmem:[#allocation2 + $0x28] sm:$0xf] %vm330_vm2, %v324_v10 }
  0x26   : > { %v439_v31 = vshrl.u32 %v376_v20, 16  ;;  %v442_v32 = vshll.u32 %v376_v20, 16  ;;  %v776_v34 = vsel %vm1391_vm7, %v771_v24, %v775_v4  ;;  %v1173_v36 = vor.u32 %v1224_v28, %v1172_v7  ;;  %v753_v37 = vld [vmem:[#allocation2 + $0x20] sm:$0xf]  ;;  %358 = vst.msk [vmem:[#allocation2 + $0x30] sm:$0xf] %vm330_vm2, %v326_v16 }
  0x27   : > { %v521_v33 = vpack.c.b16 %v514_v18, %v513_v23  ;;  %v785_v35 = vrot.slane %v784_v25, 4  ;;  %v880_v38 = vunpack.c.l.b16 %v776_v34  ;;  %v430_v39 = vrot.slane %v428_v26, 5  ;;  %v388_v47 = vld [vmem:[#allocation2 + $0x1c] sm:$0x1]  ;;  %v325_v56 = vld [vmem:[%s1362_s12 + $0x2c] sm:$0x1] }
  0x28   : > { %v436_v40 = vrot.slane %v434_v30, 5  ;;  %v441_v41 = vrot.slane %v439_v31, 4  ;;  %v444_v43 = vrot.slane %v442_v32, 5  ;;  %v792_v44 = vshrl.u32 %v751_v27, 16  ;;  %v752_v49 = vld [vmem:[#allocation2 + $0x1c] sm:$0x1] }
  0x29   : > { %1130 = vmatmul.msk.bf16.vlgmr.msra.gmra.mxu0 %vm537_vm4, %v521_v33  ;;  %v790_v42 = vsel %vm1391_vm7, %v785_v35, %v789_v19  ;;  %v795_v45 = vshll.u32 %v751_v27, 16  ;;  %v431_v48 = vor.u32 %v430_v39, %v427_v29  ;;  %v806_v50 = vshrl.u32 %v753_v37, 16  ;;  %v355_v3 = vld [vmem:[#allocation2 + $0x2c] sm:$0x1]  ;;  %v327_v27 = vld [vmem:[%s1362_s12 + $0x34] sm:$0x1] }
  0x2a   : > { %v881_v46 = vunpack.c.l.b16 %v790_v42  ;;  %v809_v51 = vshll.u32 %v753_v37, 16  ;;  %v445_v52 = vor.u32 %v444_v43, %v441_v41  ;;  %v448_v53 = vshll.u32 %v388_v47, 16  ;;  %v359_v28 = vld [vmem:[#allocation2 + $0x34] sm:$0x1]  ;;  %v1144_v35 = vld [vmem:[#allocation2 + $0x20] sm:$0xf] }
  0x2b   : > { %v794_v54 = vrot.slane %v792_v44, 4  ;;  %v797_v55 = vrot.slane %v795_v45, 5  ;;  %v432_v59 = vrot.slane %v431_v48, 4  ;;  %v754_v60 = vld [vmem:[#allocation2 + $0x24] sm:$0x1]  ;;  %v801_v61 = vshll.u32 %v752_v49, 16 }
  0x2c   : > { %v888_v58 = vpack.c.b16 %v881_v46, %v880_v38  ;;  %v808_v62 = vrot.slane %v806_v50, 4  ;;  %1191 = vmatmul.msk.bf16.gmra.mxu2 %vm537_vm4, %v1173_v36  ;;  %v446_v63 = vrot.slane %v445_v52, 4  ;;  %v450_v0 = vrot.slane %v448_v53, 5  ;;  %v378_v16 = vld [vmem:[#allocation2 + $0x28] sm:$0xf] }
  0x2d   : > { %v798_v1 = vor.u32 %v797_v55, %v794_v54  ;;  %v811_v2 = vrot.slane %v809_v51, 5  ;;  %1159 = vmatmul.msk.bf16.gmra.mxu1 %vm537_vm4, %v1141_v14  ;;  %v437_v4 = vsel %vm1391_vm7, %v432_v59, %v436_v40  ;;  %v803_v5 = vrot.slane %v801_v61, 5  ;;  %v377_v14 = vld [vmem:[#allocation2 + $0x20] sm:$0xf]  ;;  %v389_v19 = vld [vmem:[#allocation2 + $0x24] sm:$0x1] }
  0x2e   : > { %1206 = vmatmul.msk.bf16.vlgmr.msra.gmra.mxu3 %vm537_vm4, %v888_v58  ;;  %v815_v6 = vshll.u32 %v754_v60, 16  ;;  %v356_v7 = vsel %vm1353_vm3, %v325_v56, %v355_v3  ;;  %v451_v9 = vsel %vm1391_vm7, %v446_v63, %v450_v0  ;;  %v515_v10 = vunpack.c.l.b16 %v437_v4  ;;  %v1176_v24 = vld [vmem:[#allocation2 + $0x28] sm:$0xf]  ;;  %v1225_v25 = vld [vmem:[#allocation2 + $0x2c] sm:$0xf0] }
  0x2f   : > { %v799_v11 = vrot.slane %v798_v1, 4  ;;  %v812_v12 = vor.u32 %v811_v2, %v808_v62  ;;  %357 = vst [vmem:[#allocation2 + $0x2c] sm:$0x1] %v356_v7  ;;  %v516_v13 = vunpack.c.l.b16 %v451_v9  ;;  %v453_v20 = vshrl.u32 %v377_v14, 16  ;;  %v755_v33 = vld [vmem:[#allocation2 + $0x28] sm:$0xf] }
  0x30   : > { %v817_v15 = vrot.slane %v815_v6, 5  ;;  %v456_v21 = vshll.u32 %v377_v14, 16  ;;  %v467_v26 = vshrl.u32 %v378_v16, 16  ;;  %v470_v32 = vshll.u32 %v378_v16, 16  ;;  %v1217_v36 = vld [vmem:[#allocation2 + $0x24] sm:$0xf0] }
  0x31   : > { %v804_v17 = vsel %vm1391_vm7, %v799_v11, %v803_v5  ;;  %v813_v18 = vrot.slane %v812_v12, 4  ;;  %v522_v22 = vpack.c.b16 %v516_v13, %v515_v10  ;;  %v455_v30 = vrot.slane %v453_v20, 4  ;;  %v757_v40 = vld [vmem:[#allocation2 + $0x30] sm:$0xf]  ;;  %v328_v41 = vld [vmem:[%s1362_s12 + $0x38] sm:$0xf] }
  0x32   : > { %v1428_v23 = vunpack.c.l.b16 %v804_v17  ;;  %v458_v31 = vrot.slane %v456_v21, 5  ;;  %v462_v37 = vshll.u32 %v389_v19, 16  ;;  %v469_v38 = vrot.slane %v467_v26, 4  ;;  %362 = vst.msk [vmem:[#allocation2 + $0x38] sm:$0xf] %vm330_vm2, %v328_v41 }
  0x33   : > { %v818_v29 = vsel %vm1391_vm7, %v813_v18, %v817_v15  ;;  %v360_v39 = vsel %vm1353_vm3, %v327_v27, %v359_v28  ;;  %v472_v43 = vrot.slane %v470_v32, 5  ;;  %v820_v44 = vshrl.u32 %v755_v33, 16  ;;  %v366_v59 = vld [vmem:[%s300_s20] sm:$0xf]  ;;  %v367_v0 = vld [vmem:[%s300_s20 + $0x4] sm:$0x1] }
  0x34   : > { %v883_v34 = vunpack.c.l.b16 %v818_v29  ;;  %v459_v42 = vor.u32 %v458_v31, %v455_v30  ;;  %361 = vst [vmem:[#allocation2 + $0x34] sm:$0x1] %v360_v39  ;;  %v823_v45 = vshll.u32 %v755_v33, 16  ;;  %v834_v48 = vshrl.u32 %v757_v40, 16  ;;  %v370_v5 = vld [vmem:[#allocation2 + $0x44] sm:$0x1] }
  0x35   : > { %v837_v49 = vshll.u32 %v757_v40, 16  ;;  %v1177_v50 = vor.u32 %v1225_v25, %v1176_v24  ;;  %v473_v51 = vor.u32 %v472_v43, %v469_v38  ;;  %v822_v53 = vrot.slane %v820_v44, 4  ;;  %369 = vst.msk [vmem:[#allocation2 + $0x40] sm:$0xf] %vm330_vm2, %v366_v59  ;;  %v329_v7 = vld [vmem:[%s1362_s12 + $0x3c] sm:$0x1] }
  0x36   : > { %v390_v46 = vld [vmem:[#allocation2 + $0x2c] sm:$0x1]  ;;  %v464_v54 = vrot.slane %v462_v37, 5  ;;  %v825_v55 = vrot.slane %v823_v45, 5  ;;  %v836_v56 = vrot.slane %v834_v48, 4  ;;  %v889_v60 = vpack.c.b16 %v883_v34, %v1428_v23 }
  0x37   : > { %v756_v47 = vld [vmem:[#allocation2 + $0x2c] sm:$0x1]  ;;  %v476_v52 = vshll.u32 %v390_v46, 16  ;;  %v839_v58 = vrot.slane %v837_v49, 5  ;;  %v1145_v61 = vor.u32 %v1217_v36, %v1144_v35  ;;  %v460_v62 = vrot.slane %v459_v42, 4 }
  0x38   : > { %v829_v63 = vshll.u32 %v756_v47, 16  ;;  %v474_v1 = vrot.slane %v473_v51, 4  ;;  %v826_v3 = vor.u32 %v825_v55, %v822_v53  ;;  %v371_v6 = vsel %vm1353_vm3, %v367_v0, %v370_v5  ;;  %v363_v9 = vld [vmem:[#allocation2 + $0x3c] sm:$0x1]  ;;  %v379_v10 = vld [vmem:[#allocation2 + $0x30] sm:$0xf] }
  0x39   : > { %1131 = vmatmul.msk.bf16.gmra.mxu0 %vm537_vm4, %v522_v22  ;;  %v478_v2 = vrot.slane %v476_v52, 5  ;;  %v840_v4 = vor.u32 %v839_v58, %v836_v56  ;;  %372 = vst [vmem:[#allocation2 + $0x44] sm:$0x1] %v371_v6  ;;  %v364_v12 = vsel %vm1353_vm3, %v329_v7, %v363_v9  ;;  %v465_v16 = vsel %vm1391_vm7, %v460_v62, %v464_v54  ;;  %v380_v19 = vld [vmem:[#allocation2 + $0x38] sm:$0xf] }
  0x3a   : > { %v827_v13 = vrot.slane %v826_v3, 4  ;;  %v831_v15 = vrot.slane %v829_v63, 5  ;;  %365 = vst [vmem:[#allocation2 + $0x3c] sm:$0x1] %v364_v12  ;;  %v481_v8 = vshrl.u32 %v379_v10, 16  ;;  %v484_v21 = vshll.u32 %v379_v10, 16 }
  0x3b   : > { %v758_v11 = vld [vmem:[#allocation2 + $0x34] sm:$0x1]  ;;  %v479_v17 = vsel %vm1391_vm7, %v474_v1, %v478_v2  ;;  %v841_v18 = vrot.slane %v840_v4, 4  ;;  %v495_v22 = vshrl.u32 %v380_v19, 16  ;;  %v498_v23 = vshll.u32 %v380_v19, 16 }
  0x3c   : > { %1192 = vmatmul.msk.bf16.gmra.mxu2 %vm537_vm4, %v1177_v50  ;;  %v843_v14 = vshll.u32 %v758_v11, 16  ;;  %v759_v24 = vld [vmem:[#allocation2 + $0x38] sm:$0xf]  ;;  %v517_v25 = vunpack.c.l.b16 %v465_v16  ;;  %v518_v26 = vunpack.c.l.b16 %v479_v17  ;;  %v832_v27 = vsel %vm1391_vm7, %v827_v13, %v831_v15  ;;  %v761_v28 = vld [vmem:[#allocation2 + $0x40] sm:$0xf] }
  0x3d   : > { %1160 = vmatmul.msk.bf16.gmra.mxu1 %vm537_vm4, %v1145_v61  ;;  %v391_v30 = vld [vmem:[#allocation2 + $0x34] sm:$0x1]  ;;  %v483_v31 = vrot.slane %v481_v8, 4  ;;  %v486_v32 = vrot.slane %v484_v21, 5  ;;  %v497_v33 = vrot.slane %v495_v22, 4  ;;  %v500_v34 = vrot.slane %v498_v23, 5 }
  0x3e   : > { %1207 = vmatmul.msk.bf16.gmra.mxu3 %vm537_vm4, %v889_v60  ;;  %v845_v20 = vrot.slane %v843_v14, 5  ;;  %v848_v35 = vshrl.u32 %v759_v24, 16  ;;  %v851_v36 = vshll.u32 %v759_v24, 16  ;;  %v862_v37 = vshrl.u32 %v761_v28, 16  ;;  %v1180_v42 = vld [vmem:[#allocation2 + $0x38] sm:$0xf] }
  0x3f   : > { %v865_v39 = vshll.u32 %v761_v28, 16  ;;  %v523_v40 = vpack.c.b16 %v518_v26, %v517_v25  ;;  %v884_v41 = vunpack.c.l.b16 %v832_v27  ;;  %v1148_v43 = vld [vmem:[#allocation2 + $0x30] sm:$0xf]  ;;  %v490_v44 = vshll.u32 %v391_v30, 16  ;;  %v1226_v46 = vld [vmem:[#allocation2 + $0x3c] sm:$0xf0] }
  0x40   : > { %v846_v29 = vsel %vm1391_vm7, %v841_v18, %v845_v20  ;;  %v1218_v47 = vld [vmem:[#allocation2 + $0x34] sm:$0xf0]  ;;  %v487_v48 = vor.u32 %v486_v32, %v483_v31  ;;  %v501_v49 = vor.u32 %v500_v34, %v497_v33  ;;  %v850_v51 = vrot.slane %v848_v35, 4  ;;  %v762_v56 = vld [vmem:[#allocation2 + $0x44] sm:$0x1] }
  0x41   : > { %v392_v38 = vld [vmem:[#allocation2 + $0x3c] sm:$0x1]  ;;  %v885_v45 = vunpack.c.l.b16 %v846_v29  ;;  %v853_v52 = vrot.slane %v851_v36, 5  ;;  %v864_v53 = vrot.slane %v862_v37, 4  ;;  %v867_v54 = vrot.slane %v865_v39, 5 }
  0x42   : > { %v504_v50 = vshll.u32 %v392_v38, 16  ;;  %v760_v55 = vld [vmem:[#allocation2 + $0x3c] sm:$0x1]  ;;  %v1181_v58 = vor.u32 %v1226_v46, %v1180_v42  ;;  %v1149_v59 = vor.u32 %v1218_v47, %v1148_v43  ;;  %v492_v60 = vrot.slane %v490_v44, 5 }
  0x43   : > { %v890_v61 = vpack.c.b16 %v885_v45, %v884_v41  ;;  %v488_v62 = vrot.slane %v487_v48, 4  ;;  %v502_v63 = vrot.slane %v501_v49, 4  ;;  %v854_v1 = vor.u32 %v853_v52, %v850_v51 }
  0x44   : > { %v506_v0 = vrot.slane %v504_v50, 5  ;;  %v857_v2 = vshll.u32 %v760_v55, 16  ;;  %v868_v3 = vor.u32 %v867_v54, %v864_v53  ;;  %v871_v4 = vshll.u32 %v762_v56, 16 }
  0x45   : > { %v493_v5 = vsel %vm1391_vm7, %v488_v62, %v492_v60  ;;  %v855_v7 = vrot.slane %v854_v1, 4 }
  0x46   : > { %v507_v6 = vsel %vm1391_vm7, %v502_v63, %v506_v0  ;;  %v859_v9 = vrot.slane %v857_v2, 5  ;;  %v869_v10 = vrot.slane %v868_v3, 4  ;;  %v873_v11 = vrot.slane %v871_v4, 5 }
  0x47   : > { %v519_v12 = vunpack.c.l.b16 %v493_v5  ;;  %v520_v13 = vunpack.c.l.b16 %v507_v6 }
  0x48   : > { %v860_v15 = vsel %vm1391_vm7, %v855_v7, %v859_v9  ;;  %v874_v14 = vsel %vm1391_vm7, %v869_v10, %v873_v11 }
  0x49   : > { %1132 = vmatmul.msk.bf16.gmra.mxu0 %vm537_vm4, %v523_v40  ;;  %v524_v16 = vpack.c.b16 %v520_v13, %v519_v12  ;;  %v886_v17 = vunpack.c.l.b16 %v860_v15  ;;  %v887_v18 = vunpack.c.l.b16 %v874_v14 }
  0x4b   : > { %v891_v19 = vpack.c.b16 %v887_v18, %v886_v17 }
  0x4c   : > { %1193 = vmatmul.msk.bf16.gmra.mxu2 %vm537_vm4, %v1181_v58 }
  0x4d   : > { %1161 = vmatmul.msk.bf16.gmra.mxu1 %vm537_vm4, %v1149_v59 }
  0x4e   : > { %1208 = vmatmul.msk.bf16.gmra.mxu3 %vm537_vm4, %v890_v61 }
  0x59   : > { %1133 = vmatmul.msk.bf16.gmra.mxu0 %vm537_vm4, %v524_v16 }
  0x5e   : > { %1209 = vmatmul.msk.bf16.gmra.mxu3 %vm537_vm4, %v891_v19 }
  0x9a   : > { %v632_v8 = vpop.f32.mrf.mxu1 }
  0x9f   : > { %v719_v20 = vpop.f32.mrf.mxu2 }
  0xa2   : > { %v634_v22 = vpop.f32.mrf.mxu1 }
  0xa6   : > { %v559_v21 = vpop.f32.mrf.mxu0 }
  0xa7   : > { %v633_v23 = vadd.f32 %v632_v8, %v559_v21  ;;  %v721_v24 = vpop.f32.mrf.mxu2 }
  0xa9   : > { %v739_v25 = vadd.f32 %v719_v20, %v633_v23 }
  0xaa   : > { %v637_v28 = vpop.f32.mrf.mxu1 }
  0xae   : > { %v561_v26 = vpop.f32.mrf.mxu0 }
  0xaf   : > { %v635_v31 = vadd.f32 %v634_v22, %v561_v26  ;;  %v724_v32 = vpop.f32.mrf.mxu2 }
  0xb1   : > { %v925_v27 = vpop.f32.mrf.mxu3  ;;  %v740_v36 = vadd.f32 %v721_v24, %v635_v31 }
  0xb2   : > { %v945_v29 = vadd.f32 %v925_v27, %v739_v25  ;;  %v639_v41 = vpop.f32.mrf.mxu1 }
  0xb4   : > { %v957_v30 = vadd.f32 %v1478_v57, %v945_v29 }
  0xb6   : > { %v965_v33 = vmul.f32 0.2, %v957_v30  ;;  %v564_v34 = vpop.f32.mrf.mxu0 }
  0xb7   : > { %v638_v40 = vadd.f32 %v637_v28, %v564_v34  ;;  %v726_v46 = vpop.f32.mrf.mxu2 }
  0xb8   : > { %v973_v35 = vmax.f32 %v957_v30, %v965_v33 }
  0xb9   : > { %v927_v37 = vpop.f32.mrf.mxu3  ;;  %v741_v44 = vadd.f32 %v724_v32, %v638_v40 }
  0xba   : > { %v981_v38 = vpack.c.bf16 %v973_v35, %v973_v35  ;;  %v946_v39 = vadd.f32 %v927_v37, %v740_v36  ;;  %v642_v53 = vpop.f32.mrf.mxu1 }
  0xbc   : > { %990 = vst.msk [vmem:[%s1485_s26] sm:$0xf] %vm989_vm8, %v981_v38  ;;  %v958_v42 = vadd.f32 %v1478_v57, %v946_v39 }
  0xbe   : > { %v966_v43 = vmul.f32 0.2, %v958_v42  ;;  %v566_v45 = vpop.f32.mrf.mxu0 }
  0xbf   : > { %v640_v52 = vadd.f32 %v639_v41, %v566_v45  ;;  %v729_v59 = vpop.f32.mrf.mxu2 }
  0xc0   : > { %v974_v47 = vmax.f32 %v958_v42, %v966_v43 }
  0xc1   : > { %v930_v48 = vpop.f32.mrf.mxu3  ;;  %v742_v58 = vadd.f32 %v726_v46, %v640_v52 }
  0xc2   : > { %v982_v49 = vpack.c.bf16 %v974_v47, %v974_v47  ;;  %v947_v50 = vadd.f32 %v930_v48, %v741_v44  ;;  %v644_v4 = vpop.f32.mrf.mxu1 }
  0xc4   : > { %991 = vst.msk [vmem:[%s1485_s26 + $0x4] sm:$0xf] %vm989_vm8, %v982_v49  ;;  %v959_v51 = vadd.f32 %v1478_v57, %v947_v50 }
  0xc6   : > { %v967_v54 = vmul.f32 0.2, %v959_v51  ;;  %v569_v55 = vpop.f32.mrf.mxu0 }
  0xc7   : > { %v643_v63 = vadd.f32 %v642_v53, %v569_v55  ;;  %v731_v10 = vpop.f32.mrf.mxu2 }
  0xc8   : > { %v975_v56 = vmax.f32 %v959_v51, %v967_v54 }
  0xc9   : > { %v932_v60 = vpop.f32.mrf.mxu3  ;;  %v743_v2 = vadd.f32 %v729_v59, %v643_v63 }
  0xca   : > { %v983_v61 = vpack.c.bf16 %v975_v56, %v975_v56  ;;  %v948_v62 = vadd.f32 %v932_v60, %v742_v58  ;;  %v647_v17 = vpop.f32.mrf.mxu1 }
  0xcc   : > { %992 = vst.msk [vmem:[%s1485_s26 + $0x8] sm:$0xf] %vm989_vm8, %v983_v61  ;;  %v960_v0 = vadd.f32 %v1478_v57, %v948_v62 }
  0xce   : > { %v968_v1 = vmul.f32 0.2, %v960_v0  ;;  %v571_v3 = vpop.f32.mrf.mxu0 }
  0xcf   : > { %v645_v12 = vadd.f32 %v644_v4, %v571_v3  ;;  %v734_v22 = vpop.f32.mrf.mxu2 }
  0xd0   : > { %v976_v5 = vmax.f32 %v960_v0, %v968_v1 }
  0xd1   : > { %v935_v6 = vpop.f32.mrf.mxu3  ;;  %v744_v16 = vadd.f32 %v731_v10, %v645_v12 }
  0xd2   : > { %v984_v7 = vpack.c.bf16 %v976_v5, %v976_v5  ;;  %v949_v9 = vadd.f32 %v935_v6, %v743_v2  ;;  %v649_v30 = vpop.f32.mrf.mxu1 }
  0xd4   : > { %993 = vst.msk [vmem:[%s1485_s26 + $0xc] sm:$0xf] %vm989_vm8, %v984_v7  ;;  %v961_v11 = vadd.f32 %v1478_v57, %v949_v9 }
  0xd6   : > { %v969_v13 = vmul.f32 0.2, %v961_v11  ;;  %v574_v15 = vpop.f32.mrf.mxu0 }
  0xd7   : > { %v648_v20 = vadd.f32 %v647_v17, %v574_v15  ;;  %v736_v34 = vpop.f32.mrf.mxu2 }
  0xd8   : > { %v977_v14 = vmax.f32 %v961_v11, %v969_v13 }
  0xd9   : > { %v937_v18 = vpop.f32.mrf.mxu3  ;;  %v745_v24 = vadd.f32 %v734_v22, %v648_v20 }
  0xda   : > { %v985_v19 = vpack.c.bf16 %v977_v14, %v977_v14  ;;  %v950_v8 = vadd.f32 %v937_v18, %v744_v16 }
  0xdc   : > { %994 = vst.msk [vmem:[%s1485_s26 + $0x10] sm:$0xf] %vm989_vm8, %v985_v19  ;;  %v962_v21 = vadd.f32 %v1478_v57, %v950_v8 }
  0xde   : > { %v970_v23 = vmul.f32 0.2, %v962_v21  ;;  %v576_v27 = vpop.f32.mrf.mxu0 }
  0xdf   : > { %v650_v32 = vadd.f32 %v649_v30, %v576_v27 }
  0xe0   : > { %v978_v25 = vmax.f32 %v962_v21, %v970_v23 }
  0xe1   : > { %v940_v26 = vpop.f32.mrf.mxu3  ;;  %v746_v36 = vadd.f32 %v736_v34, %v650_v32 }
  0xe2   : > { %v986_v28 = vpack.c.bf16 %v978_v25, %v978_v25  ;;  %v951_v29 = vadd.f32 %v940_v26, %v745_v24 }
  0xe4   : > { %995 = vst.msk [vmem:[%s1485_s26 + $0x14] sm:$0xf] %vm989_vm8, %v986_v28  ;;  %v963_v31 = vadd.f32 %v1478_v57, %v951_v29 }
  0xe6   : > { %v971_v33 = vmul.f32 0.2, %v963_v31 }
  0xe8   : > { %v979_v35 = vmax.f32 %v963_v31, %v971_v33 }
  0xe9   : > { %v942_v37 = vpop.f32.mrf.mxu3 }
  0xea   : > { %v987_v38 = vpack.c.bf16 %v979_v35, %v979_v35  ;;  %v952_v39 = vadd.f32 %v942_v37, %v746_v36 }
  0xec   : > { %996 = vst.msk [vmem:[%s1485_s26 + $0x18] sm:$0xf] %vm989_vm8, %v987_v38  ;;  %v964_v40 = vadd.f32 %v1478_v57, %v952_v39 }
  0xee   : > { %v972_v41 = vmul.f32 0.2, %v964_v40 }
  0xf0   : > { %v980_v42 = vmax.f32 %v964_v40, %v972_v41 }
  0xf2   : > { %v988_v43 = vpack.c.bf16 %v980_v42, %v980_v42 }
  0xf4   : > { %997 = vst.msk [vmem:[%s1485_s26 + $0x1c] sm:$0xf] %vm989_vm8, %v988_v43 }
  0xf5 PF: > { %s14_s17 = sadd.s32 1, %s1281_s17   ;;  %s1528_s15 = smov %s1277_s16 }
  0xf6   : > { %p11_p5 = scmp.ge.s32.totalorder %s14_s17, 4   ;;  %s1529_s16 = smov %s1531_s18 }
  0xf8   :  { %13 = sbr.rel (!%p11_p5) target bundleno = 2 (0x2), region = 74 }

// kernel: fc_discriminator_forward.7
= control target key start
LH: loop header
LB: loop body
LE: loop exit
PB: predicated region body
PF: predicated region fallthrough
CT: control target
= control target key end

     0   :  { %s1116_s15 = smov 0   ;;  %s1118_s16 = smov 0   ;;  %s1276_s0 = inlined_call_operand.vmem [shape: bf16[2,5,9,64], index: 0, kind: input, shape index: {}, may-alias: {0,1}]   ;;  %s1277_s1 = inlined_call_operand.vmem [shape: bf16[2,5,9,64], index: 1, kind: input, shape index: {}, may-alias: {0,1}]   ;;  %s1278_s2 = inlined_call_operand.vmem [shape: bf16[4,64,32], index: 2, kind: input, shape index: {}]   ;;  %s1279_s3 = inlined_call_operand.vmem [shape: f32[1,32], index: 3, kind: input, shape index: {}]   ;;  %s1280_s4 = inlined_call_operand.vmem [shape: bf16[2,32,32], index: 4, kind: output, shape index: {}]  }
   0x1   :  { %s1120_s17 = smov 0  }
   0x2 LB: > { %s26_s18 = sadd.s32 1, %s1085_s16  ;;  %p897_p0 = scmp.ge.s32.totalorder %s1089_s17, 1  ;;  %s1089_s17 = sphi %s1120_s17, %s14_s17   ;;  %s1085_s16 = sphi %s1118_s16, %s1286_s16   ;;  %s1081_s15 = sphi %s1116_s15, %s1285_s15  }
   0x3   : > { %p28_p1 = scmp.ge.s32.totalorder %s26_s18, 2  ;;  %p218_p2 = scmp.lt.s32.totalorder %s1089_s17, 3 }
   0x5   : > { %s1288_s18 = smov (%p28_p1, %s26_s18), 0  ;;  %p219_p3 = pnand %p897_p0, %p218_p2 }
   0x6   : > { %p275_p4 = scmp.lt.s32.totalorder (!%p219_p3), %s1081_s15, 1 }
   0x7   : > { %222 = sbr.rel (%p219_p3) target bundleno = 214 (0xd6), region = 36 }
   0xc   : > { %v1034_v0 = vld [vmem:[%s1278_s2 + $0x58] sm:$0xff]  ;;  %v1033_v2 = vld [vmem:[%s1278_s2 + $0x50] sm:$0xff]  ;;  %s1290_s15 = smov (!%p275_p4, %s1081_s15), 1  ;;  %vm324_vm0 = vcmask 516096   ;;  %vm325_vm1 = vsmask.f32 256 }
   0xd   : > { %v1024_v1 = vld [vmem:[%s1278_s2 + $0x18] sm:$0xff]  ;;  %606 = vmatpush.bf16.msra.mxu2 %v1034_v0  ;;  %v1023_v4 = vld [vmem:[%s1278_s2 + $0x10] sm:$0xff]  ;;  %v1032_v7 = vld [vmem:[%s1278_s2 + $0x48] sm:$0xff]  ;;  %s1039_s11 = smul.u32 40, %s1290_s15  ;;  %vm322_vm2 = vcmask 519168   ;;  %vm463_vm4 = vcmask 523264  }
   0xe   : > { %v1028_v3 = vld [vmem:[%s1278_s2 + $0x38] sm:$0xff]  ;;  %533 = vmatpush.bf16.msra.mxu1 %v1024_v1  ;;  %v1027_v6 = vld [vmem:[%s1278_s2 + $0x30] sm:$0xff]  ;;  %v1022_v9 = vld [vmem:[%s1278_s2 + $0x8] sm:$0xff]  ;;  %vm365_vm5 = vsmask.f32 3328  ;;  %s1018_s13 = sshll.u32 %s1290_s15, 4 }
   0xf   : > { %v1038_v5 = vld [vmem:[%s1278_s2 + $0x78] sm:$0xff]  ;;  %474 = vmatpush.bf16.msra.mxu0 %v1028_v3  ;;  %v1037_v8 = vld [vmem:[%s1278_s2 + $0x70] sm:$0xff]  ;;  %v1026_v10 = vld [vmem:[%s1278_s2 + $0x28] sm:$0xff]  ;;  %s1177_s22 = scalar_lea.vmem %s1276_s0, %s1039_s11  ;;  %s1017_s29 = sadd.s32 32, %s1039_s11  ;;  %vm366_vm6 = vsmask.f32 7440 }
  0x10   : > { %738 = vmatpush.bf16.msra.mxu3 %v1038_v5  ;;  %vm1170_vm3 = vmand %vm324_vm0, %vm325_vm1  ;;  %v1036_v12 = vld [vmem:[%s1278_s2 + $0x68] sm:$0xff]  ;;  %v327_v13 = vld [vmem:[#allocation2 + $0x4] sm:$0x1]  ;;  %s300_s10 = scalar_lea.vmem %s1277_s1, %s1017_s29  ;;  %s1257_s20 = scalar_lea.vmem %s1280_s4, %s1018_s13  ;;  %vm777_vm8 = vcmask 257024  }
  0x11   : > { %607 = vmatpush.bf16.msra.mxu2 %v1033_v2  ;;  %v331_v14 = vld [vmem:[#allocation2 + $0xc] sm:$0x1]  ;;  %v335_v15 = vld [vmem:[#allocation2 + $0x14] sm:$0x1]  ;;  %v316_v16 = vld [vmem:[%s1177_s22 + $0x8] sm:$0xf] }
  0x12   : > { %534 = vmatpush.bf16.msra.mxu1 %v1023_v4  ;;  %v318_v17 = vld [vmem:[%s1177_s22 + $0x10] sm:$0xf]  ;;  %v314_v18 = vld [vmem:[%s1177_s22] sm:$0xf]  ;;  %330 = vst.msk [vmem:[#allocation2 + $0x8] sm:$0xf] %vm322_vm2, %v316_v16  ;;  %vm1224_vm7 = vmor %vm365_vm5, %vm366_vm6 }
  0x13   : > { %475 = vmatpush.bf16.msra.mxu0 %v1027_v6  ;;  %v315_v19 = vld [vmem:[%s1177_s22 + $0x4] sm:$0x1]  ;;  %v317_v20 = vld [vmem:[%s1177_s22 + $0xc] sm:$0x1]  ;;  %334 = vst.msk [vmem:[#allocation2 + $0x10] sm:$0xf] %vm322_vm2, %v318_v17 }
  0x14   : > { %739 = vmatpush.bf16.msra.mxu3 %v1037_v8  ;;  %v328_v21 = vsel %vm1170_vm3, %v315_v19, %v327_v13  ;;  %v332_v22 = vsel %vm1170_vm3, %v317_v20, %v331_v14  ;;  %v319_v23 = vld [vmem:[%s1177_s22 + $0x14] sm:$0x1]  ;;  %v1031_v24 = vld [vmem:[%s1278_s2 + $0x40] sm:$0xff]  ;;  %323 = vst.msk [vmem:[#allocation2] sm:$0xf] %vm322_vm2, %v314_v18 }
  0x15   : > { %608 = vmatpush.bf16.msra.mxu2 %v1032_v7  ;;  %v1021_v25 = vld [vmem:[%s1278_s2] sm:$0xff]  ;;  %v336_v26 = vsel %vm1170_vm3, %v319_v23, %v335_v15  ;;  %329 = vst [vmem:[#allocation2 + $0x4] sm:$0x1] %v328_v21  ;;  %v320_v28 = vld [vmem:[%s1177_s22 + $0x18] sm:$0xf] }
  0x16   : > { %535 = vmatpush.bf16.msra.mxu1 %v1022_v9  ;;  %v1025_v27 = vld [vmem:[%s1278_s2 + $0x20] sm:$0xff]  ;;  %333 = vst [vmem:[#allocation2 + $0xc] sm:$0x1] %v332_v22  ;;  %v321_v32 = vld [vmem:[%s1177_s22 + $0x1c] sm:$0x1] }
  0x17   : > { %476 = vmatpush.bf16.msra.mxu0 %v1026_v10  ;;  %v1035_v29 = vld [vmem:[%s1278_s2 + $0x60] sm:$0xff]  ;;  %337 = vst [vmem:[#allocation2 + $0x14] sm:$0x1] %v336_v26  ;;  %v339_v33 = vld [vmem:[#allocation2 + $0x1c] sm:$0x1] }
  0x18   : > { %740 = vmatpush.bf16.msra.mxu3 %v1036_v12  ;;  %338 = vst.msk [vmem:[#allocation2 + $0x18] sm:$0xf] %vm322_vm2, %v320_v28  ;;  %v343_v30 = vld [vmem:[%s300_s10 + $0x4] sm:$0x1]  ;;  %v342_v41 = vld [vmem:[%s300_s10] sm:$0xf]  ;;  %v340_v56 = vsel %vm1170_vm3, %v321_v32, %v339_v33 }
  0x19   : > { %609 = vmatpush.bf16.msra.mxu2 %v1031_v24  ;;  %v346_v31 = vld [vmem:[#allocation2 + $0x24] sm:$0x1]  ;;  %v964_v34 = vld [vmem:[#allocation2 + $0x8] sm:$0xf]  ;;  %345 = vst.msk [vmem:[#allocation2 + $0x20] sm:$0xf] %vm322_vm2, %v342_v41 }
  0x1a   : > { %536 = vmatpush.bf16.msra.mxu1 %v1021_v25  ;;  %v1019_v35 = vld [vmem:[#allocation2 + $0x4] sm:$0xf0]  ;;  %v1029_v37 = vld [vmem:[#allocation2 + $0xc] sm:$0xf0]  ;;  %v347_v55 = vsel %vm1170_vm3, %v343_v30, %v346_v31  ;;  %341 = vst [vmem:[#allocation2 + $0x1c] sm:$0x1] %v340_v56 }
  0x1b   : > { %477 = vmatpush.bf16.msra.mxu0 %v1025_v27  ;;  %v350_v36 = vld [vmem:[#allocation2 + $0x8] sm:$0xf]  ;;  %v965_v42 = vor.u32 %v1029_v37, %v964_v34  ;;  %v930_v43 = vld [vmem:[#allocation2] sm:$0xf]  ;;  %v627_v45 = vld [vmem:[#allocation2 + $0x10] sm:$0xf] }
  0x1c   : > { %741 = vmatpush.bf16.msra.mxu3 %v1035_v29  ;;  %v383_v38 = vshrl.u32 %v350_v36, 16  ;;  %v386_v39 = vshll.u32 %v350_v36, 16  ;;  %v625_v40 = vld [vmem:[#allocation2 + $0x8] sm:$0xf]  ;;  %v349_v44 = vld [vmem:[#allocation2] sm:$0xf]  ;;  %v931_v46 = vor.u32 %v1019_v35, %v930_v43 }
  0x1d   : > { %v361_v47 = vld [vmem:[#allocation2 + $0x4] sm:$0x1]  ;;  %v369_v48 = vshrl.u32 %v349_v44, 16  ;;  %v372_v49 = vshll.u32 %v349_v44, 16  ;;  %986 = vmatmul.msk.bf16.vlgmr.msra.gmra.mxu2 %vm463_vm4, %v965_v42  ;;  %v362_v51 = vld [vmem:[#allocation2 + $0xc] sm:$0x1] }
  0x1e   : > { %v385_v50 = vrot.slane %v383_v38, 4  ;;  %v378_v52 = vshll.u32 %v361_v47, 16  ;;  %v388_v53 = vrot.slane %v386_v39, 5  ;;  %v626_v54 = vld [vmem:[#allocation2 + $0xc] sm:$0x1]  ;;  %952 = vmatmul.msk.bf16.vlgmr.msra.gmra.mxu1 %vm463_vm4, %v931_v46  ;;  %v392_v59 = vshll.u32 %v362_v51, 16 }
  0x1f   : > { %v371_v57 = vrot.slane %v369_v48, 4  ;;  %v374_v58 = vrot.slane %v372_v49, 5  ;;  %v628_v60 = vld [vmem:[#allocation2 + $0x14] sm:$0x1]  ;;  %v634_v61 = vshrl.u32 %v625_v40, 16  ;;  %v637_v0 = vshll.u32 %v625_v40, 16 }
  0x20   : > { %v380_v62 = vrot.slane %v378_v52, 5  ;;  %v389_v63 = vor.u32 %v388_v53, %v385_v50  ;;  %v643_v1 = vshll.u32 %v626_v54, 16  ;;  %v394_v4 = vrot.slane %v392_v59, 5  ;;  %348 = vst [vmem:[#allocation2 + $0x24] sm:$0x1] %v347_v55 }
  0x21   : > { %v375_v3 = vor.u32 %v374_v58, %v371_v57  ;;  %v636_v5 = vrot.slane %v634_v61, 4  ;;  %v648_v6 = vshrl.u32 %v627_v45, 16  ;;  %v639_v8 = vrot.slane %v637_v0, 5  ;;  %v968_v13 = vld [vmem:[#allocation2 + $0x18] sm:$0xf] }
  0x22   : > { %v390_v7 = vrot.slane %v389_v63, 4  ;;  %v651_v9 = vshll.u32 %v627_v45, 16  ;;  %v657_v12 = vshll.u32 %v628_v60, 16  ;;  %v934_v14 = vld [vmem:[#allocation2 + $0x10] sm:$0xf]  ;;  %v645_v17 = vrot.slane %v643_v1, 5 }
  0x23   : > { %v376_v10 = vrot.slane %v375_v3, 4  ;;  %v650_v11 = vrot.slane %v648_v6, 4  ;;  %v640_v16 = vor.u32 %v639_v8, %v636_v5  ;;  %v1020_v19 = vld [vmem:[#allocation2 + $0x14] sm:$0xf0]  ;;  %v351_v24 = vld [vmem:[#allocation2 + $0x10] sm:$0xf] }
  0x24   : > { %v395_v15 = vsel %vm1224_vm7, %v390_v7, %v394_v4  ;;  %v653_v18 = vrot.slane %v651_v9, 5  ;;  %v659_v22 = vrot.slane %v657_v12, 5  ;;  %v935_v23 = vor.u32 %v1020_v19, %v934_v14  ;;  %v352_v25 = vld [vmem:[#allocation2 + $0x18] sm:$0xf]  ;;  %v363_v29 = vld [vmem:[#allocation2 + $0x14] sm:$0x1] }
  0x25   : > { %v381_v20 = vsel %vm1224_vm7, %v376_v10, %v380_v62  ;;  %v434_v21 = vunpack.c.l.b16 %v395_v15  ;;  %v641_v27 = vrot.slane %v640_v16, 4  ;;  %v397_v30 = vshrl.u32 %v351_v24, 16  ;;  %v629_v31 = vld [vmem:[#allocation2 + $0x18] sm:$0xf]  ;;  %v1030_v32 = vld [vmem:[#allocation2 + $0x1c] sm:$0xf0] }
  0x26   : > { %v433_v26 = vunpack.c.l.b16 %v381_v20  ;;  %v654_v28 = vor.u32 %v653_v18, %v650_v11  ;;  %v400_v33 = vshll.u32 %v351_v24, 16  ;;  %v406_v34 = vshll.u32 %v363_v29, 16  ;;  %v631_v41 = vld [vmem:[#allocation2 + $0x20] sm:$0xf]  ;;  %v364_v51 = vld [vmem:[#allocation2 + $0x1c] sm:$0x1] }
  0x27   : > { %v411_v35 = vshrl.u32 %v352_v25, 16  ;;  %v414_v36 = vshll.u32 %v352_v25, 16  ;;  %v646_v38 = vsel %vm1224_vm7, %v641_v27, %v645_v17  ;;  %v969_v40 = vor.u32 %v1030_v32, %v968_v13  ;;  %v630_v53 = vld [vmem:[#allocation2 + $0x1c] sm:$0x1]  ;;  %v632_v58 = vld [vmem:[#allocation2 + $0x24] sm:$0x1] }
  0x28   : > { %v437_v37 = vpack.c.b16 %v434_v21, %v433_v26  ;;  %v655_v39 = vrot.slane %v654_v28, 4  ;;  %v698_v42 = vunpack.c.l.b16 %v646_v38  ;;  %v399_v43 = vrot.slane %v397_v30, 4  ;;  %v1066_v2 = vld [vmem:[%s1279_s3] ss:$0 sm:$0xff] }
  0x29   : > { %v402_v44 = vrot.slane %v400_v33, 5  ;;  %v408_v45 = vrot.slane %v406_v34, 5  ;;  %v413_v47 = vrot.slane %v411_v35, 4  ;;  %v416_v48 = vrot.slane %v414_v36, 5 }
  0x2a   : > { %926 = vmatmul.msk.bf16.vlgmr.msra.gmra.mxu0 %vm463_vm4, %v437_v37  ;;  %v660_v46 = vsel %vm1224_vm7, %v655_v39, %v659_v22  ;;  %v662_v49 = vshrl.u32 %v629_v31, 16  ;;  %v665_v54 = vshll.u32 %v629_v31, 16  ;;  %v676_v55 = vshrl.u32 %v631_v41, 16 }
  0x2b   : > { %v699_v50 = vunpack.c.l.b16 %v660_v46  ;;  %v403_v52 = vor.u32 %v402_v44, %v399_v43  ;;  %v417_v56 = vor.u32 %v416_v48, %v413_v47  ;;  %v420_v57 = vshll.u32 %v364_v51, 16 }
  0x2c   : > { %v664_v59 = vrot.slane %v662_v49, 4  ;;  %v671_v60 = vshll.u32 %v630_v53, 16  ;;  %v667_v63 = vrot.slane %v665_v54, 5  ;;  %v678_v3 = vrot.slane %v676_v55, 4 }
  0x2d   : > { %v702_v61 = vpack.c.b16 %v699_v50, %v698_v42  ;;  %v404_v62 = vrot.slane %v403_v52, 4  ;;  %987 = vmatmul.msk.bf16.gmra.mxu2 %vm463_vm4, %v969_v40  ;;  %v418_v0 = vrot.slane %v417_v56, 4  ;;  %v422_v1 = vrot.slane %v420_v57, 5 }
  0x2e   : > { %v679_v4 = vshll.u32 %v631_v41, 16  ;;  %953 = vmatmul.msk.bf16.gmra.mxu1 %vm463_vm4, %v935_v23  ;;  %v668_v6 = vor.u32 %v667_v63, %v664_v59  ;;  %v685_v7 = vshll.u32 %v632_v58, 16  ;;  %v673_v9 = vrot.slane %v671_v60, 5 }
  0x2f   : > { %1012 = vmatmul.msk.bf16.vlgmr.msra.gmra.mxu3 %vm463_vm4, %v702_v61  ;;  %v409_v5 = vsel %vm1224_vm7, %v404_v62, %v408_v45  ;;  %v423_v8 = vsel %vm1224_vm7, %v418_v0, %v422_v1 }
  0x30   : > { %v681_v10 = vrot.slane %v679_v4, 5  ;;  %v669_v11 = vrot.slane %v668_v6, 4  ;;  %v435_v12 = vunpack.c.l.b16 %v409_v5  ;;  %v436_v13 = vunpack.c.l.b16 %v423_v8 }
  0x31   : > { %v687_v15 = vrot.slane %v685_v7, 5 }
  0x32   : > { %v682_v14 = vor.u32 %v681_v10, %v678_v3  ;;  %v674_v16 = vsel %vm1224_vm7, %v669_v11, %v673_v9  ;;  %v438_v18 = vpack.c.b16 %v436_v13, %v435_v12 }
  0x33   : > { %v700_v20 = vunpack.c.l.b16 %v674_v16 }
  0x34   : > { %v683_v17 = vrot.slane %v682_v14, 4 }
  0x36   : > { %v688_v19 = vsel %vm1224_vm7, %v683_v17, %v687_v15 }
  0x37   : > { %v701_v21 = vunpack.c.l.b16 %v688_v19 }
  0x39   : > { %v703_v22 = vpack.c.b16 %v701_v21, %v700_v20 }
  0x3a   : > { %927 = vmatmul.msk.bf16.gmra.mxu0 %vm463_vm4, %v438_v18 }
  0x3f   : > { %1013 = vmatmul.msk.bf16.gmra.mxu3 %vm463_vm4, %v703_v22 }
  0x9b   : > { %v538_v23 = vpop.f32.mrf.mxu1 }
  0xa0   : > { %v611_v25 = vpop.f32.mrf.mxu2 }
  0xa3   : > { %v540_v29 = vpop.f32.mrf.mxu1 }
  0xa7   : > { %v479_v24 = vpop.f32.mrf.mxu0 }
  0xa8   : > { %v539_v26 = vadd.f32 %v538_v23, %v479_v24  ;;  %v613_v32 = vpop.f32.mrf.mxu2 }
  0xaa   : > { %v621_v27 = vadd.f32 %v611_v25, %v539_v26 }
  0xab   : > { %v543_v39 = vpop.f32.mrf.mxu1 }
  0xaf   : > { %v481_v28 = vpop.f32.mrf.mxu0 }
  0xb0   : > { %v541_v34 = vadd.f32 %v540_v29, %v481_v28  ;;  %v616_v45 = vpop.f32.mrf.mxu2 }
  0xb2   : > { %v743_v30 = vpop.f32.mrf.mxu3  ;;  %v622_v38 = vadd.f32 %v613_v32, %v541_v34 }
  0xb3   : > { %v753_v31 = vadd.f32 %v743_v30, %v621_v27  ;;  %v545_v53 = vpop.f32.mrf.mxu1 }
  0xb5   : > { %v761_v33 = vadd.f32 %v1066_v2, %v753_v31 }
  0xb7   : > { %v765_v35 = vmul.f32 0.2, %v761_v33  ;;  %v484_v36 = vpop.f32.mrf.mxu0 }
  0xb8   : > { %v544_v43 = vadd.f32 %v543_v39, %v484_v36  ;;  %v618_v57 = vpop.f32.mrf.mxu2 }
  0xb9   : > { %v769_v37 = vmax.f32 %v761_v33, %v765_v35 }
  0xba   : > { %v745_v40 = vpop.f32.mrf.mxu3  ;;  %v623_v47 = vadd.f32 %v616_v45, %v544_v43 }
  0xbb   : > { %v773_v41 = vpack.c.bf16 %v769_v37, %v769_v37  ;;  %v754_v42 = vadd.f32 %v745_v40, %v622_v38 }
  0xbd   : > { %778 = vst.msk [vmem:[%s1257_s20] sm:$0xf] %vm777_vm8, %v773_v41  ;;  %v762_v44 = vadd.f32 %v1066_v2, %v754_v42 }
  0xbf   : > { %v766_v46 = vmul.f32 0.2, %v762_v44  ;;  %v486_v50 = vpop.f32.mrf.mxu0 }
  0xc0   : > { %v546_v55 = vadd.f32 %v545_v53, %v486_v50 }
  0xc1   : > { %v770_v48 = vmax.f32 %v762_v44, %v766_v46 }
  0xc2   : > { %v748_v49 = vpop.f32.mrf.mxu3  ;;  %v624_v59 = vadd.f32 %v618_v57, %v546_v55 }
  0xc3   : > { %v774_v51 = vpack.c.bf16 %v770_v48, %v770_v48  ;;  %v755_v52 = vadd.f32 %v748_v49, %v623_v47 }
  0xc5   : > { %779 = vst.msk [vmem:[%s1257_s20 + $0x4] sm:$0xf] %vm777_vm8, %v774_v51  ;;  %v763_v54 = vadd.f32 %v1066_v2, %v755_v52 }
  0xc7   : > { %v767_v56 = vmul.f32 0.2, %v763_v54 }
  0xc9   : > { %v771_v58 = vmax.f32 %v763_v54, %v767_v56 }
  0xca   : > { %v750_v60 = vpop.f32.mrf.mxu3 }
  0xcb   : > { %v775_v61 = vpack.c.bf16 %v771_v58, %v771_v58  ;;  %v756_v62 = vadd.f32 %v750_v60, %v624_v59 }
  0xcd   : > { %780 = vst.msk [vmem:[%s1257_s20 + $0x8] sm:$0xf] %vm777_vm8, %v775_v61  ;;  %v764_v63 = vadd.f32 %v1066_v2, %v756_v62 }
  0xcf   : > { %v768_v0 = vmul.f32 0.2, %v764_v63 }
  0xd1   : > { %v772_v1 = vmax.f32 %v764_v63, %v768_v0 }
  0xd3   : > { %v776_v3 = vpack.c.bf16 %v772_v1, %v772_v1 }
  0xd5   : > { %781 = vst.msk [vmem:[%s1257_s20 + $0xc] sm:$0xf] %vm777_vm8, %v776_v3 }
  0xd6 PF: > { %s14_s17 = sadd.s32 1, %s1089_s17   ;;  %s1285_s15 = smov %s1085_s16 }
  0xd7   : > { %p11_p5 = scmp.ge.s32.totalorder %s14_s17, 4   ;;  %s1286_s16 = smov %s1288_s18 }
  0xd9   :  { %13 = sbr.rel (!%p11_p5) target bundleno = 2 (0x2), region = 74 }

// kernel: fc_discriminator_forward.8
= control target key start
LH: loop header
LB: loop body
LE: loop exit
PB: predicated region body
PF: predicated region fallthrough
CT: control target
= control target key end

     0   :  { %s1179_s15 = smov 0   ;;  %s1181_s16 = smov 0   ;;  %s1344_s0 = inlined_call_operand.vmem [shape: bf16[2,3,9,128], index: 0, kind: input, shape index: {}, may-alias: {0,1}]   ;;  %s1345_s1 = inlined_call_operand.vmem [shape: bf16[2,3,9,128], index: 1, kind: input, shape index: {}, may-alias: {0,1}]   ;;  %s1346_s2 = inlined_call_operand.vmem [shape: bf16[4,128,64], index: 2, kind: input, shape index: {}]   ;;  %s1347_s3 = inlined_call_operand.vmem [shape: f32[1,64], index: 3, kind: input, shape index: {}]   ;;  %s1348_s4 = inlined_call_operand.vmem [shape: bf16[2,16,64], index: 4, kind: output, shape index: {}]  }
   0x1   :  { %s1183_s17 = smov 0  }
   0x2 LB: > { %s26_s18 = sadd.s32 1, %s1148_s16  ;;  %p874_p0 = scmp.ge.s32.totalorder %s1152_s17, 1  ;;  %s1152_s17 = sphi %s1183_s17, %s14_s17   ;;  %s1148_s16 = sphi %s1181_s16, %s1354_s16   ;;  %s1144_s15 = sphi %s1179_s15, %s1353_s15  }
   0x3   : > { %p28_p1 = scmp.ge.s32.totalorder %s26_s18, 2  ;;  %p218_p2 = scmp.lt.s32.totalorder %s1152_s17, 3 }
   0x5   : > { %s1356_s18 = smov (%p28_p1, %s26_s18), 0  ;;  %p219_p3 = pnand %p874_p0, %p218_p2 }
   0x6   : > { %p275_p4 = scmp.lt.s32.totalorder (!%p219_p3), %s1144_s15, 1 }
   0x7   : > { %222 = sbr.rel (%p219_p3) target bundleno = 199 (0xc7), region = 36 }
   0xc   : > { %v1084_v0 = vld [vmem:[%s1346_s2 + $0x78] sm:$0xff]  ;;  %v1083_v4 = vld [vmem:[%s1346_s2 + $0x70] sm:$0xff]  ;;  %s1358_s15 = smov (!%p275_p4, %s1144_s15), 1  ;;  %v1082_v8 = vld [vmem:[%s1346_s2 + $0x68] sm:$0xff]  ;;  %vm318_vm0 = vcmask 1040384   ;;  %vm756_vm6 = vcmask 519168  }
   0xd   : > { %v1076_v1 = vld [vmem:[%s1346_s2 + $0x38] sm:$0xff]  ;;  %455 = vmatpush.bf16.msra.mxu0 %v1084_v0  ;;  %v1075_v5 = vld [vmem:[%s1346_s2 + $0x30] sm:$0xff]  ;;  %s1102_s9 = smul.u32 24, %s1358_s15  ;;  %v1074_v9 = vld [vmem:[%s1346_s2 + $0x28] sm:$0xff]  ;;  %vm319_vm1 = vsmask.f32 256 }
   0xe   : > { %v1093_v2 = vld [vmem:[%s1346_s2 + $0xb8] sm:$0xff]  ;;  %523 = vmatpush.bf16.msra.mxu1 %v1076_v1  ;;  %v1092_v6 = vld [vmem:[%s1346_s2 + $0xb0] sm:$0xff]  ;;  %v1091_v10 = vld [vmem:[%s1346_s2 + $0xa8] sm:$0xff]  ;;  %vm355_vm3 = vsmask.f32 3328  ;;  %s1067_s27 = sshll.u32 %s1358_s15, 3 }
   0xf   : > { %v1101_v3 = vld [vmem:[%s1346_s2 + $0xf8] sm:$0xff]  ;;  %611 = vmatpush.bf16.msra.mxu2 %v1093_v2  ;;  %v1100_v7 = vld [vmem:[%s1346_s2 + $0xf0] sm:$0xff]  ;;  %v1099_v11 = vld [vmem:[%s1346_s2 + $0xe8] sm:$0xff]  ;;  %s283_s24 = scalar_lea.vmem %s1344_s0, %s1102_s9  ;;  %s1066_s25 = sadd.s32 16, %s1102_s9  ;;  %vm356_vm4 = vsmask.f32 7440 }
  0x10   : > { %728 = vmatpush.bf16.msra.mxu3 %v1101_v3  ;;  %v1081_v12 = vld [vmem:[%s1346_s2 + $0x60] sm:$0xff]  ;;  %s300_s10 = scalar_lea.vmem %s1345_s1, %s1066_s25  ;;  %v315_v18 = vld [vmem:[%s283_s24 + $0x8] sm:$0xf]  ;;  %v316_v19 = vld [vmem:[%s283_s24 + $0xc] sm:$0x1]  ;;  %s311_s30 = scalar_lea.vmem %s1348_s4, %s1067_s27 }
  0x11   : > { %456 = vmatpush.bf16.msra.mxu0 %v1083_v4  ;;  %v1073_v13 = vld [vmem:[%s1346_s2 + $0x20] sm:$0xff]  ;;  %v1080_v20 = vld [vmem:[%s1346_s2 + $0x58] sm:$0xff]  ;;  %vm1262_vm2 = vmand %vm318_vm0, %vm319_vm1  ;;  %324 = vst [vmem:[#allocation2 + $0x8] sm:$0xf] %v315_v18 }
  0x12   : > { %524 = vmatpush.bf16.msra.mxu1 %v1075_v5  ;;  %v1090_v14 = vld [vmem:[%s1346_s2 + $0xa0] sm:$0xff]  ;;  %v1072_v21 = vld [vmem:[%s1346_s2 + $0x18] sm:$0xff]  ;;  %v325_v24 = vld [vmem:[#allocation2 + $0xc] sm:$0x1] }
  0x13   : > { %612 = vmatpush.bf16.msra.mxu2 %v1092_v6  ;;  %v1098_v15 = vld [vmem:[%s1346_s2 + $0xe0] sm:$0xff]  ;;  %v326_v26 = vsel %vm1262_vm2, %v316_v19, %v325_v24  ;;  %v332_v29 = vld [vmem:[#allocation2 + $0x14] sm:$0x1]  ;;  %v1089_v30 = vld [vmem:[%s1346_s2 + $0x98] sm:$0xff] }
  0x14   : > { %729 = vmatpush.bf16.msra.mxu3 %v1100_v7  ;;  %v313_v16 = vld [vmem:[%s283_s24] sm:$0xf]  ;;  %v314_v17 = vld [vmem:[%s283_s24 + $0x4] sm:$0x1]  ;;  %v1097_v31 = vld [vmem:[%s1346_s2 + $0xd8] sm:$0xff] }
  0x15   : > { %457 = vmatpush.bf16.msra.mxu0 %v1082_v8  ;;  %317 = vst [vmem:[#allocation2] sm:$0xf] %v313_v16  ;;  %v321_v23 = vld [vmem:[#allocation2 + $0x4] sm:$0x1]  ;;  %v328_v27 = vld [vmem:[%s300_s10] sm:$0xf]  ;;  %vm1316_vm5 = vmor %vm355_vm3, %vm356_vm4 }
  0x16   : > { %525 = vmatpush.bf16.msra.mxu1 %v1074_v9  ;;  %v322_v25 = vsel %vm1262_vm2, %v314_v17, %v321_v23  ;;  %v329_v28 = vld [vmem:[%s300_s10 + $0x4] sm:$0x1]  ;;  %327 = vst [vmem:[#allocation2 + $0xc] sm:$0x1] %v326_v26  ;;  %v1079_v33 = vld [vmem:[%s1346_s2 + $0x50] sm:$0xff]  ;;  %v1078_v41 = vld [vmem:[%s1346_s2 + $0x48] sm:$0xff] }
  0x17   : > { %613 = vmatpush.bf16.msra.mxu2 %v1091_v10  ;;  %323 = vst [vmem:[#allocation2 + $0x4] sm:$0x1] %v322_v25  ;;  %v333_v32 = vsel %vm1262_vm2, %v329_v28, %v332_v29  ;;  %v1071_v34 = vld [vmem:[%s1346_s2 + $0x10] sm:$0xff]  ;;  %v1070_v45 = vld [vmem:[%s1346_s2 + $0x8] sm:$0xff]  ;;  %v1077_v55 = vld [vmem:[%s1346_s2 + $0x40] sm:$0xff] }
  0x18   : > { %730 = vmatpush.bf16.msra.mxu3 %v1099_v11  ;;  %331 = vst [vmem:[#allocation2 + $0x10] sm:$0xf] %v328_v27  ;;  %v1088_v35 = vld [vmem:[%s1346_s2 + $0x90] sm:$0xff]  ;;  %v336_v38 = vld [vmem:[#allocation2 + $0x8] sm:$0xf]  ;;  %v1069_v56 = vld [vmem:[%s1346_s2] sm:$0xff] }
  0x19   : > { %458 = vmatpush.bf16.msra.mxu0 %v1081_v12  ;;  %334 = vst [vmem:[#allocation2 + $0x14] sm:$0x1] %v333_v32  ;;  %v1096_v36 = vld [vmem:[%s1346_s2 + $0xd0] sm:$0xff]  ;;  %v373_v43 = vshrl.u32 %v336_v38, 16  ;;  %v376_v44 = vshll.u32 %v336_v38, 16  ;;  %v1087_v50 = vld [vmem:[%s1346_s2 + $0x88] sm:$0xff] }
  0x1a   : > { %526 = vmatpush.bf16.msra.mxu1 %v1073_v13  ;;  %v1095_v51 = vld [vmem:[%s1346_s2 + $0xc8] sm:$0xff]  ;;  %v1086_v63 = vld [vmem:[%s1346_s2 + $0x80] sm:$0xff] }
  0x1b   : > { %614 = vmatpush.bf16.msra.mxu2 %v1090_v14  ;;  %v375_v52 = vrot.slane %v373_v43, 4  ;;  %v378_v53 = vrot.slane %v376_v44, 5  ;;  %v1068_v60 = vld [vmem:[#allocation2 + $0x4] sm:$0xf0]  ;;  %v1094_v0 = vld [vmem:[%s1346_s2 + $0xc0] sm:$0xff] }
  0x1c   : > { %731 = vmatpush.bf16.msra.mxu3 %v1098_v15  ;;  %v335_v37 = vld [vmem:[#allocation2] sm:$0xf]  ;;  %v627_v61 = vld [vmem:[#allocation2 + $0x8] sm:$0xf] }
  0x1d   : > { %459 = vmatpush.bf16.msra.mxu0 %v1080_v20  ;;  %v359_v39 = vshrl.u32 %v335_v37, 16  ;;  %v362_v40 = vshll.u32 %v335_v37, 16  ;;  %v354_v46 = vld [vmem:[#allocation2 + $0xc] sm:$0x1]  ;;  %v929_v59 = vld [vmem:[#allocation2] sm:$0xf]  ;;  %v379_v2 = vor.u32 %v378_v53, %v375_v52 }
  0x1e   : > { %527 = vmatpush.bf16.msra.mxu1 %v1072_v21  ;;  %v353_v42 = vld [vmem:[#allocation2 + $0x4] sm:$0x1]  ;;  %v382_v54 = vshll.u32 %v354_v46, 16  ;;  %v628_v62 = vld [vmem:[#allocation2 + $0xc] sm:$0x1]  ;;  %v632_v6 = vshrl.u32 %v627_v61, 16  ;;  %v930_v22 = vor.u32 %v1068_v60, %v929_v59 }
  0x1f   : > { %615 = vmatpush.bf16.msra.mxu2 %v1089_v30  ;;  %v361_v47 = vrot.slane %v359_v39, 4  ;;  %v364_v48 = vrot.slane %v362_v40, 5  ;;  %v368_v49 = vshll.u32 %v353_v42, 16  ;;  %v629_v4 = vld [vmem:[#allocation2 + $0x10] sm:$0xf]  ;;  %v635_v9 = vshll.u32 %v627_v61, 16 }
  0x20   : > { %732 = vmatpush.bf16.msra.mxu3 %v1097_v31  ;;  %v384_v3 = vrot.slane %v382_v54, 5  ;;  %v630_v5 = vld [vmem:[#allocation2 + $0x14] sm:$0x1]  ;;  %v981_v8 = vld [vmem:[#allocation2 + $0x8] sm:$0xf]  ;;  %v641_v10 = vshll.u32 %v628_v62, 16 }
  0x21   : > { %460 = vmatpush.bf16.msra.mxu0 %v1079_v33  ;;  %v365_v57 = vor.u32 %v364_v48, %v361_v47  ;;  %v370_v58 = vrot.slane %v368_v49, 5  ;;  %v646_v11 = vshrl.u32 %v629_v4, 16  ;;  %v380_v12 = vrot.slane %v379_v2, 4  ;;  %v1085_v13 = vld [vmem:[#allocation2 + $0xc] sm:$0xf0] }
  0x22   : > { %528 = vmatpush.bf16.msra.mxu1 %v1071_v34  ;;  %v634_v14 = vrot.slane %v632_v6, 4  ;;  %v649_v15 = vshll.u32 %v629_v4, 16  ;;  %v655_v16 = vshll.u32 %v630_v5, 16  ;;  %v637_v18 = vrot.slane %v635_v9, 5  ;;  %v1129_v43 = vld [vmem:[%s1347_s3] ss:$0 sm:$0xff] }
  0x23   : > { %616 = vmatpush.bf16.msra.mxu2 %v1088_v35  ;;  %v366_v7 = vrot.slane %v365_v57, 4  ;;  %v648_v19 = vrot.slane %v646_v11, 4  ;;  %v385_v20 = vsel %vm1316_vm5, %v380_v12, %v384_v3  ;;  %v982_v25 = vor.u32 %v1085_v13, %v981_v8 }
  0x24   : > { %733 = vmatpush.bf16.msra.mxu3 %v1096_v36  ;;  %v651_v23 = vrot.slane %v649_v15, 5  ;;  %v404_v24 = vunpack.c.l.b16 %v385_v20  ;;  %v638_v26 = vor.u32 %v637_v18, %v634_v14  ;;  %v643_v27 = vrot.slane %v641_v10, 5 }
  0x25   : > { %461 = vmatpush.bf16.msra.mxu0 %v1078_v41  ;;  %v371_v17 = vsel %vm1316_vm5, %v366_v7, %v370_v58  ;;  %v657_v29 = vrot.slane %v655_v16, 5 }
  0x26   : > { %529 = vmatpush.bf16.msra.mxu1 %v1070_v45  ;;  %v403_v21 = vunpack.c.l.b16 %v371_v17  ;;  %v652_v28 = vor.u32 %v651_v23, %v648_v19  ;;  %v639_v31 = vrot.slane %v638_v26, 4 }
  0x27   : > { %617 = vmatpush.bf16.msra.mxu2 %v1087_v50 }
  0x28   : > { %734 = vmatpush.bf16.msra.mxu3 %v1095_v51  ;;  %v405_v30 = vpack.c.b16 %v404_v24, %v403_v21  ;;  %v653_v32 = vrot.slane %v652_v28, 4  ;;  %v644_v33 = vsel %vm1316_vm5, %v639_v31, %v643_v27 }
  0x29   : > { %462 = vmatpush.bf16.msra.mxu0 %v1077_v55  ;;  %v676_v35 = vunpack.c.l.b16 %v644_v33 }
  0x2a   : > { %530 = vmatpush.bf16.msra.mxu1 %v1069_v56  ;;  %v658_v34 = vsel %vm1316_vm5, %v653_v32, %v657_v29 }
  0x2b   : > { %618 = vmatpush.bf16.msra.mxu2 %v1086_v63  ;;  %v677_v36 = vunpack.c.l.b16 %v658_v34 }
  0x2c   : > { %735 = vmatpush.bf16.msra.mxu3 %v1094_v0  ;;  %463 = vmatmul.bf16.vlgmr.msra.gmra.mxu0 %v405_v30 }
  0x2d   : > { %531 = vmatmul.bf16.vlgmr.msra.gmra.mxu1 %v930_v22  ;;  %v678_v37 = vpack.c.b16 %v677_v36, %v676_v35 }
  0x2e   : > { %619 = vmatmul.bf16.vlgmr.msra.gmra.mxu2 %v982_v25 }
  0x2f   : > { %736 = vmatmul.bf16.vlgmr.msra.gmra.mxu3 %v678_v37 }
  0xa9   : > { %v464_v39 = vpop.f32.mrf.mxu0 }
  0xaa   : > { %v532_v38 = vpop.f32.mrf.mxu1 }
  0xab   : > { %v533_v40 = vadd.f32 %v532_v38, %v464_v39 }
  0xb1   : > { %v620_v41 = vpop.f32.mrf.mxu2  ;;  %v466_v46 = vpop.f32.mrf.mxu0 }
  0xb2   : > { %v625_v42 = vadd.f32 %v620_v41, %v533_v40  ;;  %v534_v44 = vpop.f32.mrf.mxu1  ;;  %v737_v45 = vpop.f32.mrf.mxu3 }
  0xb3   : > { %v535_v50 = vadd.f32 %v534_v44, %v466_v46 }
  0xb4   : > { %v742_v47 = vadd.f32 %v737_v45, %v625_v42 }
  0xb6   : > { %v748_v49 = vadd.f32 %v1129_v43, %v742_v47 }
  0xb8   : > { %v750_v51 = vmul.f32 0.2, %v748_v49 }
  0xb9   : > { %v622_v48 = vpop.f32.mrf.mxu2 }
  0xba   : > { %v626_v52 = vadd.f32 %v622_v48, %v535_v50  ;;  %v752_v53 = vmax.f32 %v748_v49, %v750_v51  ;;  %v739_v54 = vpop.f32.mrf.mxu3 }
  0xbc   : > { %v754_v55 = vpack.c.bf16 %v752_v53, %v752_v53  ;;  %v743_v56 = vadd.f32 %v739_v54, %v626_v52 }
  0xbe   : > { %757 = vst.msk [vmem:[%s311_s30] sm:$0xf] %vm756_vm6, %v754_v55  ;;  %v749_v57 = vadd.f32 %v1129_v43, %v743_v56 }
  0xc0   : > { %v751_v58 = vmul.f32 0.2, %v749_v57 }
  0xc2   : > { %v753_v59 = vmax.f32 %v749_v57, %v751_v58 }
  0xc4   : > { %v755_v60 = vpack.c.bf16 %v753_v59, %v753_v59 }
  0xc6   : > { %758 = vst.msk [vmem:[%s311_s30 + $0x4] sm:$0xf] %vm756_vm6, %v755_v60 }
  0xc7 PF: > { %s14_s17 = sadd.s32 1, %s1152_s17   ;;  %s1353_s15 = smov %s1148_s16 }
  0xc8   : > { %p11_p5 = scmp.ge.s32.totalorder %s14_s17, 4   ;;  %s1354_s16 = smov %s1356_s18 }
  0xca   :  { %13 = sbr.rel (!%p11_p5) target bundleno = 2 (0x2), region = 74 }

// kernel: fc_discriminator_forward.9
= control target key start
LH: loop header
LB: loop body
LE: loop exit
PB: predicated region body
PF: predicated region fallthrough
CT: control target
= control target key end

     0   :  { %s1599_s15 = smov 0   ;;  %s1601_s16 = smov 0   ;;  %s1862_s0 = inlined_call_operand.vmem [shape: bf16[2,2,9,256], index: 0, kind: input, shape index: {}, may-alias: {0,1}]   ;;  %s1863_s1 = inlined_call_operand.vmem [shape: bf16[2,2,9,256], index: 1, kind: input, shape index: {}, may-alias: {0,1}]   ;;  %s1864_s2 = inlined_call_operand.vmem [shape: bf16[4,256,128], index: 2, kind: input, shape index: {}]   ;;  %s1865_s3 = inlined_call_operand.vmem [shape: f32[1,128], index: 3, kind: input, shape index: {}]   ;;  %s1866_s4 = inlined_call_operand.vmem [shape: f32[2,8,128], index: 4, kind: output, shape index: {}]  }
   0x1   :  { %s1603_s17 = smov 0  }
   0x2 LB: > { %s26_s18 = sadd.s32 1, %s1568_s16  ;;  %p1087_p0 = scmp.ge.s32.totalorder %s1572_s17, 1  ;;  %s1572_s17 = sphi %s1603_s17, %s14_s17   ;;  %s1568_s16 = sphi %s1601_s16, %s1872_s16   ;;  %s1564_s15 = sphi %s1599_s15, %s1871_s15  }
   0x3   : > { %p28_p1 = scmp.ge.s32.totalorder %s26_s18, 2  ;;  %p202_p2 = scmp.lt.s32.totalorder %s1572_s17, 3 }
   0x5   : > { %s1874_s18 = smov (%p28_p1, %s26_s18), 0  ;;  %p203_p3 = pnand %p1087_p0, %p202_p2 }
   0x6   : > { %p244_p4 = scmp.lt.s32.totalorder (!%p203_p3), %s1564_s15, 1 }
   0x7   : > { %206 = sbr.rel (%p203_p3) target bundleno = 219 (0xdb), region = 36 }
   0xc   : > { %v1481_v0 = vld [vmem:[%s1864_s2 + $0xb8] sm:$0xff]  ;;  %v1480_v4 = vld [vmem:[%s1864_s2 + $0xb0] sm:$0xff]  ;;  %s1876_s15 = smov (!%p244_p4, %s1564_s15), 1  ;;  %v1479_v8 = vld [vmem:[%s1864_s2 + $0xa8] sm:$0xff]  ;;  %vm274_vm0 = vcmask 1040384   ;;  %vm277_vm2 = vcmask 1044484  }
   0xd   : > { %v1489_v1 = vld [vmem:[%s1864_s2 + $0xf8] sm:$0xff]  ;;  %478 = vmatpush.bf16.msra.mxu0 %v1481_v0  ;;  %v1488_v5 = vld [vmem:[%s1864_s2 + $0xf0] sm:$0xff]  ;;  %v1487_v9 = vld [vmem:[%s1864_s2 + $0xe8] sm:$0xff]  ;;  %s1455_s21 = sshll.u32 %s1876_s15, 5  ;;  %vm275_vm1 = vsmask.f32 256 }
   0xe   : > { %v1465_v2 = vld [vmem:[%s1864_s2 + $0x38] sm:$0xff]  ;;  %491 = vmatpush.bf16.msra.mxu1 %v1489_v1  ;;  %v1464_v6 = vld [vmem:[%s1864_s2 + $0x30] sm:$0xff]  ;;  %v1463_v10 = vld [vmem:[%s1864_s2 + $0x28] sm:$0xff]  ;;  %s252_s6 = scalar_lea.vmem %s1862_s0, %s1455_s21  ;;  %vm278_vm3 = vsmask.f32 4352  ;;  %s1457_s11 = sadd.s32 16, %s1455_s21 }
   0xf   : > { %v1473_v3 = vld [vmem:[%s1864_s2 + $0x78] sm:$0xff]  ;;  %604 = vmatpush.bf16.msra.mxu2 %v1465_v2  ;;  %v1472_v7 = vld [vmem:[%s1864_s2 + $0x70] sm:$0xff]  ;;  %v1471_v11 = vld [vmem:[%s1864_s2 + $0x68] sm:$0xff]  ;;  %s262_s22 = scalar_lea.vmem %s1863_s1, %s1457_s11  ;;  %s1092_s23 = sshll.u32 %s1876_s15, 3 }
  0x10   : > { %617 = vmatpush.bf16.msra.mxu3 %v1473_v3  ;;  %v1478_v12 = vld [vmem:[%s1864_s2 + $0xa0] sm:$0xff]  ;;  %v1477_v16 = vld [vmem:[%s1864_s2 + $0x98] sm:$0xff]  ;;  %v272_v19 = vld [vmem:[%s252_s6 + $0x8] sm:$0x11]  ;;  %s270_s28 = scalar_lea.vmem %s1866_s4, %s1092_s23 }
  0x11   : > { %479 = vmatpush.bf16.msra.mxu0 %v1480_v4  ;;  %v1486_v13 = vld [vmem:[%s1864_s2 + $0xe0] sm:$0xff]  ;;  %v1485_v17 = vld [vmem:[%s1864_s2 + $0xd8] sm:$0xff]  ;;  %vm1677_vm4 = vmand %vm274_vm0, %vm275_vm1 }
  0x12   : > { %492 = vmatpush.bf16.msra.mxu1 %v1488_v5  ;;  %v1462_v14 = vld [vmem:[%s1864_s2 + $0x20] sm:$0xff]  ;;  %v281_v21 = vld [vmem:[#allocation2 + $0x8] sm:$0x11]  ;;  %v1461_v22 = vld [vmem:[%s1864_s2 + $0x18] sm:$0xff] }
  0x13   : > { %605 = vmatpush.bf16.msra.mxu2 %v1464_v6  ;;  %v1470_v15 = vld [vmem:[%s1864_s2 + $0x60] sm:$0xff]  ;;  %v1469_v23 = vld [vmem:[%s1864_s2 + $0x58] sm:$0xff]  ;;  %vm1688_vm5 = vmand %vm277_vm2, %vm278_vm3 }
  0x14   : > { %618 = vmatpush.bf16.msra.mxu3 %v1472_v7  ;;  %v271_v18 = vld [vmem:[%s252_s6] sm:$0xff]  ;;  %vm280_vm6 = vmor %vm1688_vm5, %vm1677_vm4  ;;  %v1476_v26 = vld [vmem:[%s1864_s2 + $0x90] sm:$0xff] }
  0x15   : > { %480 = vmatpush.bf16.msra.mxu0 %v1479_v8  ;;  %v282_v25 = vsel %vm280_vm6, %v272_v19, %v281_v21  ;;  %v1484_v27 = vld [vmem:[%s1864_s2 + $0xd0] sm:$0xff]  ;;  %v1716_v30 = vld [vmem:[%s262_s22] sm:$0xff]  ;;  %v285_v31 = vld [vmem:[%s262_s22 + $0x8] sm:$0x11]  ;;  %v360_v38 = vunpack.c.l.b16 %v271_v18  ;;  %v361_v39 = vunpack.c.h.b16 %v271_v18 }
  0x16   : > { %493 = vmatpush.bf16.msra.mxu1 %v1487_v9  ;;  %283 = vst [vmem:[#allocation2 + $0x8] sm:$0x11] %v282_v25  ;;  %v1460_v28 = vld [vmem:[%s1864_s2 + $0x10] sm:$0xff]  ;;  %v288_v32 = vld [vmem:[#allocation2 + $0x18] sm:$0x11]  ;;  %v1475_v33 = vld [vmem:[%s1864_s2 + $0x88] sm:$0xff] }
  0x17   : > { %606 = vmatpush.bf16.msra.mxu2 %v1463_v10  ;;  %v1468_v29 = vld [vmem:[%s1864_s2 + $0x50] sm:$0xff]  ;;  %287 = vst [vmem:[#allocation2 + $0x10] sm:$0xff] %v1716_v30  ;;  %v1483_v34 = vld [vmem:[%s1864_s2 + $0xc8] sm:$0xff]  ;;  %v289_v35 = vsel %vm280_vm6, %v285_v31, %v288_v32  ;;  %v1474_v41 = vld [vmem:[%s1864_s2 + $0x80] sm:$0xff]  ;;  %v504_v53 = vpack.c.b16 %v360_v38, %v360_v38  ;;  %v505_v54 = vpack.c.b16 %v361_v39, %v361_v39  ;;  %v665_v32 = vunpack.c.l.b16 %v1716_v30 }
  0x18   : > { %619 = vmatpush.bf16.msra.mxu3 %v1471_v11  ;;  %v1459_v36 = vld [vmem:[%s1864_s2 + $0x8] sm:$0xff]  ;;  %290 = vst [vmem:[#allocation2 + $0x18] sm:$0x11] %v289_v35  ;;  %v1482_v42 = vld [vmem:[%s1864_s2 + $0xc0] sm:$0xff]  ;;  %v1497_v47 = vld [vmem:[%s1864_s2 + $0x138] sm:$0xff] }
  0x19   : > { %481 = vmatpush.bf16.msra.mxu0 %v1478_v12  ;;  %v1467_v37 = vld [vmem:[%s1864_s2 + $0x48] sm:$0xff]  ;;  %v1458_v45 = vld [vmem:[%s1864_s2] sm:$0xff]  ;;  %v1505_v48 = vld [vmem:[%s1864_s2 + $0x178] sm:$0xff] }
  0x1a   : > { %494 = vmatpush.bf16.msra.mxu1 %v1486_v13  ;;  %v1466_v46 = vld [vmem:[%s1864_s2 + $0x40] sm:$0xff]  ;;  %v1515_v51 = vld [vmem:[%s1864_s2 + $0x1b8] sm:$0xff]  ;;  %v1496_v59 = vld [vmem:[%s1864_s2 + $0x130] sm:$0xff] }
  0x1b   : > { %607 = vmatpush.bf16.msra.mxu2 %v1462_v14  ;;  %v1523_v52 = vld [vmem:[%s1864_s2 + $0x1f8] sm:$0xff]  ;;  %v1504_v60 = vld [vmem:[%s1864_s2 + $0x170] sm:$0xff]  ;;  %v1495_v3 = vld [vmem:[%s1864_s2 + $0x128] sm:$0xff] }
  0x1c   : > { %620 = vmatpush.bf16.msra.mxu3 %v1470_v15  ;;  %v1514_v63 = vld [vmem:[%s1864_s2 + $0x1b0] sm:$0xff]  ;;  %v1503_v4 = vld [vmem:[%s1864_s2 + $0x168] sm:$0xff]  ;;  %v1494_v7 = vld [vmem:[%s1864_s2 + $0x120] sm:$0xff] }
  0x1d   : > { %482 = vmatpush.bf16.msra.mxu0 %v1477_v16  ;;  %v324_v40 = vld [vmem:[#allocation2 + $0x8] sm:$0x11]  ;;  %v1522_v0 = vld [vmem:[%s1864_s2 + $0x1f0] sm:$0xff]  ;;  %v1502_v8 = vld [vmem:[%s1864_s2 + $0x160] sm:$0xff] }
  0x1e   : > { %495 = vmatpush.bf16.msra.mxu1 %v1485_v17  ;;  %v362_v43 = vunpack.c.l.b16 %v324_v40  ;;  %v363_v44 = vunpack.c.h.b16 %v324_v40  ;;  %v1513_v5 = vld [vmem:[%s1864_s2 + $0x1a8] sm:$0xff]  ;;  %v1512_v9 = vld [vmem:[%s1864_s2 + $0x1a0] sm:$0xff]  ;;  %v1493_v11 = vld [vmem:[%s1864_s2 + $0x118] sm:$0xff] }
  0x1f   : > { %608 = vmatpush.bf16.msra.mxu2 %v1461_v22  ;;  %v1521_v6 = vld [vmem:[%s1864_s2 + $0x1e8] sm:$0xff]  ;;  %v1520_v10 = vld [vmem:[%s1864_s2 + $0x1e0] sm:$0xff]  ;;  %v1501_v12 = vld [vmem:[%s1864_s2 + $0x158] sm:$0xff] }
  0x20   : > { %621 = vmatpush.bf16.msra.mxu3 %v1469_v23  ;;  %v364_v49 = vpack.c.b16 %v362_v43, %v360_v38  ;;  %v365_v50 = vpack.c.b16 %v363_v44, %v361_v39  ;;  %v1511_v13 = vld [vmem:[%s1864_s2 + $0x198] sm:$0xff]  ;;  %v1383_v15 = vld [vmem:[#allocation2 + $0x10] sm:$0xf]  ;;  %v1506_v17 = vld [vmem:[#allocation2 + $0x14] sm:$0xf] }
  0x21   : > { %483 = vmatpush.bf16.msra.mxu0 %v1476_v26  ;;  %v1519_v14 = vld [vmem:[%s1864_s2 + $0x1d8] sm:$0xff]  ;;  %v1492_v19 = vld [vmem:[%s1864_s2 + $0x110] sm:$0xff]  ;;  %v1491_v25 = vld [vmem:[%s1864_s2 + $0x108] sm:$0xff] }
  0x22   : > { %496 = vmatpush.bf16.msra.mxu1 %v1484_v27  ;;  %v367_v55 = vshrl.u32 %v364_v49, 16  ;;  %v369_v56 = vshll.u32 %v364_v49, 16  ;;  %v374_v57 = vshrl.u32 %v365_v50, 16  ;;  %v376_v58 = vshll.u32 %v365_v50, 16  ;;  %v1507_v16 = vld [vmem:[#allocation2 + $0x14] sm:$0x10] }
  0x23   : > { %609 = vmatpush.bf16.msra.mxu2 %v1460_v28  ;;  %v1385_v18 = vld [vmem:[#allocation2 + $0x18] sm:$0x10]  ;;  %v1500_v20 = vld [vmem:[%s1864_s2 + $0x150] sm:$0xff]  ;;  %v1384_v21 = vor.u32 %v1507_v16, %v1383_v15  ;;  %v1499_v26 = vld [vmem:[%s1864_s2 + $0x148] sm:$0xff] }
  0x24   : > { %622 = vmatpush.bf16.msra.mxu3 %v1468_v29  ;;  %v371_v61 = vrot.slane %v369_v56, 1  ;;  %v378_v62 = vrot.slane %v376_v58, 1  ;;  %v1388_v22 = vor.u32 %v1506_v17, %v1385_v18  ;;  %v1510_v23 = vld [vmem:[%s1864_s2 + $0x190] sm:$0xff]  ;;  %v1509_v29 = vld [vmem:[%s1864_s2 + $0x188] sm:$0xff]  ;;  %v1498_v35 = vld [vmem:[%s1864_s2 + $0x140] sm:$0xff] }
  0x25   : > { %484 = vmatpush.bf16.msra.mxu0 %v1475_v33  ;;  %v1518_v24 = vld [vmem:[%s1864_s2 + $0x1d0] sm:$0xff]  ;;  %v840_v27 = vshll.u32 %v1384_v21, 16  ;;  %v1517_v31 = vld [vmem:[%s1864_s2 + $0x1c8] sm:$0xff]  ;;  %v666_v33 = vunpack.c.h.b16 %v1716_v30  ;;  %v1508_v30 = vld [vmem:[%s1864_s2 + $0x180] sm:$0xff] }
  0x26   : > { %497 = vmatpush.bf16.msra.mxu1 %v1483_v34  ;;  %v372_v1 = vor.u32 %v371_v61, %v367_v55  ;;  %v379_v2 = vor.u32 %v378_v62, %v374_v57  ;;  %v847_v28 = vshll.u32 %v1388_v22, 16  ;;  %v1490_v34 = vld [vmem:[%s1864_s2 + $0x100] sm:$0xff]  ;;  %v845_v38 = vshrl.u32 %v1388_v22, 16 }
  0x27   : > { %610 = vmatpush.bf16.msra.mxu2 %v1459_v36  ;;  %v838_v36 = vshrl.u32 %v1384_v21, 16  ;;  %v1516_v40 = vld [vmem:[%s1864_s2 + $0x1c0] sm:$0xff] }
  0x28   : > { %623 = vmatpush.bf16.msra.mxu3 %v1467_v37  ;;  %v842_v37 = vrot.slane %v840_v27, 1  ;;  %v849_v39 = vrot.slane %v847_v28, 1 }
  0x29   : > { %485 = vmatpush.bf16.msra.mxu0 %v1474_v41  ;;  %v667_v41 = vpack.c.b16 %v665_v32, %v665_v32 }
  0x2a   : > { %498 = vmatpush.bf16.msra.mxu1 %v1482_v42  ;;  %v668_v42 = vpack.c.b16 %v666_v33, %v666_v33  ;;  %v843_v43 = vor.u32 %v842_v37, %v838_v36  ;;  %v850_v44 = vor.u32 %v849_v39, %v845_v38 }
  0x2b   : > { %611 = vmatpush.bf16.msra.mxu2 %v1458_v45 }
  0x2c   : > { %624 = vmatpush.bf16.msra.mxu3 %v1466_v46  ;;  %486 = vmatmul.bf16.vlgmr.msra.gmra.mxu0 %v372_v1 }
  0x2d   : > { %767 = vmatpush.bf16.msrb.mxu0 %v1497_v47  ;;  %499 = vmatmul.bf16.vlgmr.msra.gmra.mxu1 %v379_v2 }
  0x2e   : > { %780 = vmatpush.bf16.msrb.mxu1 %v1505_v48  ;;  %612 = vmatmul.bf16.vlgmr.msra.gmra.mxu2 %v504_v53 }
  0x2f   : > { %949 = vmatpush.bf16.msrb.mxu2 %v1515_v51  ;;  %625 = vmatmul.bf16.vlgmr.msra.gmra.mxu3 %v505_v54 }
  0x30   : > { %962 = vmatpush.bf16.msrb.mxu3 %v1523_v52 }
  0x31   : > { %768 = vmatpush.bf16.msrb.mxu0 %v1496_v59 }
  0x32   : > { %781 = vmatpush.bf16.msrb.mxu1 %v1504_v60 }
  0x33   : > { %950 = vmatpush.bf16.msrb.mxu2 %v1514_v63  ;;  %v1549_v63 = vld [vmem:[%s1865_s3] ss:$0 sm:$0xff] }
  0x34   : > { %963 = vmatpush.bf16.msrb.mxu3 %v1522_v0 }
  0x35   : > { %769 = vmatpush.bf16.msrb.mxu0 %v1495_v3 }
  0x36   : > { %782 = vmatpush.bf16.msrb.mxu1 %v1503_v4 }
  0x37   : > { %951 = vmatpush.bf16.msrb.mxu2 %v1513_v5 }
  0x38   : > { %964 = vmatpush.bf16.msrb.mxu3 %v1521_v6 }
  0x39   : > { %770 = vmatpush.bf16.msrb.mxu0 %v1494_v7 }
  0x3a   : > { %783 = vmatpush.bf16.msrb.mxu1 %v1502_v8 }
  0x3b   : > { %952 = vmatpush.bf16.msrb.mxu2 %v1512_v9 }
  0x3c   : > { %965 = vmatpush.bf16.msrb.mxu3 %v1520_v10 }
  0x3d   : > { %771 = vmatpush.bf16.msrb.mxu0 %v1493_v11 }
  0x3e   : > { %784 = vmatpush.bf16.msrb.mxu1 %v1501_v12 }
  0x3f   : > { %953 = vmatpush.bf16.msrb.mxu2 %v1511_v13 }
  0x40   : > { %966 = vmatpush.bf16.msrb.mxu3 %v1519_v14 }
  0x41   : > { %772 = vmatpush.bf16.msrb.mxu0 %v1492_v19 }
  0x42   : > { %785 = vmatpush.bf16.msrb.mxu1 %v1500_v20 }
  0x43   : > { %954 = vmatpush.bf16.msrb.mxu2 %v1510_v23 }
  0x44   : > { %967 = vmatpush.bf16.msrb.mxu3 %v1518_v24 }
  0x45   : > { %773 = vmatpush.bf16.msrb.mxu0 %v1491_v25 }
  0x46   : > { %786 = vmatpush.bf16.msrb.mxu1 %v1499_v26 }
  0x47   : > { %955 = vmatpush.bf16.msrb.mxu2 %v1509_v29 }
  0x48   : > { %968 = vmatpush.bf16.msrb.mxu3 %v1517_v31 }
  0x49   : > { %774 = vmatpush.bf16.msrb.mxu0 %v1490_v34 }
  0x4a   : > { %787 = vmatpush.bf16.msrb.mxu1 %v1498_v35 }
  0x4b   : > { %956 = vmatpush.bf16.msrb.mxu2 %v1508_v30 }
  0x4c   : > { %969 = vmatpush.bf16.msrb.mxu3 %v1516_v40  ;;  %775 = vmatmul.bf16.vlgmr.msrb.gmra.mxu0 %v667_v41 }
  0x4d   : > { %788 = vmatmul.bf16.vlgmr.msrb.gmra.mxu1 %v668_v42 }
  0x4e   : > { %957 = vmatmul.bf16.vlgmr.msrb.gmra.mxu2 %v843_v43 }
  0x4f   : > { %970 = vmatmul.bf16.vlgmr.msrb.gmra.mxu3 %v850_v44 }
  0xa9   : > { %v487_v45 = vpop.f32.mrf.mxu0 }
  0xaa   : > { %v500_v46 = vpop.f32.mrf.mxu1 }
  0xab   : > { %v501_v53 = vadd.f32 %v500_v46, %v487_v45 }
  0xb1   : > { %v613_v47 = vpop.f32.mrf.mxu2  ;;  %v489_v49 = vpop.f32.mrf.mxu0 }
  0xb2   : > { %v626_v48 = vpop.f32.mrf.mxu3  ;;  %v502_v50 = vpop.f32.mrf.mxu1  ;;  %v614_v56 = vadd.f32 %v613_v47, %v501_v53 }
  0xb4   : > { %v627_v58 = vadd.f32 %v626_v48, %v614_v56 }
  0xb9   : > { %v615_v51 = vpop.f32.mrf.mxu2 }
  0xba   : > { %v628_v52 = vpop.f32.mrf.mxu3 }
  0xc9   : > { %v776_v54 = vpop.f32.mrf.mxu0 }
  0xca   : > { %v789_v55 = vpop.f32.mrf.mxu1 }
  0xcb   : > { %v790_v57 = vadd.f32 %v789_v55, %v776_v54 }
  0xcd   : > { %v793_v61 = vadd.f32 %v790_v57, %v627_v58 }
  0xd1   : > { %v958_v59 = vpop.f32.mrf.mxu2  ;;  %v778_v0 = vpop.f32.mrf.mxu0 }
  0xd2   : > { %v971_v60 = vpop.f32.mrf.mxu3  ;;  %v791_v1 = vpop.f32.mrf.mxu1 }
  0xd3   : > { %v972_v62 = vadd.f32 %v971_v60, %v958_v59 }
  0xd5   : > { %v975_v2 = vadd.f32 %v972_v62, %v793_v61 }
  0xd7   : > { %v980_v3 = vadd.f32 %v1549_v63, %v975_v2 }
  0xd9   : > { %981 = vst [vmem:[%s270_s28] sm:$0xff] %v980_v3  ;;  %v960_v4 = vpop.f32.mrf.mxu2 }
  0xda   : > { %v973_v5 = vpop.f32.mrf.mxu3 }
  0xdb PF: > { %s14_s17 = sadd.s32 1, %s1572_s17   ;;  %s1871_s15 = smov %s1568_s16 }
  0xdc   : > { %p11_p5 = scmp.ge.s32.totalorder %s14_s17, 4   ;;  %s1872_s16 = smov %s1874_s18 }
  0xde   :  { %13 = sbr.rel (!%p11_p5) target bundleno = 2 (0x2), region = 73 }

</bundles_post_ra>
